<compile_context>
chip_gen: v7x
topology: tpu7x:2x2x1
jax: 0.10.0
libtpu: 0.0.40
codegen_flags: <defaults>
</compile_context>

<pallas_src>
import functools

import jax
import jax.numpy as jnp
from jax.experimental import pallas as pl
from jax.experimental.pallas import tpu as pltpu

BN_EPS = 1e-5


# ------------------------------ small helpers ------------------------------ #

def _round_up(x, m):
    return ((x + m - 1) // m) * m


def _pick_tile_m(m):
    for t in (512, 256, 128, 64, 32, 16, 8):
        if m % t == 0:
            return t
    return m


def _phase_decompose(xp, stride):
    """Decompose the spatially padded NHWC image for in-kernel tap slicing.

    Returns (phases, taps) where taps[t] = (phase_index, row_off, col_off) and
    tap t corresponds to (kh, kw) = (t // 3, t % 3). For stride 1 there is one
    phase (the image itself) and taps are plain contiguous offsets; for stride
    2 the four stride-phases are extracted once at JAX level (same total bytes
    as the input) so the kernel only ever takes contiguous static slices.
    """
    if stride == 1:
        phases = [xp]
        taps = [(0, kh, kw) for kh in range(3) for kw in range(3)]
        return phases, taps
    assert stride == 2
    phases, index = [], {}
    for ph in range(2):
        for pw in range(2):
            index[(ph, pw)] = len(phases)
            phases.append(xp[:, ph::2, pw::2, :])
    taps = [(index[(kh % 2, kw % 2)], kh // 2, kw // 2)
            for kh in range(3) for kw in range(3)]
    return phases, taps


def _conv_w_to_taps(w_oihw, cin_pad, cout_pad):
    """(Cout, Cin, 3, 3) -> (9, Cin_pad, Cout_pad) bf16, tap t = kh*3 + kw."""
    cout, cin, kh, kw = w_oihw.shape
    w = jnp.transpose(w_oihw, (2, 3, 1, 0)).reshape(kh * kw, cin, cout)
    w = jnp.pad(w, ((0, 0), (0, cin_pad - cin), (0, cout_pad - cout)))
    return w.astype(jnp.bfloat16)


def _bn_scale_shift(stats_nb, gamma, beta, count, c_pad):
    """Fold training-mode BN (batch stats) into per-channel scale/shift (f32).

    stats_nb: (N, 2, C_pad) per-image [sum, sum_of_squares] partials.
    """
    c = gamma.shape[0]
    stats = jnp.sum(stats_nb, axis=0)                  # (2, C_pad) global stats
    gamma_p = jnp.pad(gamma, (0, c_pad - c))
    beta_p = jnp.pad(beta, (0, c_pad - c))
    mean = stats[0] / count
    var = jnp.maximum(stats[1] / count - mean * mean, 0.0)   # biased var (PyTorch fwd)
    scale = gamma_p * jax.lax.rsqrt(var + BN_EPS)
    shift = beta_p - mean * scale
    return (scale.reshape(1, c_pad).astype(jnp.float32),
            shift.reshape(1, c_pad).astype(jnp.float32))


# ------------------------- kernel 1/3: conv3x3 + stats ---------------------- #

def _conv3x3_stats(phases, taps, w_taps, oh, ow, cout_pad):
    """3x3 conv (no bias) + per-image per-channel sum / sum-of-squares.

    Grid over batch ("parallel": every step writes its own y block and its own
    (1, 2, Cout_pad) stats block, so no cross-step dependence). Global BN stats
    are obtained by summing the per-image partials in XLA.
    """
    n = phases[0].shape[0]
    n_ph = len(phases)

    def kernel(*refs):
        phase_refs = refs[:n_ph]
        w_ref = refs[n_ph]            # (9, Cin_pad, Cout_pad) bf16, resident
        y_ref = refs[n_ph + 1]        # (1, OH, OW, Cout_pad) f32
        stats_ref = refs[n_ph + 2]    # (1, 2, Cout_pad) f32 per-image partials

        acc = jnp.zeros((oh * ow, cout_pad), jnp.float32)
        for t, (pi, r0, c0) in enumerate(taps):          # 9 static taps
            xt = phase_refs[pi][0, r0:r0 + oh, c0:c0 + ow, :]
            xt = xt.reshape(oh * ow, xt.shape[-1])        # (M_tile, Cin_pad) bf16
            acc = acc + jnp.dot(xt, w_ref[t],
                                preferred_element_type=jnp.float32)

        y_ref[...] = acc.reshape(1, oh, ow, cout_pad)

        s = jnp.sum(acc, axis=0, keepdims=True)
        ssq = jnp.sum(acc * acc, axis=0, keepdims=True)
        stats_ref[...] = jnp.concatenate([s, ssq], axis=0).reshape(1, 2, cout_pad)

    in_specs = [pl.BlockSpec((1,) + p.shape[1:], lambda i: (i, 0, 0, 0))
                for p in phases]
    in_specs.append(pl.BlockSpec(w_taps.shape, lambda i: (0, 0, 0)))

    y, stats = pl.pallas_call(
        kernel,
        out_shape=(jax.ShapeDtypeStruct((n, oh, ow, cout_pad), jnp.float32),
                   jax.ShapeDtypeStruct((n, 2, cout_pad), jnp.float32)),
        grid=(n,),
        in_specs=in_specs,
        out_specs=(pl.BlockSpec((1, oh, ow, cout_pad), lambda i: (i, 0, 0, 0)),
                   pl.BlockSpec((1, 2, cout_pad), lambda i: (i, 0, 0))),
        compiler_params=pltpu.CompilerParams(
            dimension_semantics=("parallel",)),
    )(*phases, w_taps)
    return y, stats


# ---------------- kernel 2: BN1 apply + ReLU + zero spatial pad -------------- #

def _bn_relu_pad(y_raw, scale, shift):
    n, oh, ow, c = y_raw.shape

    def kernel(y_ref, scale_ref, shift_ref, o_ref):
        sc = scale_ref[...].reshape(1, 1, c)
        sh = shift_ref[...].reshape(1, 1, c)
        act = jnp.maximum(y_ref[0] * sc + sh, 0.0)            # (OH, OW, C) f32
        o_ref[...] = jnp.zeros_like(o_ref)                    # zero halo for conv2
        o_ref[0, 1:oh + 1, 1:ow + 1, :] = act.astype(o_ref.dtype)

    return pl.pallas_call(
        kernel,
        out_shape=jax.ShapeDtypeStruct((n, oh + 2, ow + 2, c), jnp.bfloat16),
        grid=(n,),
        in_specs=[pl.BlockSpec((1, oh, ow, c), lambda i: (i, 0, 0, 0)),
                  pl.BlockSpec((1, c), lambda i: (0, 0)),
                  pl.BlockSpec((1, c), lambda i: (0, 0))],
        out_specs=pl.BlockSpec((1, oh + 2, ow + 2, c), lambda i: (i, 0, 0, 0)),
        compiler_params=pltpu.CompilerParams(
            dimension_semantics=("parallel",)),
    )(y_raw, scale, shift)


# ------------- kernel 4: BN2 apply + shortcut + add + final ReLU ------------- #

def _bn2_add_relu_half(y2, scale, shift, xs, w_sc, b_sc, tile_m):
    m, c = y2.shape
    kc = xs.shape[1]

    def kernel(y_ref, sc_ref, sh_ref, xs_ref, w_ref, b_ref, o_ref):
        bn = y_ref[...] * sc_ref[...] + sh_ref[...]
        short = jnp.dot(xs_ref[...], w_ref[...],
                        preferred_element_type=jnp.float32) + b_ref[...]
        o_ref[...] = jnp.maximum(bn + short, 0.0)

    return pl.pallas_call(
        kernel,
        out_shape=jax.ShapeDtypeStruct((m, c), jnp.float32),
        grid=(m // tile_m,),
        in_specs=[pl.BlockSpec((tile_m, c), lambda i: (i, 0)),
                  pl.BlockSpec((1, c), lambda i: (0, 0)),
                  pl.BlockSpec((1, c), lambda i: (0, 0)),
                  pl.BlockSpec((tile_m, kc), lambda i: (i, 0)),
                  pl.BlockSpec((kc, c), lambda i: (0, 0)),
                  pl.BlockSpec((1, c), lambda i: (0, 0))],
        out_specs=pl.BlockSpec((tile_m, c), lambda i: (i, 0)),
        compiler_params=pltpu.CompilerParams(
            dimension_semantics=("parallel",)),
    )(y2, scale, shift, xs, w_sc, b_sc)


def _bn2_add_relu_identity(y2, scale, shift, x_id, tile_m):
    m, c = y2.shape

    def kernel(y_ref, sc_ref, sh_ref, x_ref, o_ref):
        bn = y_ref[...] * sc_ref[...] + sh_ref[...]
        o_ref[...] = jnp.maximum(bn + x_ref[...], 0.0)

    return pl.pallas_call(
        kernel,
        out_shape=jax.ShapeDtypeStruct((m, c), jnp.float32),
        grid=(m // tile_m,),
        in_specs=[pl.BlockSpec((tile_m, c), lambda i: (i, 0)),
                  pl.BlockSpec((1, c), lambda i: (0, 0)),
                  pl.BlockSpec((1, c), lambda i: (0, 0)),
                  pl.BlockSpec((tile_m, c), lambda i: (i, 0))],
        out_specs=pl.BlockSpec((tile_m, c), lambda i: (i, 0)),
        compiler_params=pltpu.CompilerParams(
            dimension_semantics=("parallel",)),
    )(y2, scale, shift, x_id)


# ------------------------------- parameters --------------------------------- #

def init_resblock_params(key, in_channel, out_channel):
    half = in_channel != out_channel
    keys = jax.random.split(key, 6)
    p = {
        "w1": jax.random.normal(keys[0], (out_channel, in_channel, 3, 3), jnp.float32) * 0.1,
        # b1 / b2 kept for interface parity; they are exact no-ops in the
        # forward pass because training-mode BN subtracts the batch mean.
        "b1": jax.random.normal(keys[1], (out_channel,), jnp.float32) * 0.1,
        "gamma1": jnp.ones((out_channel,), jnp.float32),
        "beta1": jnp.zeros((out_channel,), jnp.float32),
        "w2": jax.random.normal(keys[2], (out_channel, out_channel, 3, 3), jnp.float32) * 0.1,
        "b2": jax.random.normal(keys[3], (out_channel,), jnp.float32) * 0.1,
        "gamma2": jnp.ones((out_channel,), jnp.float32),
        "beta2": jnp.zeros((out_channel,), jnp.float32),
    }
    if half:
        p["w_half"] = jax.random.normal(keys[4], (out_channel, in_channel, 1, 1), jnp.float32) * 0.1
        p["b_half"] = jax.random.normal(keys[5], (out_channel,), jnp.float32) * 0.1
    return p


# --------------------------------- forward ---------------------------------- #

def resblock_forward(x_nchw, params, in_channel, out_channel):
    half = in_channel != out_channel
    stride1 = 2 if half else 1
    n, _, h, w = x_nchw.shape
    cin_pad = _round_up(in_channel, 8)
    cout_pad = _round_up(out_channel, 128)     # lane-dense outputs

    x_nhwc = jnp.transpose(x_nchw, (0, 2, 3, 1)).astype(jnp.float32)
    x_cp = jnp.pad(x_nhwc, ((0, 0), (0, 0), (0, 0), (0, cin_pad - in_channel)))
    xp = jnp.pad(x_cp, ((0, 0), (1, 1), (1, 1), (0, 0))).astype(jnp.bfloat16)

    oh = (h + 2 - 3) // stride1 + 1
    ow = (w + 2 - 3) // stride1 + 1
    m = n * oh * ow

    # ---- conv1 (3x3, stride1, pad 1) + BN1 stat partials, fused ----
    phases1, taps1 = _phase_decompose(xp, stride1)
    w1 = _conv_w_to_taps(params["w1"], cin_pad, cout_pad)
    y1_raw, stats1 = _conv3x3_stats(phases1, taps1, w1, oh, ow, cout_pad)

    # ---- BN1 apply + ReLU + zero spatial pad for conv2 (fused) ----
    scale1, shift1 = _bn_scale_shift(stats1, params["gamma1"], params["beta1"], m, cout_pad)
    y1_act_pad = _bn_relu_pad(y1_raw, scale1, shift1)     # (N, OH+2, OW+2, Cpad) bf16

    # ---- conv2 (3x3, stride 1, pad 1) + BN2 stat partials, fused ----
    phases2, taps2 = _phase_decompose(y1_act_pad, 1)
    w2 = _conv_w_to_taps(params["w2"], cout_pad, cout_pad)
    y2_raw, stats2 = _conv3x3_stats(phases2, taps2, w2, oh, ow, cout_pad)

    # ---- BN2 apply + shortcut + residual add + final ReLU (fused) ----
    scale2, shift2 = _bn_scale_shift(stats2, params["gamma2"], params["beta2"], m, cout_pad)
    y2_2d = y2_raw.reshape(m, cout_pad)
    tile_m = _pick_tile_m(m)

    if half:
        x_s = x_cp[:, ::2, ::2, :].reshape(m, cin_pad).astype(jnp.bfloat16)
        w_sc = params["w_half"][:, :, 0, 0].T            # (Cin, Cout)
        w_sc = jnp.pad(w_sc, ((0, cin_pad - in_channel),
                              (0, cout_pad - out_channel))).astype(jnp.bfloat16)
        b_sc = jnp.pad(params["b_half"], (0, cout_pad - out_channel))
        b_sc = b_sc.reshape(1, cout_pad).astype(jnp.float32)
        out2d = _bn2_add_relu_half(y2_2d, scale2, shift2, x_s, w_sc, b_sc, tile_m)
    else:
        x_id = jnp.pad(x_nhwc, ((0, 0), (0, 0), (0, 0),
                                (0, cout_pad - in_channel))).reshape(m, cout_pad)
        out2d = _bn2_add_relu_identity(y2_2d, scale2, shift2, x_id, tile_m)

    out = out2d.reshape(n, oh, ow, cout_pad)[..., :out_channel]
    return jnp.transpose(out, (0, 3, 1, 2))               # back to NCHW


resblock_forward_jit = functools.partial(jax.jit, static_argnums=(2, 3))(resblock_forward)


# ----------------------------------- main ------------------------------------ #

if __name__ == "__main__":
    key = jax.random.PRNGKey(0)
    k_x, k_p, k_x2, k_p2 = jax.random.split(key, 4)

    # --- half path (in != out): stride-2 conv1 + 1x1 stride-2 shortcut ---
    in_channel, out_channel = 4, 8
    x = jax.random.normal(k_x, (2, in_channel, 16, 16), jnp.float32)   # NCHW
    params = init_resblock_params(k_p, in_channel, out_channel)
    out = resblock_forward_jit(x, params, in_channel, out_channel)
    out = jax.block_until_ready(out)
    assert out.shape == (2, out_channel, 8, 8), out.shape
    assert bool(jnp.all(out >= 0.0))     # final ReLU

    # --- identity path (in == out): stride-1 conv1 + identity shortcut ---
    c_id = 4
    x2 = jax.random.normal(k_x2, (2, c_id, 16, 16), jnp.float32)
    params2 = init_resblock_params(k_p2, c_id, c_id)
    out2 = resblock_forward_jit(x2, params2, c_id, c_id)
    out2 = jax.block_until_ready(out2)
    assert out2.shape == (2, c_id, 16, 16), out2.shape
    assert bool(jnp.all(out2 >= 0.0))

    print("KERNEL_OK")
</pallas_src>

<mosaic_0001>
module attributes {stable_mosaic.version = 11 : i64} {
  func.func @kernel(%arg0: i32, %arg1: memref<1x9x9x8xbf16, #tpu.memory_space<vmem>>, %arg2: memref<1x9x9x8xbf16, #tpu.memory_space<vmem>>, %arg3: memref<1x9x9x8xbf16, #tpu.memory_space<vmem>>, %arg4: memref<1x9x9x8xbf16, #tpu.memory_space<vmem>>, %arg5: memref<9x8x128xbf16, #tpu.memory_space<vmem>>, %arg6: memref<1x8x8x128xf32, #tpu.memory_space<vmem>>, %arg7: memref<1x2x128xf32, #tpu.memory_space<vmem>>) attributes {dimension_semantics = [#tpu.dimension_semantics<parallel>], iteration_bounds = array<i64: 2>, scalar_prefetch = 0 : i64, scratch_operands = 0 : i64, tpu.core_type = #tpu.core_type<tc>, window_params = [{transform_indices = @transform_0, window_bounds = array<i64: 1, 9, 9, 8>}, {transform_indices = @transform_1, window_bounds = array<i64: 1, 9, 9, 8>}, {transform_indices = @transform_2, window_bounds = array<i64: 1, 9, 9, 8>}, {transform_indices = @transform_3, window_bounds = array<i64: 1, 9, 9, 8>}, {pipeline_mode = #tpu.pipeline_mode<synchronous>, transform_indices = @transform_4, window_bounds = array<i64: 9, 8, 128>}, {transform_indices = @transform_5, window_bounds = array<i64: 1, 8, 8, 128>}, {transform_indices = @transform_6, window_bounds = array<i64: 1, 2, 128>}]} {
    %cst = arith.constant 0.000000e+00 : f32
    %0 = vector.broadcast %cst : f32 to vector<64x128xf32>
    %c0 = arith.constant 0 : index
    %c0_0 = arith.constant 0 : index
    %c0_1 = arith.constant 0 : index
    %c0_2 = arith.constant 0 : index
    %1 = vector.load %arg1[%c0, %c0_0, %c0_1, %c0_2] : memref<1x9x9x8xbf16, #tpu.memory_space<vmem>>, vector<1x8x8x8xbf16>
    %2 = vector.shape_cast %1 : vector<1x8x8x8xbf16> to vector<8x8x8xbf16>
    %3 = vector.shape_cast %2 : vector<8x8x8xbf16> to vector<64x8xbf16>
    %c0_3 = arith.constant 0 : index
    %c0_4 = arith.constant 0 : index
    %c0_5 = arith.constant 0 : index
    %4 = vector.load %arg5[%c0_3, %c0_4, %c0_5] : memref<9x8x128xbf16, #tpu.memory_space<vmem>>, vector<1x8x128xbf16>
    %5 = vector.shape_cast %4 : vector<1x8x128xbf16> to vector<8x128xbf16>
    %cst_6 = arith.constant dense<0.000000e+00> : vector<64x128xf32>
    %6 = tpu.matmul %3, %5, %cst_6 {dimension_numbers = #tpu.dot_dimension_numbers<[1], [0], [0], [1], [0, 0, 1, 1], [], []>} : vector<64x8xbf16>, vector<8x128xbf16>, vector<64x128xf32> -> vector<64x128xf32>
    %7 = arith.addf %0, %6 : vector<64x128xf32>
    %c0_7 = arith.constant 0 : index
    %c0_8 = arith.constant 0 : index
    %c0_9 = arith.constant 0 : index
    %c0_10 = arith.constant 0 : index
    %8 = vector.load %arg2[%c0_7, %c0_8, %c0_9, %c0_10] : memref<1x9x9x8xbf16, #tpu.memory_space<vmem>>, vector<1x8x8x8xbf16>
    %9 = vector.shape_cast %8 : vector<1x8x8x8xbf16> to vector<8x8x8xbf16>
    %10 = vector.shape_cast %9 : vector<8x8x8xbf16> to vector<64x8xbf16>
    %c1 = arith.constant 1 : index
    %c0_11 = arith.constant 0 : index
    %c0_12 = arith.constant 0 : index
    %11 = vector.load %arg5[%c1, %c0_11, %c0_12] : memref<9x8x128xbf16, #tpu.memory_space<vmem>>, vector<1x8x128xbf16>
    %12 = vector.shape_cast %11 : vector<1x8x128xbf16> to vector<8x128xbf16>
    %cst_13 = arith.constant dense<0.000000e+00> : vector<64x128xf32>
    %13 = tpu.matmul %10, %12, %cst_13 {dimension_numbers = #tpu.dot_dimension_numbers<[1], [0], [0], [1], [0, 0, 1, 1], [], []>} : vector<64x8xbf16>, vector<8x128xbf16>, vector<64x128xf32> -> vector<64x128xf32>
    %14 = arith.addf %7, %13 : vector<64x128xf32>
    %c0_14 = arith.constant 0 : index
    %c0_15 = arith.constant 0 : index
    %c1_16 = arith.constant 1 : index
    %c0_17 = arith.constant 0 : index
    %15 = vector.load %arg1[%c0_14, %c0_15, %c1_16, %c0_17] : memref<1x9x9x8xbf16, #tpu.memory_space<vmem>>, vector<1x8x8x8xbf16>
    %16 = vector.shape_cast %15 : vector<1x8x8x8xbf16> to vector<8x8x8xbf16>
    %17 = vector.shape_cast %16 : vector<8x8x8xbf16> to vector<64x8xbf16>
    %c2 = arith.constant 2 : index
    %c0_18 = arith.constant 0 : index
    %c0_19 = arith.constant 0 : index
    %18 = vector.load %arg5[%c2, %c0_18, %c0_19] : memref<9x8x128xbf16, #tpu.memory_space<vmem>>, vector<1x8x128xbf16>
    %19 = vector.shape_cast %18 : vector<1x8x128xbf16> to vector<8x128xbf16>
    %cst_20 = arith.constant dense<0.000000e+00> : vector<64x128xf32>
    %20 = tpu.matmul %17, %19, %cst_20 {dimension_numbers = #tpu.dot_dimension_numbers<[1], [0], [0], [1], [0, 0, 1, 1], [], []>} : vector<64x8xbf16>, vector<8x128xbf16>, vector<64x128xf32> -> vector<64x128xf32>
    %21 = arith.addf %14, %20 : vector<64x128xf32>
    %c0_21 = arith.constant 0 : index
    %c0_22 = arith.constant 0 : index
    %c0_23 = arith.constant 0 : index
    %c0_24 = arith.constant 0 : index
    %22 = vector.load %arg3[%c0_21, %c0_22, %c0_23, %c0_24] : memref<1x9x9x8xbf16, #tpu.memory_space<vmem>>, vector<1x8x8x8xbf16>
    %23 = vector.shape_cast %22 : vector<1x8x8x8xbf16> to vector<8x8x8xbf16>
    %24 = vector.shape_cast %23 : vector<8x8x8xbf16> to vector<64x8xbf16>
    %c3 = arith.constant 3 : index
    %c0_25 = arith.constant 0 : index
    %c0_26 = arith.constant 0 : index
    %25 = vector.load %arg5[%c3, %c0_25, %c0_26] : memref<9x8x128xbf16, #tpu.memory_space<vmem>>, vector<1x8x128xbf16>
    %26 = vector.shape_cast %25 : vector<1x8x128xbf16> to vector<8x128xbf16>
    %cst_27 = arith.constant dense<0.000000e+00> : vector<64x128xf32>
    %27 = tpu.matmul %24, %26, %cst_27 {dimension_numbers = #tpu.dot_dimension_numbers<[1], [0], [0], [1], [0, 0, 1, 1], [], []>} : vector<64x8xbf16>, vector<8x128xbf16>, vector<64x128xf32> -> vector<64x128xf32>
    %28 = arith.addf %21, %27 : vector<64x128xf32>
    %c0_28 = arith.constant 0 : index
    %c0_29 = arith.constant 0 : index
    %c0_30 = arith.constant 0 : index
    %c0_31 = arith.constant 0 : index
    %29 = vector.load %arg4[%c0_28, %c0_29, %c0_30, %c0_31] : memref<1x9x9x8xbf16, #tpu.memory_space<vmem>>, vector<1x8x8x8xbf16>
    %30 = vector.shape_cast %29 : vector<1x8x8x8xbf16> to vector<8x8x8xbf16>
    %31 = vector.shape_cast %30 : vector<8x8x8xbf16> to vector<64x8xbf16>
    %c4 = arith.constant 4 : index
    %c0_32 = arith.constant 0 : index
    %c0_33 = arith.constant 0 : index
    %32 = vector.load %arg5[%c4, %c0_32, %c0_33] : memref<9x8x128xbf16, #tpu.memory_space<vmem>>, vector<1x8x128xbf16>
    %33 = vector.shape_cast %32 : vector<1x8x128xbf16> to vector<8x128xbf16>
    %cst_34 = arith.constant dense<0.000000e+00> : vector<64x128xf32>
    %34 = tpu.matmul %31, %33, %cst_34 {dimension_numbers = #tpu.dot_dimension_numbers<[1], [0], [0], [1], [0, 0, 1, 1], [], []>} : vector<64x8xbf16>, vector<8x128xbf16>, vector<64x128xf32> -> vector<64x128xf32>
    %35 = arith.addf %28, %34 : vector<64x128xf32>
    %c0_35 = arith.constant 0 : index
    %c0_36 = arith.constant 0 : index
    %c1_37 = arith.constant 1 : index
    %c0_38 = arith.constant 0 : index
    %36 = vector.load %arg3[%c0_35, %c0_36, %c1_37, %c0_38] : memref<1x9x9x8xbf16, #tpu.memory_space<vmem>>, vector<1x8x8x8xbf16>
    %37 = vector.shape_cast %36 : vector<1x8x8x8xbf16> to vector<8x8x8xbf16>
    %38 = vector.shape_cast %37 : vector<8x8x8xbf16> to vector<64x8xbf16>
    %c5 = arith.constant 5 : index
    %c0_39 = arith.constant 0 : index
    %c0_40 = arith.constant 0 : index
    %39 = vector.load %arg5[%c5, %c0_39, %c0_40] : memref<9x8x128xbf16, #tpu.memory_space<vmem>>, vector<1x8x128xbf16>
    %40 = vector.shape_cast %39 : vector<1x8x128xbf16> to vector<8x128xbf16>
    %cst_41 = arith.constant dense<0.000000e+00> : vector<64x128xf32>
    %41 = tpu.matmul %38, %40, %cst_41 {dimension_numbers = #tpu.dot_dimension_numbers<[1], [0], [0], [1], [0, 0, 1, 1], [], []>} : vector<64x8xbf16>, vector<8x128xbf16>, vector<64x128xf32> -> vector<64x128xf32>
    %42 = arith.addf %35, %41 : vector<64x128xf32>
    %c0_42 = arith.constant 0 : index
    %c1_43 = arith.constant 1 : index
    %c0_44 = arith.constant 0 : index
    %c0_45 = arith.constant 0 : index
    %43 = vector.load %arg1[%c0_42, %c1_43, %c0_44, %c0_45] : memref<1x9x9x8xbf16, #tpu.memory_space<vmem>>, vector<1x8x8x8xbf16>
    %44 = vector.shape_cast %43 : vector<1x8x8x8xbf16> to vector<8x8x8xbf16>
    %45 = vector.shape_cast %44 : vector<8x8x8xbf16> to vector<64x8xbf16>
    %c6 = arith.constant 6 : index
    %c0_46 = arith.constant 0 : index
    %c0_47 = arith.constant 0 : index
    %46 = vector.load %arg5[%c6, %c0_46, %c0_47] : memref<9x8x128xbf16, #tpu.memory_space<vmem>>, vector<1x8x128xbf16>
    %47 = vector.shape_cast %46 : vector<1x8x128xbf16> to vector<8x128xbf16>
    %cst_48 = arith.constant dense<0.000000e+00> : vector<64x128xf32>
    %48 = tpu.matmul %45, %47, %cst_48 {dimension_numbers = #tpu.dot_dimension_numbers<[1], [0], [0], [1], [0, 0, 1, 1], [], []>} : vector<64x8xbf16>, vector<8x128xbf16>, vector<64x128xf32> -> vector<64x128xf32>
    %49 = arith.addf %42, %48 : vector<64x128xf32>
    %c0_49 = arith.constant 0 : index
    %c1_50 = arith.constant 1 : index
    %c0_51 = arith.constant 0 : index
    %c0_52 = arith.constant 0 : index
    %50 = vector.load %arg2[%c0_49, %c1_50, %c0_51, %c0_52] : memref<1x9x9x8xbf16, #tpu.memory_space<vmem>>, vector<1x8x8x8xbf16>
    %51 = vector.shape_cast %50 : vector<1x8x8x8xbf16> to vector<8x8x8xbf16>
    %52 = vector.shape_cast %51 : vector<8x8x8xbf16> to vector<64x8xbf16>
    %c7 = arith.constant 7 : index
    %c0_53 = arith.constant 0 : index
    %c0_54 = arith.constant 0 : index
    %53 = vector.load %arg5[%c7, %c0_53, %c0_54] : memref<9x8x128xbf16, #tpu.memory_space<vmem>>, vector<1x8x128xbf16>
    %54 = vector.shape_cast %53 : vector<1x8x128xbf16> to vector<8x128xbf16>
    %cst_55 = arith.constant dense<0.000000e+00> : vector<64x128xf32>
    %55 = tpu.matmul %52, %54, %cst_55 {dimension_numbers = #tpu.dot_dimension_numbers<[1], [0], [0], [1], [0, 0, 1, 1], [], []>} : vector<64x8xbf16>, vector<8x128xbf16>, vector<64x128xf32> -> vector<64x128xf32>
    %56 = arith.addf %49, %55 : vector<64x128xf32>
    %c0_56 = arith.constant 0 : index
    %c1_57 = arith.constant 1 : index
    %c1_58 = arith.constant 1 : index
    %c0_59 = arith.constant 0 : index
    %57 = vector.load %arg1[%c0_56, %c1_57, %c1_58, %c0_59] : memref<1x9x9x8xbf16, #tpu.memory_space<vmem>>, vector<1x8x8x8xbf16>
    %58 = vector.shape_cast %57 : vector<1x8x8x8xbf16> to vector<8x8x8xbf16>
    %59 = vector.shape_cast %58 : vector<8x8x8xbf16> to vector<64x8xbf16>
    %c8 = arith.constant 8 : index
    %c0_60 = arith.constant 0 : index
    %c0_61 = arith.constant 0 : index
    %60 = vector.load %arg5[%c8, %c0_60, %c0_61] : memref<9x8x128xbf16, #tpu.memory_space<vmem>>, vector<1x8x128xbf16>
    %61 = vector.shape_cast %60 : vector<1x8x128xbf16> to vector<8x128xbf16>
    %cst_62 = arith.constant dense<0.000000e+00> : vector<64x128xf32>
    %62 = tpu.matmul %59, %61, %cst_62 {dimension_numbers = #tpu.dot_dimension_numbers<[1], [0], [0], [1], [0, 0, 1, 1], [], []>} : vector<64x8xbf16>, vector<8x128xbf16>, vector<64x128xf32> -> vector<64x128xf32>
    %63 = arith.addf %56, %62 : vector<64x128xf32>
    %64 = vector.shape_cast %63 : vector<64x128xf32> to vector<1x8x8x128xf32>
    %c0_63 = arith.constant 0 : index
    %c0_64 = arith.constant 0 : index
    %c0_65 = arith.constant 0 : index
    %c0_66 = arith.constant 0 : index
    %65 = vector.load %arg6[%c0_63, %c0_64, %c0_65, %c0_66] : memref<1x8x8x128xf32, #tpu.memory_space<vmem>>, vector<1x8x8x128xf32>
    tpu.vector_store %arg6[%c0_63, %c0_64, %c0_65, %c0_66], %64 {strides = array<i32>} : memref<1x8x8x128xf32, #tpu.memory_space<vmem>>, vector<1x8x8x128xf32>,
    %cst_67 = arith.constant dense<0.000000e+00> : vector<128xf32>
    %66 = vector.multi_reduction <add>, %63, %cst_67 [0] : vector<64x128xf32> to vector<128xf32>
    %67 = vector.shape_cast %66 : vector<128xf32> to vector<1x128xf32>
    %68 = arith.mulf %63, %63 : vector<64x128xf32>
    %cst_68 = arith.constant dense<0.000000e+00> : vector<128xf32>
    %69 = vector.multi_reduction <add>, %68, %cst_68 [0] : vector<64x128xf32> to vector<128xf32>
    %70 = vector.shape_cast %69 : vector<128xf32> to vector<1x128xf32>
    %71 = tpu.concatenate %67, %70 in 0 : vector<1x128xf32>, vector<1x128xf32> -> vector<2x128xf32>
    %72 = vector.shape_cast %71 : vector<2x128xf32> to vector<1x2x128xf32>
    %c0_69 = arith.constant 0 : index
    %c0_70 = arith.constant 0 : index
    %c0_71 = arith.constant 0 : index
    %73 = vector.load %arg7[%c0_69, %c0_70, %c0_71] : memref<1x2x128xf32, #tpu.memory_space<vmem>>, vector<1x2x128xf32>
    tpu.vector_store %arg7[%c0_69, %c0_70, %c0_71], %72 {strides = array<i32>} : memref<1x2x128xf32, #tpu.memory_space<vmem>>, vector<1x2x128xf32>,
    return
  }
  func.func @transform_0(%arg0: i32) -> (i32, i32, i32, i32) {
    %c0_i32 = arith.constant 0 : i32
    %c0_i32_0 = arith.constant 0 : i32
    %c0_i32_1 = arith.constant 0 : i32
    %c0_i32_2 = arith.constant 0 : i32
    return %arg0, %c0_i32, %c0_i32_0, %c0_i32_1 : i32, i32, i32, i32
  }
  func.func @transform_1(%arg0: i32) -> (i32, i32, i32, i32) {
    %c0_i32 = arith.constant 0 : i32
    %c0_i32_0 = arith.constant 0 : i32
    %c0_i32_1 = arith.constant 0 : i32
    %c0_i32_2 = arith.constant 0 : i32
    return %arg0, %c0_i32, %c0_i32_0, %c0_i32_1 : i32, i32, i32, i32
  }
  func.func @transform_2(%arg0: i32) -> (i32, i32, i32, i32) {
    %c0_i32 = arith.constant 0 : i32
    %c0_i32_0 = arith.constant 0 : i32
    %c0_i32_1 = arith.constant 0 : i32
    %c0_i32_2 = arith.constant 0 : i32
    return %arg0, %c0_i32, %c0_i32_0, %c0_i32_1 : i32, i32, i32, i32
  }
  func.func @transform_3(%arg0: i32) -> (i32, i32, i32, i32) {
    %c0_i32 = arith.constant 0 : i32
    %c0_i32_0 = arith.constant 0 : i32
    %c0_i32_1 = arith.constant 0 : i32
    %c0_i32_2 = arith.constant 0 : i32
    return %arg0, %c0_i32, %c0_i32_0, %c0_i32_1 : i32, i32, i32, i32
  }
  func.func @transform_4(%arg0: i32) -> (i32, i32, i32) {
    %c0_i32 = arith.constant 0 : i32
    %c0_i32_0 = arith.constant 0 : i32
    %c0_i32_1 = arith.constant 0 : i32
    %c0_i32_2 = arith.constant 0 : i32
    return %c0_i32, %c0_i32_0, %c0_i32_1 : i32, i32, i32
  }
  func.func @transform_5(%arg0: i32) -> (i32, i32, i32, i32) {
    %c0_i32 = arith.constant 0 : i32
    %c0_i32_0 = arith.constant 0 : i32
    %c0_i32_1 = arith.constant 0 : i32
    %c0_i32_2 = arith.constant 0 : i32
    return %arg0, %c0_i32, %c0_i32_0, %c0_i32_1 : i32, i32, i32, i32
  }
  func.func @transform_6(%arg0: i32) -> (i32, i32, i32) {
    %c0_i32 = arith.constant 0 : i32
    %c0_i32_0 = arith.constant 0 : i32
    %c0_i32_1 = arith.constant 0 : i32
    return %arg0, %c0_i32, %c0_i32_0 : i32, i32, i32
  }
}

module attributes {stable_mosaic.version = 11 : i64} {
  func.func @kernel(%arg0: i32, %arg1: memref<1x8x8x128xf32, #tpu.memory_space<vmem>>, %arg2: memref<1x128xf32, #tpu.memory_space<vmem>>, %arg3: memref<1x128xf32, #tpu.memory_space<vmem>>, %arg4: memref<1x10x10x128xbf16, #tpu.memory_space<vmem>>) attributes {dimension_semantics = [#tpu.dimension_semantics<parallel>], iteration_bounds = array<i64: 2>, scalar_prefetch = 0 : i64, scratch_operands = 0 : i64, tpu.core_type = #tpu.core_type<tc>, window_params = [{transform_indices = @transform_0, window_bounds = array<i64: 1, 8, 8, 128>}, {pipeline_mode = #tpu.pipeline_mode<synchronous>, transform_indices = @transform_1, window_bounds = array<i64: 1, 128>}, {pipeline_mode = #tpu.pipeline_mode<synchronous>, transform_indices = @transform_2, window_bounds = array<i64: 1, 128>}, {transform_indices = @transform_3, window_bounds = array<i64: 1, 10, 10, 128>}]} {
    %c0 = arith.constant 0 : index
    %c0_0 = arith.constant 0 : index
    %0 = vector.load %arg2[%c0, %c0_0] : memref<1x128xf32, #tpu.memory_space<vmem>>, vector<1x128xf32>
    %1 = vector.shape_cast %0 : vector<1x128xf32> to vector<1x1x128xf32>
    %c0_1 = arith.constant 0 : index
    %c0_2 = arith.constant 0 : index
    %2 = vector.load %arg3[%c0_1, %c0_2] : memref<1x128xf32, #tpu.memory_space<vmem>>, vector<1x128xf32>
    %3 = vector.shape_cast %2 : vector<1x128xf32> to vector<1x1x128xf32>
    %c0_3 = arith.constant 0 : index
    %c0_4 = arith.constant 0 : index
    %c0_5 = arith.constant 0 : index
    %c0_6 = arith.constant 0 : index
    %4 = vector.load %arg1[%c0_3, %c0_4, %c0_5, %c0_6] : memref<1x8x8x128xf32, #tpu.memory_space<vmem>>, vector<1x8x8x128xf32>
    %5 = vector.shape_cast %4 : vector<1x8x8x128xf32> to vector<8x8x128xf32>
    %6 = vector.broadcast %1 : vector<1x1x128xf32> to vector<8x8x128xf32>
    %7 = arith.mulf %5, %6 : vector<8x8x128xf32>
    %8 = vector.broadcast %3 : vector<1x1x128xf32> to vector<8x8x128xf32>
    %9 = arith.addf %7, %8 : vector<8x8x128xf32>
    %cst = arith.constant 0.000000e+00 : f32
    %10 = vector.broadcast %cst : f32 to vector<8x8x128xf32>
    %11 = arith.maximumf %9, %10 : vector<8x8x128xf32>
    %cst_7 = arith.constant 0.000000e+00 : bf16
    %12 = vector.broadcast %cst_7 : bf16 to vector<1x10x10x128xbf16>
    %c0_8 = arith.constant 0 : index
    %c0_9 = arith.constant 0 : index
    %c0_10 = arith.constant 0 : index
    %c0_11 = arith.constant 0 : index
    %13 = vector.load %arg4[%c0_8, %c0_9, %c0_10, %c0_11] : memref<1x10x10x128xbf16, #tpu.memory_space<vmem>>, vector<1x10x10x128xbf16>
    tpu.vector_store %arg4[%c0_8, %c0_9, %c0_10, %c0_11], %12 {strides = array<i32>} : memref<1x10x10x128xbf16, #tpu.memory_space<vmem>>, vector<1x10x10x128xbf16>,
    %14 = arith.truncf %11 : vector<8x8x128xf32> to vector<8x8x128xbf16>
    %c0_12 = arith.constant 0 : index
    %c1 = arith.constant 1 : index
    %c1_13 = arith.constant 1 : index
    %c0_14 = arith.constant 0 : index
    %15 = vector.load %arg4[%c0_12, %c1, %c1_13, %c0_14] : memref<1x10x10x128xbf16, #tpu.memory_space<vmem>>, vector<1x8x8x128xbf16>
    %16 = vector.shape_cast %15 : vector<1x8x8x128xbf16> to vector<8x8x128xbf16>
    %17 = vector.shape_cast %14 : vector<8x8x128xbf16> to vector<1x8x8x128xbf16>
    tpu.vector_store %arg4[%c0_12, %c1, %c1_13, %c0_14], %17 {strides = array<i32>} : memref<1x10x10x128xbf16, #tpu.memory_space<vmem>>, vector<1x8x8x128xbf16>,
    return
  }
  func.func @transform_0(%arg0: i32) -> (i32, i32, i32, i32) {
    %c0_i32 = arith.constant 0 : i32
    %c0_i32_0 = arith.constant 0 : i32
    %c0_i32_1 = arith.constant 0 : i32
    %c0_i32_2 = arith.constant 0 : i32
    return %arg0, %c0_i32, %c0_i32_0, %c0_i32_1 : i32, i32, i32, i32
  }
  func.func @transform_1(%arg0: i32) -> (i32, i32) {
    %c0_i32 = arith.constant 0 : i32
    %c0_i32_0 = arith.constant 0 : i32
    %c0_i32_1 = arith.constant 0 : i32
    return %c0_i32, %c0_i32_0 : i32, i32
  }
  func.func @transform_2(%arg0: i32) -> (i32, i32) {
    %c0_i32 = arith.constant 0 : i32
    %c0_i32_0 = arith.constant 0 : i32
    %c0_i32_1 = arith.constant 0 : i32
    return %c0_i32, %c0_i32_0 : i32, i32
  }
  func.func @transform_3(%arg0: i32) -> (i32, i32, i32, i32) {
    %c0_i32 = arith.constant 0 : i32
    %c0_i32_0 = arith.constant 0 : i32
    %c0_i32_1 = arith.constant 0 : i32
    %c0_i32_2 = arith.constant 0 : i32
    return %arg0, %c0_i32, %c0_i32_0, %c0_i32_1 : i32, i32, i32, i32
  }
}

module attributes {stable_mosaic.version = 11 : i64} {
  func.func @kernel(%arg0: i32, %arg1: memref<1x10x10x128xbf16, #tpu.memory_space<vmem>>, %arg2: memref<9x128x128xbf16, #tpu.memory_space<vmem>>, %arg3: memref<1x8x8x128xf32, #tpu.memory_space<vmem>>, %arg4: memref<1x2x128xf32, #tpu.memory_space<vmem>>) attributes {dimension_semantics = [#tpu.dimension_semantics<parallel>], iteration_bounds = array<i64: 2>, scalar_prefetch = 0 : i64, scratch_operands = 0 : i64, tpu.core_type = #tpu.core_type<tc>, window_params = [{transform_indices = @transform_0, window_bounds = array<i64: 1, 10, 10, 128>}, {pipeline_mode = #tpu.pipeline_mode<synchronous>, transform_indices = @transform_1, window_bounds = array<i64: 9, 128, 128>}, {transform_indices = @transform_2, window_bounds = array<i64: 1, 8, 8, 128>}, {transform_indices = @transform_3, window_bounds = array<i64: 1, 2, 128>}]} {
    %cst = arith.constant 0.000000e+00 : f32
    %0 = vector.broadcast %cst : f32 to vector<64x128xf32>
    %c0 = arith.constant 0 : index
    %c0_0 = arith.constant 0 : index
    %c0_1 = arith.constant 0 : index
    %c0_2 = arith.constant 0 : index
    %1 = vector.load %arg1[%c0, %c0_0, %c0_1, %c0_2] : memref<1x10x10x128xbf16, #tpu.memory_space<vmem>>, vector<1x8x8x128xbf16>
    %2 = vector.shape_cast %1 : vector<1x8x8x128xbf16> to vector<8x8x128xbf16>
    %3 = vector.shape_cast %2 : vector<8x8x128xbf16> to vector<64x128xbf16>
    %c0_3 = arith.constant 0 : index
    %c0_4 = arith.constant 0 : index
    %c0_5 = arith.constant 0 : index
    %4 = vector.load %arg2[%c0_3, %c0_4, %c0_5] : memref<9x128x128xbf16, #tpu.memory_space<vmem>>, vector<1x128x128xbf16>
    %5 = vector.shape_cast %4 : vector<1x128x128xbf16> to vector<128x128xbf16>
    %cst_6 = arith.constant dense<0.000000e+00> : vector<64x128xf32>
    %6 = tpu.matmul %3, %5, %cst_6 {dimension_numbers = #tpu.dot_dimension_numbers<[1], [0], [0], [1], [0, 0, 1, 1], [], []>} : vector<64x128xbf16>, vector<128x128xbf16>, vector<64x128xf32> -> vector<64x128xf32>
    %7 = arith.addf %0, %6 : vector<64x128xf32>
    %c0_7 = arith.constant 0 : index
    %c0_8 = arith.constant 0 : index
    %c1 = arith.constant 1 : index
    %c0_9 = arith.constant 0 : index
    %8 = vector.load %arg1[%c0_7, %c0_8, %c1, %c0_9] : memref<1x10x10x128xbf16, #tpu.memory_space<vmem>>, vector<1x8x8x128xbf16>
    %9 = vector.shape_cast %8 : vector<1x8x8x128xbf16> to vector<8x8x128xbf16>
    %10 = vector.shape_cast %9 : vector<8x8x128xbf16> to vector<64x128xbf16>
    %c1_10 = arith.constant 1 : index
    %c0_11 = arith.constant 0 : index
    %c0_12 = arith.constant 0 : index
    %11 = vector.load %arg2[%c1_10, %c0_11, %c0_12] : memref<9x128x128xbf16, #tpu.memory_space<vmem>>, vector<1x128x128xbf16>
    %12 = vector.shape_cast %11 : vector<1x128x128xbf16> to vector<128x128xbf16>
    %cst_13 = arith.constant dense<0.000000e+00> : vector<64x128xf32>
    %13 = tpu.matmul %10, %12, %cst_13 {dimension_numbers = #tpu.dot_dimension_numbers<[1], [0], [0], [1], [0, 0, 1, 1], [], []>} : vector<64x128xbf16>, vector<128x128xbf16>, vector<64x128xf32> -> vector<64x128xf32>
    %14 = arith.addf %7, %13 : vector<64x128xf32>
    %c0_14 = arith.constant 0 : index
    %c0_15 = arith.constant 0 : index
    %c2 = arith.constant 2 : index
    %c0_16 = arith.constant 0 : index
    %15 = vector.load %arg1[%c0_14, %c0_15, %c2, %c0_16] : memref<1x10x10x128xbf16, #tpu.memory_space<vmem>>, vector<1x8x8x128xbf16>
    %16 = vector.shape_cast %15 : vector<1x8x8x128xbf16> to vector<8x8x128xbf16>
    %17 = vector.shape_cast %16 : vector<8x8x128xbf16> to vector<64x128xbf16>
    %c2_17 = arith.constant 2 : index
    %c0_18 = arith.constant 0 : index
    %c0_19 = arith.constant 0 : index
    %18 = vector.load %arg2[%c2_17, %c0_18, %c0_19] : memref<9x128x128xbf16, #tpu.memory_space<vmem>>, vector<1x128x128xbf16>
    %19 = vector.shape_cast %18 : vector<1x128x128xbf16> to vector<128x128xbf16>
    %cst_20 = arith.constant dense<0.000000e+00> : vector<64x128xf32>
    %20 = tpu.matmul %17, %19, %cst_20 {dimension_numbers = #tpu.dot_dimension_numbers<[1], [0], [0], [1], [0, 0, 1, 1], [], []>} : vector<64x128xbf16>, vector<128x128xbf16>, vector<64x128xf32> -> vector<64x128xf32>
    %21 = arith.addf %14, %20 : vector<64x128xf32>
    %c0_21 = arith.constant 0 : index
    %c1_22 = arith.constant 1 : index
    %c0_23 = arith.constant 0 : index
    %c0_24 = arith.constant 0 : index
    %22 = vector.load %arg1[%c0_21, %c1_22, %c0_23, %c0_24] : memref<1x10x10x128xbf16, #tpu.memory_space<vmem>>, vector<1x8x8x128xbf16>
    %23 = vector.shape_cast %22 : vector<1x8x8x128xbf16> to vector<8x8x128xbf16>
    %24 = vector.shape_cast %23 : vector<8x8x128xbf16> to vector<64x128xbf16>
    %c3 = arith.constant 3 : index
    %c0_25 = arith.constant 0 : index
    %c0_26 = arith.constant 0 : index
    %25 = vector.load %arg2[%c3, %c0_25, %c0_26] : memref<9x128x128xbf16, #tpu.memory_space<vmem>>, vector<1x128x128xbf16>
    %26 = vector.shape_cast %25 : vector<1x128x128xbf16> to vector<128x128xbf16>
    %cst_27 = arith.constant dense<0.000000e+00> : vector<64x128xf32>
    %27 = tpu.matmul %24, %26, %cst_27 {dimension_numbers = #tpu.dot_dimension_numbers<[1], [0], [0], [1], [0, 0, 1, 1], [], []>} : vector<64x128xbf16>, vector<128x128xbf16>, vector<64x128xf32> -> vector<64x128xf32>
    %28 = arith.addf %21, %27 : vector<64x128xf32>
    %c0_28 = arith.constant 0 : index
    %c1_29 = arith.constant 1 : index
    %c1_30 = arith.constant 1 : index
    %c0_31 = arith.constant 0 : index
    %29 = vector.load %arg1[%c0_28, %c1_29, %c1_30, %c0_31] : memref<1x10x10x128xbf16, #tpu.memory_space<vmem>>, vector<1x8x8x128xbf16>
    %30 = vector.shape_cast %29 : vector<1x8x8x128xbf16> to vector<8x8x128xbf16>
    %31 = vector.shape_cast %30 : vector<8x8x128xbf16> to vector<64x128xbf16>
    %c4 = arith.constant 4 : index
    %c0_32 = arith.constant 0 : index
    %c0_33 = arith.constant 0 : index
    %32 = vector.load %arg2[%c4, %c0_32, %c0_33] : memref<9x128x128xbf16, #tpu.memory_space<vmem>>, vector<1x128x128xbf16>
    %33 = vector.shape_cast %32 : vector<1x128x128xbf16> to vector<128x128xbf16>
    %cst_34 = arith.constant dense<0.000000e+00> : vector<64x128xf32>
    %34 = tpu.matmul %31, %33, %cst_34 {dimension_numbers = #tpu.dot_dimension_numbers<[1], [0], [0], [1], [0, 0, 1, 1], [], []>} : vector<64x128xbf16>, vector<128x128xbf16>, vector<64x128xf32> -> vector<64x128xf32>
    %35 = arith.addf %28, %34 : vector<64x128xf32>
    %c0_35 = arith.constant 0 : index
    %c1_36 = arith.constant 1 : index
    %c2_37 = arith.constant 2 : index
    %c0_38 = arith.constant 0 : index
    %36 = vector.load %arg1[%c0_35, %c1_36, %c2_37, %c0_38] : memref<1x10x10x128xbf16, #tpu.memory_space<vmem>>, vector<1x8x8x128xbf16>
    %37 = vector.shape_cast %36 : vector<1x8x8x128xbf16> to vector<8x8x128xbf16>
    %38 = vector.shape_cast %37 : vector<8x8x128xbf16> to vector<64x128xbf16>
    %c5 = arith.constant 5 : index
    %c0_39 = arith.constant 0 : index
    %c0_40 = arith.constant 0 : index
    %39 = vector.load %arg2[%c5, %c0_39, %c0_40] : memref<9x128x128xbf16, #tpu.memory_space<vmem>>, vector<1x128x128xbf16>
    %40 = vector.shape_cast %39 : vector<1x128x128xbf16> to vector<128x128xbf16>
    %cst_41 = arith.constant dense<0.000000e+00> : vector<64x128xf32>
    %41 = tpu.matmul %38, %40, %cst_41 {dimension_numbers = #tpu.dot_dimension_numbers<[1], [0], [0], [1], [0, 0, 1, 1], [], []>} : vector<64x128xbf16>, vector<128x128xbf16>, vector<64x128xf32> -> vector<64x128xf32>
    %42 = arith.addf %35, %41 : vector<64x128xf32>
    %c0_42 = arith.constant 0 : index
    %c2_43 = arith.constant 2 : index
    %c0_44 = arith.constant 0 : index
    %c0_45 = arith.constant 0 : index
    %43 = vector.load %arg1[%c0_42, %c2_43, %c0_44, %c0_45] : memref<1x10x10x128xbf16, #tpu.memory_space<vmem>>, vector<1x8x8x128xbf16>
    %44 = vector.shape_cast %43 : vector<1x8x8x128xbf16> to vector<8x8x128xbf16>
    %45 = vector.shape_cast %44 : vector<8x8x128xbf16> to vector<64x128xbf16>
    %c6 = arith.constant 6 : index
    %c0_46 = arith.constant 0 : index
    %c0_47 = arith.constant 0 : index
    %46 = vector.load %arg2[%c6, %c0_46, %c0_47] : memref<9x128x128xbf16, #tpu.memory_space<vmem>>, vector<1x128x128xbf16>
    %47 = vector.shape_cast %46 : vector<1x128x128xbf16> to vector<128x128xbf16>
    %cst_48 = arith.constant dense<0.000000e+00> : vector<64x128xf32>
    %48 = tpu.matmul %45, %47, %cst_48 {dimension_numbers = #tpu.dot_dimension_numbers<[1], [0], [0], [1], [0, 0, 1, 1], [], []>} : vector<64x128xbf16>, vector<128x128xbf16>, vector<64x128xf32> -> vector<64x128xf32>
    %49 = arith.addf %42, %48 : vector<64x128xf32>
    %c0_49 = arith.constant 0 : index
    %c2_50 = arith.constant 2 : index
    %c1_51 = arith.constant 1 : index
    %c0_52 = arith.constant 0 : index
    %50 = vector.load %arg1[%c0_49, %c2_50, %c1_51, %c0_52] : memref<1x10x10x128xbf16, #tpu.memory_space<vmem>>, vector<1x8x8x128xbf16>
    %51 = vector.shape_cast %50 : vector<1x8x8x128xbf16> to vector<8x8x128xbf16>
    %52 = vector.shape_cast %51 : vector<8x8x128xbf16> to vector<64x128xbf16>
    %c7 = arith.constant 7 : index
    %c0_53 = arith.constant 0 : index
    %c0_54 = arith.constant 0 : index
    %53 = vector.load %arg2[%c7, %c0_53, %c0_54] : memref<9x128x128xbf16, #tpu.memory_space<vmem>>, vector<1x128x128xbf16>
    %54 = vector.shape_cast %53 : vector<1x128x128xbf16> to vector<128x128xbf16>
    %cst_55 = arith.constant dense<0.000000e+00> : vector<64x128xf32>
    %55 = tpu.matmul %52, %54, %cst_55 {dimension_numbers = #tpu.dot_dimension_numbers<[1], [0], [0], [1], [0, 0, 1, 1], [], []>} : vector<64x128xbf16>, vector<128x128xbf16>, vector<64x128xf32> -> vector<64x128xf32>
    %56 = arith.addf %49, %55 : vector<64x128xf32>
    %c0_56 = arith.constant 0 : index
    %c2_57 = arith.constant 2 : index
    %c2_58 = arith.constant 2 : index
    %c0_59 = arith.constant 0 : index
    %57 = vector.load %arg1[%c0_56, %c2_57, %c2_58, %c0_59] : memref<1x10x10x128xbf16, #tpu.memory_space<vmem>>, vector<1x8x8x128xbf16>
    %58 = vector.shape_cast %57 : vector<1x8x8x128xbf16> to vector<8x8x128xbf16>
    %59 = vector.shape_cast %58 : vector<8x8x128xbf16> to vector<64x128xbf16>
    %c8 = arith.constant 8 : index
    %c0_60 = arith.constant 0 : index
    %c0_61 = arith.constant 0 : index
    %60 = vector.load %arg2[%c8, %c0_60, %c0_61] : memref<9x128x128xbf16, #tpu.memory_space<vmem>>, vector<1x128x128xbf16>
    %61 = vector.shape_cast %60 : vector<1x128x128xbf16> to vector<128x128xbf16>
    %cst_62 = arith.constant dense<0.000000e+00> : vector<64x128xf32>
    %62 = tpu.matmul %59, %61, %cst_62 {dimension_numbers = #tpu.dot_dimension_numbers<[1], [0], [0], [1], [0, 0, 1, 1], [], []>} : vector<64x128xbf16>, vector<128x128xbf16>, vector<64x128xf32> -> vector<64x128xf32>
    %63 = arith.addf %56, %62 : vector<64x128xf32>
    %64 = vector.shape_cast %63 : vector<64x128xf32> to vector<1x8x8x128xf32>
    %c0_63 = arith.constant 0 : index
    %c0_64 = arith.constant 0 : index
    %c0_65 = arith.constant 0 : index
    %c0_66 = arith.constant 0 : index
    %65 = vector.load %arg3[%c0_63, %c0_64, %c0_65, %c0_66] : memref<1x8x8x128xf32, #tpu.memory_space<vmem>>, vector<1x8x8x128xf32>
    tpu.vector_store %arg3[%c0_63, %c0_64, %c0_65, %c0_66], %64 {strides = array<i32>} : memref<1x8x8x128xf32, #tpu.memory_space<vmem>>, vector<1x8x8x128xf32>,
    %cst_67 = arith.constant dense<0.000000e+00> : vector<128xf32>
    %66 = vector.multi_reduction <add>, %63, %cst_67 [0] : vector<64x128xf32> to vector<128xf32>
    %67 = vector.shape_cast %66 : vector<128xf32> to vector<1x128xf32>
    %68 = arith.mulf %63, %63 : vector<64x128xf32>
    %cst_68 = arith.constant dense<0.000000e+00> : vector<128xf32>
    %69 = vector.multi_reduction <add>, %68, %cst_68 [0] : vector<64x128xf32> to vector<128xf32>
    %70 = vector.shape_cast %69 : vector<128xf32> to vector<1x128xf32>
    %71 = tpu.concatenate %67, %70 in 0 : vector<1x128xf32>, vector<1x128xf32> -> vector<2x128xf32>
    %72 = vector.shape_cast %71 : vector<2x128xf32> to vector<1x2x128xf32>
    %c0_69 = arith.constant 0 : index
    %c0_70 = arith.constant 0 : index
    %c0_71 = arith.constant 0 : index
    %73 = vector.load %arg4[%c0_69, %c0_70, %c0_71] : memref<1x2x128xf32, #tpu.memory_space<vmem>>, vector<1x2x128xf32>
    tpu.vector_store %arg4[%c0_69, %c0_70, %c0_71], %72 {strides = array<i32>} : memref<1x2x128xf32, #tpu.memory_space<vmem>>, vector<1x2x128xf32>,
    return
  }
  func.func @transform_0(%arg0: i32) -> (i32, i32, i32, i32) {
    %c0_i32 = arith.constant 0 : i32
    %c0_i32_0 = arith.constant 0 : i32
    %c0_i32_1 = arith.constant 0 : i32
    %c0_i32_2 = arith.constant 0 : i32
    return %arg0, %c0_i32, %c0_i32_0, %c0_i32_1 : i32, i32, i32, i32
  }
  func.func @transform_1(%arg0: i32) -> (i32, i32, i32) {
    %c0_i32 = arith.constant 0 : i32
    %c0_i32_0 = arith.constant 0 : i32
    %c0_i32_1 = arith.constant 0 : i32
    %c0_i32_2 = arith.constant 0 : i32
    return %c0_i32, %c0_i32_0, %c0_i32_1 : i32, i32, i32
  }
  func.func @transform_2(%arg0: i32) -> (i32, i32, i32, i32) {
    %c0_i32 = arith.constant 0 : i32
    %c0_i32_0 = arith.constant 0 : i32
    %c0_i32_1 = arith.constant 0 : i32
    %c0_i32_2 = arith.constant 0 : i32
    return %arg0, %c0_i32, %c0_i32_0, %c0_i32_1 : i32, i32, i32, i32
  }
  func.func @transform_3(%arg0: i32) -> (i32, i32, i32) {
    %c0_i32 = arith.constant 0 : i32
    %c0_i32_0 = arith.constant 0 : i32
    %c0_i32_1 = arith.constant 0 : i32
    return %arg0, %c0_i32, %c0_i32_0 : i32, i32, i32
  }
}

module attributes {stable_mosaic.version = 11 : i64} {
  func.func @kernel(%arg0: i32, %arg1: memref<128x128xf32, #tpu.memory_space<vmem>>, %arg2: memref<1x128xf32, #tpu.memory_space<vmem>>, %arg3: memref<1x128xf32, #tpu.memory_space<vmem>>, %arg4: memref<128x8xbf16, #tpu.memory_space<vmem>>, %arg5: memref<8x128xbf16, #tpu.memory_space<vmem>>, %arg6: memref<1x128xf32, #tpu.memory_space<vmem>>, %arg7: memref<128x128xf32, #tpu.memory_space<vmem>>) attributes {dimension_semantics = [#tpu.dimension_semantics<parallel>], iteration_bounds = array<i64: 1>, scalar_prefetch = 0 : i64, scratch_operands = 0 : i64, tpu.core_type = #tpu.core_type<tc>, window_params = [{transform_indices = @transform_0, window_bounds = array<i64: 128, 128>}, {pipeline_mode = #tpu.pipeline_mode<synchronous>, transform_indices = @transform_1, window_bounds = array<i64: 1, 128>}, {pipeline_mode = #tpu.pipeline_mode<synchronous>, transform_indices = @transform_2, window_bounds = array<i64: 1, 128>}, {transform_indices = @transform_3, window_bounds = array<i64: 128, 8>}, {pipeline_mode = #tpu.pipeline_mode<synchronous>, transform_indices = @transform_4, window_bounds = array<i64: 8, 128>}, {pipeline_mode = #tpu.pipeline_mode<synchronous>, transform_indices = @transform_5, window_bounds = array<i64: 1, 128>}, {transform_indices = @transform_6, window_bounds = array<i64: 128, 128>}]} {
    %c0 = arith.constant 0 : index
    %c0_0 = arith.constant 0 : index
    %0 = vector.load %arg1[%c0, %c0_0] : memref<128x128xf32, #tpu.memory_space<vmem>>, vector<128x128xf32>
    %c0_1 = arith.constant 0 : index
    %c0_2 = arith.constant 0 : index
    %1 = vector.load %arg2[%c0_1, %c0_2] : memref<1x128xf32, #tpu.memory_space<vmem>>, vector<1x128xf32>
    %2 = vector.broadcast %1 : vector<1x128xf32> to vector<128x128xf32>
    %3 = arith.mulf %0, %2 : vector<128x128xf32>
    %c0_3 = arith.constant 0 : index
    %c0_4 = arith.constant 0 : index
    %4 = vector.load %arg3[%c0_3, %c0_4] : memref<1x128xf32, #tpu.memory_space<vmem>>, vector<1x128xf32>
    %5 = vector.broadcast %4 : vector<1x128xf32> to vector<128x128xf32>
    %6 = arith.addf %3, %5 : vector<128x128xf32>
    %c0_5 = arith.constant 0 : index
    %c0_6 = arith.constant 0 : index
    %7 = vector.load %arg4[%c0_5, %c0_6] : memref<128x8xbf16, #tpu.memory_space<vmem>>, vector<128x8xbf16>
    %c0_7 = arith.constant 0 : index
    %c0_8 = arith.constant 0 : index
    %8 = vector.load %arg5[%c0_7, %c0_8] : memref<8x128xbf16, #tpu.memory_space<vmem>>, vector<8x128xbf16>
    %cst = arith.constant dense<0.000000e+00> : vector<128x128xf32>
    %9 = tpu.matmul %7, %8, %cst {dimension_numbers = #tpu.dot_dimension_numbers<[1], [0], [0], [1], [0, 0, 1, 1], [], []>} : vector<128x8xbf16>, vector<8x128xbf16>, vector<128x128xf32> -> vector<128x128xf32>
    %c0_9 = arith.constant 0 : index
    %c0_10 = arith.constant 0 : index
    %10 = vector.load %arg6[%c0_9, %c0_10] : memref<1x128xf32, #tpu.memory_space<vmem>>, vector<1x128xf32>
    %11 = vector.broadcast %10 : vector<1x128xf32> to vector<128x128xf32>
    %12 = arith.addf %9, %11 : vector<128x128xf32>
    %13 = arith.addf %6, %12 : vector<128x128xf32>
    %cst_11 = arith.constant 0.000000e+00 : f32
    %14 = vector.broadcast %cst_11 : f32 to vector<128x128xf32>
    %15 = arith.maximumf %13, %14 : vector<128x128xf32>
    %c0_12 = arith.constant 0 : index
    %c0_13 = arith.constant 0 : index
    %16 = vector.load %arg7[%c0_12, %c0_13] : memref<128x128xf32, #tpu.memory_space<vmem>>, vector<128x128xf32>
    tpu.vector_store %arg7[%c0_12, %c0_13], %15 {strides = array<i32>} : memref<128x128xf32, #tpu.memory_space<vmem>>, vector<128x128xf32>,
    return
  }
  func.func @transform_0(%arg0: i32) -> (i32, i32) {
    %c0_i32 = arith.constant 0 : i32
    %c0_i32_0 = arith.constant 0 : i32
    return %arg0, %c0_i32 : i32, i32
  }
  func.func @transform_1(%arg0: i32) -> (i32, i32) {
    %c0_i32 = arith.constant 0 : i32
    %c0_i32_0 = arith.constant 0 : i32
    %c0_i32_1 = arith.constant 0 : i32
    return %c0_i32, %c0_i32_0 : i32, i32
  }
  func.func @transform_2(%arg0: i32) -> (i32, i32) {
    %c0_i32 = arith.constant 0 : i32
    %c0_i32_0 = arith.constant 0 : i32
    %c0_i32_1 = arith.constant 0 : i32
    return %c0_i32, %c0_i32_0 : i32, i32
  }
  func.func @transform_3(%arg0: i32) -> (i32, i32) {
    %c0_i32 = arith.constant 0 : i32
    %c0_i32_0 = arith.constant 0 : i32
    return %arg0, %c0_i32 : i32, i32
  }
  func.func @transform_4(%arg0: i32) -> (i32, i32) {
    %c0_i32 = arith.constant 0 : i32
    %c0_i32_0 = arith.constant 0 : i32
    %c0_i32_1 = arith.constant 0 : i32
    return %c0_i32, %c0_i32_0 : i32, i32
  }
  func.func @transform_5(%arg0: i32) -> (i32, i32) {
    %c0_i32 = arith.constant 0 : i32
    %c0_i32_0 = arith.constant 0 : i32
    %c0_i32_1 = arith.constant 0 : i32
    return %c0_i32, %c0_i32_0 : i32, i32
  }
  func.func @transform_6(%arg0: i32) -> (i32, i32) {
    %c0_i32 = arith.constant 0 : i32
    %c0_i32_0 = arith.constant 0 : i32
    return %arg0, %c0_i32 : i32, i32
  }
}

</mosaic_0001>

<bundles_post_ra>
// kernel: resblock_forward.7
= control target key start
LH: loop header
LB: loop body
LE: loop exit
PB: predicated region body
PF: predicated region fallthrough
CT: control target
= control target key end

     0   :  { %vm175_vm0 = vcmask 1043456   ;;  %vm150_vm1 = vcmask 64512   ;;  %s615_s4 = inlined_call_operand.vmem [shape: bf16[8,128], index: 4, kind: input, shape index: {}]   ;;  %s616_s3 = inlined_call_operand.vmem [shape: bf16[128,8], index: 3, kind: input, shape index: {}]   ;;  %s617_s0 = inlined_call_operand.vmem [shape: f32[128,128], index: 0, kind: input, shape index: {}]   ;;  %s618_s1 = inlined_call_operand.vmem [shape: f32[1,128], index: 1, kind: input, shape index: {}]   ;;  %s619_s2 = inlined_call_operand.vmem [shape: f32[1,128], index: 2, kind: input, shape index: {}]   ;;  %s620_s5 = inlined_call_operand.vmem [shape: f32[1,128], index: 5, kind: input, shape index: {}]   ;;  %s621_s6 = inlined_call_operand.vmem [shape: f32[128,128], index: 6, kind: output, shape index: {}]  }
   0x1   :  { %v102_v0 = vld [vmem:[%s615_s4] sm:$0xf]  ;;  %v380_v4 = vld [vmem:[%s616_s3 + $0x8] sm:$0xff]   ;;  %v382_v6 = vld [vmem:[%s616_s3 + $0x10] sm:$0xff]  }
   0x2   :  { %376 = vmatprep.subr.msk.bf16.mxu0 %vm175_vm0, %v102_v0  ;;  %377 = vmatprep.subr.msk.bf16.mxu1 %vm175_vm0, %v102_v0  ;;  %v177_v1 = vsel %vm175_vm0, %v102_v0, 0  ;;  %v378_v2 = vld [vmem:[%s616_s3] sm:$0xff]   ;;  %v381_v5 = vld [vmem:[%s616_s3 + $0x28] sm:$0xff]   ;;  %v383_v7 = vld [vmem:[%s616_s3 + $0x30] sm:$0xff]  }
   0x3   :  { %357 = vmatpush3.bf16.msra.mxu0 %v177_v1  ;;  %375 = vmatpush3.bf16.msra.mxu1 %v177_v1  ;;  %v379_v3 = vld [vmem:[%s616_s3 + $0x20] sm:$0xff]   ;;  %v384_v8 = vld [vmem:[%s616_s3 + $0x18] sm:$0xff]   ;;  %v26_v10 = vld [vmem:[%s617_s0 + $0x10] sm:$0xff] }
   0x4   :  { %358 = vmatprep.mubr.msk.bf16.mxu0 %vm150_vm1, %v378_v2  ;;  %366 = vmatprep.mubr.msk.bf16.mxu1 %vm150_vm1, %v379_v3  ;;  %v385_v9 = vld [vmem:[%s616_s3 + $0x38] sm:$0xff]   ;;  %v462_v11 = vld [vmem:[%s618_s1] ss:$0 sm:$0xff]  ;;  %v34_v12 = vld [vmem:[%s617_s0 + $0x50] sm:$0xff] }
   0x5   :  { %v24_v13 = vld [vmem:[%s617_s0] sm:$0xff]  ;;  %v27_v15 = vld [vmem:[%s617_s0 + $0x18] sm:$0xff]  ;;  %v25_v17 = vld [vmem:[%s617_s0 + $0x8] sm:$0xff]  ;;  %v49_v19 = vmul.f32 %v462_v11, %v26_v10  ;;  %v57_v22 = vmul.f32 %v462_v11, %v34_v12 }
   0x6   :  { %359 = vmatmul.mubr.msk.bf16.vlgmr.msra.gmra.mrb[0].mxu0 %vm150_vm1, %v380_v4  ;;  %367 = vmatmul.mubr.msk.bf16.vlgmr.msra.gmra.mrb[0].mxu1 %vm150_vm1, %v381_v5  ;;  %v32_v14 = vld [vmem:[%s617_s0 + $0x40] sm:$0xff]  ;;  %v35_v16 = vld [vmem:[%s617_s0 + $0x58] sm:$0xff]  ;;  %v33_v18 = vld [vmem:[%s617_s0 + $0x48] sm:$0xff]  ;;  %v47_v23 = vmul.f32 %v462_v11, %v24_v13  ;;  %v50_v25 = vmul.f32 %v462_v11, %v27_v15  ;;  %v48_v27 = vmul.f32 %v462_v11, %v25_v17 }
   0x7   :  { %362 = vmatprep.mubr.msk.bf16.mxu0 %vm150_vm1, %v382_v6  ;;  %370 = vmatprep.mubr.msk.bf16.mxu1 %vm150_vm1, %v383_v7  ;;  %v30_v20 = vld [vmem:[%s617_s0 + $0x30] sm:$0xff]  ;;  %v492_v21 = vld [vmem:[%s619_s2] ss:$0 sm:$0xff]  ;;  %v55_v24 = vmul.f32 %v462_v11, %v32_v14  ;;  %v58_v26 = vmul.f32 %v462_v11, %v35_v16  ;;  %v56_v28 = vmul.f32 %v462_v11, %v33_v18  ;;  %v31_v39 = vld [vmem:[%s617_s0 + $0x38] sm:$0xff] }
   0x8   :  { %v53_v29 = vmul.f32 %v462_v11, %v30_v20  ;;  %v38_v30 = vld [vmem:[%s617_s0 + $0x70] sm:$0xff]  ;;  %v72_v31 = vadd.f32 %v492_v21, %v49_v19  ;;  %v509_v32 = vld [vmem:[%s620_s5] ss:$0 sm:$0xff]  ;;  %v80_v35 = vadd.f32 %v492_v21, %v57_v22  ;;  %v70_v36 = vadd.f32 %v492_v21, %v47_v23  ;;  %v39_v40 = vld [vmem:[%s617_s0 + $0x78] sm:$0xff] }
   0x9   :  { %v28_v33 = vld [vmem:[%s617_s0 + $0x20] sm:$0xff]  ;;  %v78_v37 = vadd.f32 %v492_v21, %v55_v24  ;;  %v73_v38 = vadd.f32 %v492_v21, %v50_v25  ;;  %v81_v42 = vadd.f32 %v492_v21, %v58_v26  ;;  %v71_v43 = vadd.f32 %v492_v21, %v48_v27  ;;  %v29_v46 = vld [vmem:[%s617_s0 + $0x28] sm:$0xff] }
   0xa   :  { %v36_v34 = vld [vmem:[%s617_s0 + $0x60] sm:$0xff]  ;;  %v79_v44 = vadd.f32 %v492_v21, %v56_v28  ;;  %v61_v45 = vmul.f32 %v462_v11, %v38_v30  ;;  %v76_v50 = vadd.f32 %v492_v21, %v53_v29  ;;  %v51_v51 = vmul.f32 %v462_v11, %v28_v33  ;;  %v37_v6 = vld [vmem:[%s617_s0 + $0x68] sm:$0xff] }
   0xb   :  { %v59_v52 = vmul.f32 %v462_v11, %v36_v34  ;;  %v54_v57 = vmul.f32 %v462_v11, %v31_v39  ;;  %v62_v58 = vmul.f32 %v462_v11, %v39_v40  ;;  %v52_v0 = vmul.f32 %v462_v11, %v29_v46 }
   0xc   :  { %v60_v19 = vmul.f32 %v462_v11, %v37_v6  ;;  %v84_v24 = vadd.f32 %v492_v21, %v61_v45  ;;  %v74_v25 = vadd.f32 %v492_v21, %v51_v51 }
   0xd   :  { %v82_v29 = vadd.f32 %v492_v21, %v59_v52  ;;  %v77_v30 = vadd.f32 %v492_v21, %v54_v57 }
   0xe   :  { %363 = vmatmul.mubr.msk.bf16.gmra.mrb[4].mxu0 %vm150_vm1, %v384_v8  ;;  %371 = vmatmul.mubr.msk.bf16.gmra.mrb[4].mxu1 %vm150_vm1, %v385_v9 }
  0xd9   :  { %v360_v41 = vpop.f32.mrb[0].mxu0  ;;  %v368_v48 = vpop.f32.mrb[0].mxu1 }
  0xda   :  { %v222_v47 = vadd.f32 %v360_v41, %v509_v32  ;;  %v213_v49 = vpop.f32.mrb[1].mxu0  ;;  %v254_v53 = vadd.f32 %v368_v48, %v509_v32  ;;  %v245_v55 = vpop.f32.mrb[1].mxu1 }
  0xdb   :  { %v214_v54 = vadd.f32 %v509_v32, %v213_v49  ;;  %v361_v56 = vpop.f32.mrb[2].mxu0  ;;  %v246_v60 = vadd.f32 %v509_v32, %v245_v55  ;;  %v369_v62 = vpop.f32.mrb[2].mxu1 }
  0xdc   :  { %v278_v59 = vadd.f32 %v222_v47, %v72_v31  ;;  %v225_v61 = vadd.f32 %v361_v56, %v509_v32  ;;  %v216_v63 = vpop.f32.mrb[3].mxu0  ;;  %v286_v1 = vadd.f32 %v254_v53, %v80_v35  ;;  %v257_v3 = vadd.f32 %v369_v62, %v509_v32  ;;  %v248_v5 = vpop.f32.mrb[3].mxu1 }
  0xdd   :  { %v276_v2 = vadd.f32 %v214_v54, %v70_v36  ;;  %v217_v4 = vadd.f32 %v509_v32, %v216_v63  ;;  %v284_v8 = vadd.f32 %v246_v60, %v78_v37  ;;  %v249_v10 = vadd.f32 %v509_v32, %v248_v5 }
  0xde   :  { %v294_v7 = vmax.f32 %v278_v59, 0.0  ;;  %v279_v9 = vadd.f32 %v225_v61, %v73_v38  ;;  %v302_v12 = vmax.f32 %v286_v1, 0.0  ;;  %v287_v14 = vadd.f32 %v257_v3, %v81_v42 }
  0xdf   :  { %v292_v13 = vmax.f32 %v276_v2, 0.0  ;;  %v277_v15 = vadd.f32 %v217_v4, %v71_v43  ;;  %v300_v16 = vmax.f32 %v284_v8, 0.0  ;;  %v285_v18 = vadd.f32 %v249_v10, %v79_v44 }
  0xe0   :  { %310 = vst [vmem:[%s621_s6 + $0x10] sm:$0xff] %v294_v7  ;;  %v295_v17 = vmax.f32 %v279_v9, 0.0  ;;  %318 = vst [vmem:[%s621_s6 + $0x50] sm:$0xff] %v302_v12  ;;  %v303_v20 = vmax.f32 %v287_v14, 0.0  ;;  %v85_v36 = vadd.f32 %v492_v21, %v62_v58  ;;  %v75_v37 = vadd.f32 %v492_v21, %v52_v0 }
  0xe1   :  { %308 = vst [vmem:[%s621_s6] sm:$0xff] %v292_v13  ;;  %v293_v22 = vmax.f32 %v277_v15, 0.0  ;;  %v364_v23 = vpop.f32.mrb[4].mxu0  ;;  %316 = vst [vmem:[%s621_s6 + $0x40] sm:$0xff] %v300_v16  ;;  %v301_v11 = vmax.f32 %v285_v18, 0.0  ;;  %v372_v27 = vpop.f32.mrb[4].mxu1  ;;  %v83_v43 = vadd.f32 %v492_v21, %v60_v19 }
  0xe2   :  { %311 = vst [vmem:[%s621_s6 + $0x18] sm:$0xff] %v295_v17  ;;  %v238_v26 = vadd.f32 %v364_v23, %v509_v32  ;;  %v229_v28 = vpop.f32.mrb[5].mxu0  ;;  %319 = vst [vmem:[%s621_s6 + $0x58] sm:$0xff] %v303_v20  ;;  %v270_v31 = vadd.f32 %v372_v27, %v509_v32  ;;  %v261_v34 = vpop.f32.mrb[5].mxu1 }
  0xe3   :  { %309 = vst [vmem:[%s621_s6 + $0x8] sm:$0xff] %v293_v22  ;;  %v230_v33 = vadd.f32 %v509_v32, %v229_v28  ;;  %v365_v35 = vpop.f32.mrb[6].mxu0  ;;  %317 = vst [vmem:[%s621_s6 + $0x48] sm:$0xff] %v301_v11  ;;  %v262_v39 = vadd.f32 %v509_v32, %v261_v34  ;;  %v373_v41 = vpop.f32.mrb[6].mxu1 }
  0xe4   :  { %v282_v38 = vadd.f32 %v238_v26, %v76_v50  ;;  %v241_v40 = vadd.f32 %v365_v35, %v509_v32  ;;  %v232_v42 = vpop.f32.mrb[7].mxu0  ;;  %v290_v44 = vadd.f32 %v270_v31, %v84_v24  ;;  %v273_v46 = vadd.f32 %v373_v41, %v509_v32  ;;  %v264_v48 = vpop.f32.mrb[7].mxu1 }
  0xe5   :  { %v280_v45 = vadd.f32 %v230_v33, %v74_v25  ;;  %v233_v47 = vadd.f32 %v509_v32, %v232_v42  ;;  %v288_v51 = vadd.f32 %v262_v39, %v82_v29  ;;  %v265_v50 = vadd.f32 %v509_v32, %v264_v48 }
  0xe6   :  { %v298_v49 = vmax.f32 %v282_v38, 0.0  ;;  %v283_v52 = vadd.f32 %v241_v40, %v77_v30  ;;  %v306_v53 = vmax.f32 %v290_v44, 0.0  ;;  %v291_v55 = vadd.f32 %v273_v46, %v85_v36 }
  0xe7   :  { %v296_v54 = vmax.f32 %v280_v45, 0.0  ;;  %v281_v56 = vadd.f32 %v233_v47, %v75_v37  ;;  %v304_v21 = vmax.f32 %v288_v51, 0.0  ;;  %v289_v58 = vadd.f32 %v265_v50, %v83_v43 }
  0xe8   :  { %314 = vst [vmem:[%s621_s6 + $0x30] sm:$0xff] %v298_v49  ;;  %v299_v57 = vmax.f32 %v283_v52, 0.0  ;;  %322 = vst [vmem:[%s621_s6 + $0x70] sm:$0xff] %v306_v53  ;;  %v307_v32 = vmax.f32 %v291_v55, 0.0 }
  0xe9   :  { %312 = vst [vmem:[%s621_s6 + $0x20] sm:$0xff] %v296_v54  ;;  %v297_v59 = vmax.f32 %v281_v56, 0.0  ;;  %320 = vst [vmem:[%s621_s6 + $0x60] sm:$0xff] %v304_v21  ;;  %v305_v60 = vmax.f32 %v289_v58, 0.0 }
  0xea   :  { %315 = vst [vmem:[%s621_s6 + $0x38] sm:$0xff] %v299_v57  ;;  %323 = vst [vmem:[%s621_s6 + $0x78] sm:$0xff] %v307_v32 }
  0xeb   :  { %313 = vst [vmem:[%s621_s6 + $0x28] sm:$0xff] %v297_v59  ;;  %321 = vst [vmem:[%s621_s6 + $0x68] sm:$0xff] %v305_v60 }

// kernel: resblock_forward.5
= control target key start
LH: loop header
LB: loop body
LE: loop exit
PB: predicated region body
PF: predicated region fallthrough
CT: control target
= control target key end

     0   :  { %s560_s12 = smov 0   ;;  %s712_s0 = inlined_call_operand.vmem [shape: f32[2,8,8,128], index: 0, kind: input, shape index: {}]   ;;  %s713_s1 = inlined_call_operand.vmem [shape: f32[1,128], index: 1, kind: input, shape index: {}]   ;;  %s714_s2 = inlined_call_operand.vmem [shape: f32[1,128], index: 2, kind: input, shape index: {}]   ;;  %s715_s3 = inlined_call_operand.vmem [shape: bf16[2,10,10,128], index: 3, kind: output, shape index: {}]  }
   0x1 LB: > { %s460_s13 = sadd.s32 4294967295, %s537_s12   ;;  %p464_p0 = scmp.ge.s32.totalorder %s537_s12, 1  ;;  %s537_s12 = sphi %s560_s12, %s13_s12  }
   0x2   : > { %p137_p1 = scmp.lt.s32.totalorder %s537_s12, 3 }
   0x4   : > { %p138_p2 = pnand %p464_p0, %p137_p1 }
   0x5   : > { %p161_p3 = scmp.lt.s32.totalorder (!%p138_p2), %s460_s13, 1  ;;  %v468_v0 = vld [vmem:[%s713_s1] ss:$0 sm:$0xff] (!%p138_p2)  ;;  %v539_v5 = vmov (!%p138_p2), 0   ;;  %vm351_vm0 = vcmask (!%p138_p2), 1043456   ;;  %vm357_vm2 = vcmask (!%p138_p2), 1040384  }
   0x6   : > { %141 = sbr.rel (%p138_p2) target bundleno = 49 (0x31), region = 32  ;;  %v579_v1 = vld [vmem:[%s714_s2] ss:$0 sm:$0xff] (!%p138_p2)  ;;  %vm352_vm1 = vsmask.f32 (!%p138_p2), 7938 }
   0x7   : > { %vm358_vm3 = vsmask.f32 (!%p138_p2), 256  ;;  %vm632_vm4 = vmand (!%p138_p2), %vm351_vm0, %vm352_vm1 }
   0x8   : > { %vm639_vm5 = vmand (!%p138_p2), %vm357_vm2, %vm358_vm3 }
   0xd   : > { %s721_s13 = smov (!%p161_p3, %s460_s13), 1 }
   0xe   : > { %s521_s14 = smul.u32 80, %s721_s13  ;;  %s512_s15 = sshll.u32 %s721_s13, 6 }
   0xf   : > { %s574_s20 = scalar_lea.vmem %s712_s0, %s512_s15 }
  0x10   : > { %s584_s25 = scalar_lea.vmem %s715_s3, %s521_s14  ;;  %v174_v2 = vld [vmem:[%s574_s20] sm:$0xff]  ;;  %v175_v3 = vld [vmem:[%s574_s20 + $0x8] sm:$0xff]  ;;  %v176_v4 = vld [vmem:[%s574_s20 + $0x10] sm:$0xff] }
  0x11   : > { %220 = vst [vmem:[%s584_s25 + $0x8] sm:$0xf] %v539_v5  ;;  %218 = vst [vmem:[%s584_s25] sm:$0xf] %v539_v5  ;;  %v188_v6 = vmul.f32 %v468_v0, %v174_v2  ;;  %v189_v7 = vmul.f32 %v468_v0, %v175_v3  ;;  %v190_v8 = vmul.f32 %v468_v0, %v176_v4  ;;  %v177_v9 = vld [vmem:[%s574_s20 + $0x18] sm:$0xff]  ;;  %v178_v10 = vld [vmem:[%s574_s20 + $0x20] sm:$0xff] }
  0x12   : > { %219 = vst [vmem:[%s584_s25 + $0x4] sm:$0x1] %v539_v5  ;;  %221 = vst [vmem:[%s584_s25 + $0xc] sm:$0x1] %v539_v5  ;;  %v179_v11 = vld [vmem:[%s574_s20 + $0x28] sm:$0xff]  ;;  %v191_v12 = vmul.f32 %v468_v0, %v177_v9  ;;  %v192_v13 = vmul.f32 %v468_v0, %v178_v10  ;;  %v180_v15 = vld [vmem:[%s574_s20 + $0x30] sm:$0xff] }
  0x13   : > { %222 = vst [vmem:[%s584_s25 + $0x10] sm:$0xf] %v539_v5  ;;  %223 = vst [vmem:[%s584_s25 + $0x14] sm:$0x1] %v539_v5  ;;  %v193_v14 = vmul.f32 %v468_v0, %v179_v11  ;;  %v202_v16 = vadd.f32 %v579_v1, %v188_v6  ;;  %v203_v17 = vadd.f32 %v579_v1, %v189_v7  ;;  %v181_v20 = vld [vmem:[%s574_s20 + $0x38] sm:$0xff] }
  0x14   : > { %224 = vst [vmem:[%s584_s25 + $0x18] sm:$0xf] %v539_v5  ;;  %225 = vst [vmem:[%s584_s25 + $0x1c] sm:$0x1] %v539_v5  ;;  %v204_v18 = vadd.f32 %v579_v1, %v190_v8  ;;  %v194_v19 = vmul.f32 %v468_v0, %v180_v15  ;;  %v205_v21 = vadd.f32 %v579_v1, %v191_v12 }
  0x15   : > { %226 = vst [vmem:[%s584_s25 + $0x20] sm:$0xf] %v539_v5  ;;  %227 = vst [vmem:[%s584_s25 + $0x24] sm:$0x1] %v539_v5  ;;  %v206_v22 = vadd.f32 %v579_v1, %v192_v13  ;;  %v207_v23 = vadd.f32 %v579_v1, %v193_v14  ;;  %v210_v24 = vmax.f32 %v202_v16, 0.0  ;;  %v211_v25 = vmax.f32 %v203_v17, 0.0 }
  0x16   : > { %228 = vst [vmem:[%s584_s25 + $0x28] sm:$0xf] %v539_v5  ;;  %229 = vst [vmem:[%s584_s25 + $0x2c] sm:$0x1] %v539_v5  ;;  %v212_v26 = vmax.f32 %v204_v18, 0.0  ;;  %v208_v27 = vadd.f32 %v579_v1, %v194_v19  ;;  %v213_v28 = vmax.f32 %v205_v21, 0.0  ;;  %v195_v31 = vmul.f32 %v468_v0, %v181_v20 }
  0x17   : > { %230 = vst [vmem:[%s584_s25 + $0x30] sm:$0xf] %v539_v5  ;;  %231 = vst [vmem:[%s584_s25 + $0x34] sm:$0x1] %v539_v5  ;;  %v214_v29 = vmax.f32 %v206_v22, 0.0  ;;  %v215_v30 = vmax.f32 %v207_v23, 0.0  ;;  %v513_v32 = vpack.c.bf16 %v210_v24, %v210_v24  ;;  %v514_v33 = vpack.c.bf16 %v211_v25, %v211_v25 }
  0x18   : > { %232 = vst [vmem:[%s584_s25 + $0x38] sm:$0xf] %v539_v5  ;;  %233 = vst [vmem:[%s584_s25 + $0x3c] sm:$0x1] %v539_v5  ;;  %v515_v34 = vpack.c.bf16 %v212_v26, %v212_v26  ;;  %v216_v35 = vmax.f32 %v208_v27, 0.0  ;;  %v516_v36 = vpack.c.bf16 %v213_v28, %v213_v28  ;;  %v628_v48 = vadd.f32 %v579_v1, %v195_v31 }
  0x19   : > { %234 = vst [vmem:[%s584_s25 + $0x40] sm:$0xf] %v539_v5  ;;  %235 = vst [vmem:[%s584_s25 + $0x44] sm:$0x1] %v539_v5  ;;  %v517_v37 = vpack.c.bf16 %v214_v29, %v214_v29  ;;  %v621_v38 = vpack.c.bf16 %v215_v30, %v215_v30  ;;  %v271_v39 = vshrl.u32 %v513_v32, 16  ;;  %v274_v40 = vshll.u32 %v513_v32, 16 }
  0x1a   : > { %236 = vst [vmem:[%s584_s25 + $0x48] sm:$0xf] %v539_v5  ;;  %237 = vst [vmem:[%s584_s25 + $0x4c] sm:$0x1] %v539_v5  ;;  %v279_v41 = vshrl.u32 %v514_v33, 16  ;;  %v282_v42 = vshll.u32 %v514_v33, 16  ;;  %v625_v47 = vpack.c.bf16 %v216_v35, %v216_v35 }
  0x1b   : > { %v478_v43 = vld [vmem:[%s584_s25 + $0x8] sm:$0xf]  ;;  %v480_v44 = vld [vmem:[%s584_s25 + $0xc] sm:$0x1]  ;;  %v287_v45 = vshrl.u32 %v515_v34, 16  ;;  %v290_v46 = vshll.u32 %v515_v34, 16 }
  0x1c   : > { %v273_v49 = vrot.slane %v271_v39, 7  ;;  %v281_v51 = vrot.slane %v279_v41, 7  ;;  %v482_v52 = vld [vmem:[%s584_s25 + $0x10] sm:$0xf]  ;;  %v295_v53 = vshrl.u32 %v516_v36, 16  ;;  %v298_v54 = vshll.u32 %v516_v36, 16 }
  0x1d   : > { %v484_v56 = vld [vmem:[%s584_s25 + $0x14] sm:$0x1]  ;;  %v289_v57 = vrot.slane %v287_v45, 7  ;;  %v303_v58 = vshrl.u32 %v517_v37, 16  ;;  %v306_v59 = vshll.u32 %v517_v37, 16  ;;  %v311_v60 = vshrl.u32 %v621_v38, 16 }
  0x1e   : > { %v276_v61 = vor.u32 %v274_v40, %v273_v49  ;;  %v277_v62 = vrot.slane %v273_v49, 4  ;;  %v284_v63 = vor.u32 %v282_v42, %v281_v51  ;;  %v285_v0 = vrot.slane %v281_v51, 4  ;;  %v486_v1 = vld [vmem:[%s584_s25 + $0x18] sm:$0xf]  ;;  %v488_v2 = vld [vmem:[%s584_s25 + $0x1c] sm:$0x1] }
  0x1f   : > { %v292_v3 = vor.u32 %v290_v46, %v289_v57  ;;  %v293_v4 = vrot.slane %v289_v57, 4  ;;  %v297_v5 = vrot.slane %v295_v53, 7  ;;  %v305_v6 = vrot.slane %v303_v58, 7  ;;  %v490_v11 = vld [vmem:[%s584_s25 + $0x20] sm:$0xf] }
  0x20   : > { %v355_v7 = vsel %vm632_vm4, %v276_v61, %v478_v43  ;;  %v361_v8 = vsel %vm639_vm5, %v277_v62, %v480_v44  ;;  %v364_v9 = vsel %vm632_vm4, %v284_v63, %v482_v52  ;;  %v367_v10 = vsel %vm639_vm5, %v285_v0, %v484_v56  ;;  %v492_v12 = vld [vmem:[%s584_s25 + $0x24] sm:$0x1]  ;;  %v494_v17 = vld [vmem:[%s584_s25 + $0x28] sm:$0xf]  ;;  %v496_v18 = vld [vmem:[%s584_s25 + $0x2c] sm:$0x1] }
  0x21   : > { %479 = vst [vmem:[%s584_s25 + $0x8] sm:$0xf] %v355_v7  ;;  %481 = vst [vmem:[%s584_s25 + $0xc] sm:$0x1] %v361_v8  ;;  %v370_v13 = vsel %vm632_vm4, %v292_v3, %v486_v1  ;;  %v373_v14 = vsel %vm639_vm5, %v293_v4, %v488_v2  ;;  %v300_v15 = vor.u32 %v298_v54, %v297_v5  ;;  %v301_v16 = vrot.slane %v297_v5, 4 }
  0x22   : > { %483 = vst [vmem:[%s584_s25 + $0x10] sm:$0xf] %v364_v9  ;;  %485 = vst [vmem:[%s584_s25 + $0x14] sm:$0x1] %v367_v10  ;;  %v308_v19 = vor.u32 %v306_v59, %v305_v6  ;;  %v309_v20 = vrot.slane %v305_v6, 4  ;;  %v313_v21 = vrot.slane %v311_v60, 7 }
  0x23   : > { %487 = vst [vmem:[%s584_s25 + $0x18] sm:$0xf] %v370_v13  ;;  %489 = vst [vmem:[%s584_s25 + $0x1c] sm:$0x1] %v373_v14  ;;  %v314_v22 = vshll.u32 %v621_v38, 16  ;;  %v376_v23 = vsel %vm632_vm4, %v300_v15, %v490_v11  ;;  %v379_v24 = vsel %vm639_vm5, %v301_v16, %v492_v12  ;;  %v319_v27 = vshrl.u32 %v625_v47, 16 }
  0x24   : > { %v498_v25 = vld [vmem:[%s584_s25 + $0x30] sm:$0xf]  ;;  %v500_v26 = vld [vmem:[%s584_s25 + $0x34] sm:$0x1]  ;;  %v322_v28 = vshll.u32 %v625_v47, 16  ;;  %v382_v29 = vsel %vm632_vm4, %v308_v19, %v494_v17  ;;  %v385_v30 = vsel %vm639_vm5, %v309_v20, %v496_v18  ;;  %v317_v32 = vrot.slane %v313_v21, 4 }
  0x25   : > { %491 = vst [vmem:[%s584_s25 + $0x20] sm:$0xf] %v376_v23  ;;  %493 = vst [vmem:[%s584_s25 + $0x24] sm:$0x1] %v379_v24  ;;  %v316_v31 = vor.u32 %v314_v22, %v313_v21  ;;  %v321_v33 = vrot.slane %v319_v27, 7  ;;  %v217_v34 = vmax.f32 %v628_v48, 0.0 }
  0x26   : > { %495 = vst [vmem:[%s584_s25 + $0x28] sm:$0xf] %v382_v29  ;;  %497 = vst [vmem:[%s584_s25 + $0x2c] sm:$0x1] %v385_v30  ;;  %v391_v36 = vsel %vm639_vm5, %v317_v32, %v500_v26  ;;  %v502_v37 = vld [vmem:[%s584_s25 + $0x38] sm:$0xf] }
  0x27   : > { %v388_v35 = vsel %vm632_vm4, %v316_v31, %v498_v25  ;;  %v504_v38 = vld [vmem:[%s584_s25 + $0x3c] sm:$0x1]  ;;  %501 = vst [vmem:[%s584_s25 + $0x34] sm:$0x1] %v391_v36  ;;  %v324_v39 = vor.u32 %v322_v28, %v321_v33  ;;  %v325_v40 = vrot.slane %v321_v33, 4  ;;  %v520_v41 = vpack.c.bf16 %v217_v34, %v217_v34 }
  0x28   : > { %499 = vst [vmem:[%s584_s25 + $0x30] sm:$0xf] %v388_v35  ;;  %v506_v47 = vld [vmem:[%s584_s25 + $0x40] sm:$0xf]  ;;  %v508_v48 = vld [vmem:[%s584_s25 + $0x44] sm:$0x1] }
  0x29   : > { %v394_v42 = vsel %vm632_vm4, %v324_v39, %v502_v37  ;;  %v397_v43 = vsel %vm639_vm5, %v325_v40, %v504_v38  ;;  %v327_v44 = vshrl.u32 %v520_v41, 16  ;;  %v330_v45 = vshll.u32 %v520_v41, 16 }
  0x2a   : > { %503 = vst [vmem:[%s584_s25 + $0x38] sm:$0xf] %v394_v42  ;;  %505 = vst [vmem:[%s584_s25 + $0x3c] sm:$0x1] %v397_v43 }
  0x2b   : > { %v329_v46 = vrot.slane %v327_v44, 7 }
  0x2d   : > { %v332_v49 = vor.u32 %v330_v45, %v329_v46  ;;  %v333_v51 = vrot.slane %v329_v46, 4 }
  0x2f   : > { %v400_v52 = vsel %vm632_vm4, %v332_v49, %v506_v47  ;;  %v403_v53 = vsel %vm639_vm5, %v333_v51, %v508_v48 }
  0x30   : > { %507 = vst [vmem:[%s584_s25 + $0x40] sm:$0xf] %v400_v52  ;;  %509 = vst [vmem:[%s584_s25 + $0x44] sm:$0x1] %v403_v53 }
  0x31 PF: > { %s13_s12 = sadd.s32 1, %s537_s12  }
  0x32   : > { %p10_p4 = scmp.ge.s32.totalorder %s13_s12, 4  }
  0x34   :  { %12 = sbr.rel (!%p10_p4) target bundleno = 1 (0x1), region = 63 }

// kernel: resblock_forward.4
= control target key start
LH: loop header
LB: loop body
LE: loop exit
PB: predicated region body
PF: predicated region fallthrough
CT: control target
= control target key end

     0   :  { %s2293_s21 = smov 0   ;;  %s2586_s0 = inlined_call_operand.vmem [shape: bf16[2,9,9,8], index: 0, kind: input, shape index: {}]   ;;  %s2587_s1 = inlined_call_operand.vmem [shape: bf16[2,9,9,8], index: 1, kind: input, shape index: {}]   ;;  %s2588_s2 = inlined_call_operand.vmem [shape: bf16[2,9,9,8], index: 2, kind: input, shape index: {}]   ;;  %s2589_s3 = inlined_call_operand.vmem [shape: bf16[2,9,9,8], index: 3, kind: input, shape index: {}]   ;;  %s2590_s4 = inlined_call_operand.vmem [shape: bf16[9,8,128], index: 4, kind: input, shape index: {}]   ;;  %s2591_s5 = inlined_call_operand.vmem [shape: f32[2,8,8,128], index: 5, kind: output, shape index: {0}]   ;;  %s2592_s6 = inlined_call_operand.vmem [shape: f32[2,2,128], index: 6, kind: output, shape index: {1}]  }
   0x1 LB: > { %s1879_s22 = sadd.s32 4294967295, %s2256_s21   ;;  %p1883_p0 = scmp.ge.s32.totalorder %s2256_s21, 1  ;;  %s2256_s21 = sphi %s2293_s21, %s17_s21  }
   0x2   : > { %p245_p1 = scmp.lt.s32.totalorder %s2256_s21, 3 }
   0x4   : > { %p246_p2 = pnand %p1883_p0, %p245_p1 }
   0x5   : > { %v1891_v0 = vld [vmem:[%s2590_s4 + $0x4] sm:$0xf] (!%p246_p2)  ;;  %vm376_vm0 = vcmask (!%p246_p2), 1043456   ;;  %v2307_v1 = vld [vmem:[%s2590_s4 + $0x10] sm:$0xf] (!%p246_p2)  ;;  %p294_p3 = scmp.lt.s32.totalorder (!%p246_p2), %s1879_s22, 1 }
   0x6   : > { %249 = sbr.rel (%p246_p2) target bundleno = 333 (0x14d), region = 40  ;;  %2207 = vmatprep.subr.msk.bf16.mxu1 (!%p246_p2), %vm376_vm0, %v1891_v0  ;;  %2211 = vmatprep.subr.msk.bf16.mxu0 (!%p246_p2), %vm376_vm0, %v2307_v1  ;;  %v378_v2 = vsel (!%p246_p2), %vm376_vm0, %v1891_v0, 0  ;;  %v2315_v3 = vsel (!%p246_p2), %vm376_vm0, %v2307_v1, 0  ;;  %v332_v4 = vld [vmem:[%s2590_s4] sm:$0xf] (!%p246_p2)  ;;  %vm363_vm1 = vcmask (!%p246_p2), 64512  }
   0x7   : > { %2052 = vmatpush3.bf16.msra.mxu1 (!%p246_p2), %v378_v2  ;;  %2092 = vmatpush3.bf16.msra.mxu0 (!%p246_p2), %v2315_v3  ;;  %v1935_v5 = vld [vmem:[%s2590_s4 + $0x14] sm:$0xf] (!%p246_p2)  ;;  %v478_v6 = vsel (!%p246_p2), %vm376_vm0, %v332_v4, 0  ;;  %v1952_v9 = vld [vmem:[%s2590_s4 + $0x18] sm:$0xf] (!%p246_p2)  ;;  %vm1754_vm5 = vcmask (!%p246_p2), 1040384  }
   0x8   : > { %2208 = vmatprep.subr.msk.bf16.mxu1 (!%p246_p2), %vm376_vm0, %v332_v4  ;;  %2213 = vmatprep.subr.msk.bf16.mxu0 (!%p246_p2), %vm376_vm0, %v1935_v5  ;;  %v1169_v7 = vsel (!%p246_p2), %vm376_vm0, %v1935_v5, 0  ;;  %v1908_v10 = vld [vmem:[%s2590_s4 + $0x8] sm:$0xf] (!%p246_p2)  ;;  %vm561_vm2 = vsmask.f32 (!%p246_p2), 3328  ;;  %v2367_v15 = vsel (!%p246_p2), %vm376_vm0, %v1952_v9, 0 }
   0x9   : > { %vm562_vm3 = vsmask.f32 (!%p246_p2), 7440  ;;  %v2370_v16 = vsel (!%p246_p2), %vm376_vm0, %v1908_v10, 0 }
   0xa   : > { %vm2393_vm4 = vmor (!%p246_p2), %vm561_vm2, %vm562_vm3 }
   0xd   : > { %s2596_s22 = smov (!%p294_p3, %s1879_s22), 1 }
   0xe   : > { %s2329_s7 = smul.u32 72, %s2596_s22  ;;  %s2005_s8 = sshll.u32 %s2596_s22, 6 }
   0xf   : > { %s2569_s11 = scalar_lea.vmem %s2591_s5, %s2005_s8  ;;  %s1890_s12 = sshll.u32 %s2596_s22, 1 }
  0x10   : > { %s2335_s10 = scalar_lea.vmem %s2587_s1, %s2329_s7  ;;  %s2344_s13 = scalar_lea.vmem %s2589_s3, %s2329_s7 }
  0x11   : > { %v2226_v8 = vld [vmem:[%s2335_s10] ss:$8 sps:$4 sm:$0xff]   ;;  %v2228_v12 = vld [vmem:[%s2335_s10 + $0x10] ss:$8 sps:$4 sm:$0xff]   ;;  %s2359_s20 = scalar_lea.vmem %s2588_s2, %s2329_s7  ;;  %s2387_s25 = scalar_lea.vmem %s2586_s0, %s2329_s7 }
  0x12   : > { %v2227_v11 = vld [vmem:[%s2344_s13] ss:$8 sps:$4 sm:$0xff]   ;;  %2053 = vmatprep.mubr.msk.bf16.mxu1 %vm363_vm1, %v2226_v8  ;;  %v2229_v13 = vld [vmem:[%s2344_s13 + $0x10] ss:$8 sps:$4 sm:$0xff]   ;;  %v1015_v19 = vld [vmem:[%s2359_s20 + $0x4] sm:$0x1]  ;;  %s322_s15 = scalar_lea.vmem %s2592_s6, %s1890_s12 }
  0x13   : > { %2093 = vmatprep.mubr.msk.bf16.mxu0 %vm363_vm1, %v2227_v11  ;;  %2054 = vmatmul.mubr.msk.bf16.vlgmr.msra.gmra.mrb[0].mxu1 %vm363_vm1, %v2228_v12  ;;  %v2230_v14 = vld [vmem:[%s2335_s10 + $0x20] ss:$8 sps:$4 sm:$0xff]   ;;  %v2231_v17 = vld [vmem:[%s2335_s10 + $0x30] ss:$8 sps:$4 sm:$0xff]   ;;  %v1017_v21 = vld [vmem:[%s2359_s20 + $0xc] sm:$0x1] }
  0x14   : > { %2062 = vmatpush3.bf16.msra.mxu1 %v478_v6  ;;  %2094 = vmatmul.mubr.msk.bf16.vlgmr.msra.gmra.mrb[0].mxu0 %vm363_vm1, %v2229_v13  ;;  %v1014_v18 = vld [vmem:[%s2359_s20] sm:$0xf]  ;;  %v1016_v20 = vld [vmem:[%s2359_s20 + $0x8] sm:$0xf]  ;;  %v1040_v24 = vshll.u32 %v1015_v19, 16  ;;  %v1054_v27 = vshll.u32 %v1017_v21, 16 }
  0x15   : > { %2102 = vmatpush3.bf16.msra.mxu0 %v1169_v7  ;;  %2057 = vmatprep.mubr.msk.bf16.mxu1 %vm363_vm1, %v2230_v14  ;;  %v1031_v22 = vshrl.u32 %v1014_v18, 16  ;;  %v1034_v23 = vshll.u32 %v1014_v18, 16  ;;  %v1045_v25 = vshrl.u32 %v1016_v20, 16  ;;  %v1048_v26 = vshll.u32 %v1016_v20, 16  ;;  %v1018_v28 = vld [vmem:[%s2359_s20 + $0x10] sm:$0xf] }
  0x16   : > { %2214 = vmatprep.subr.msk.bf16.mxu0 %vm376_vm0, %v1952_v9  ;;  %2209 = vmatprep.subr.msk.bf16.mxu1 %vm376_vm0, %v1908_v10  ;;  %v1019_v29 = vld [vmem:[%s2359_s20 + $0x14] sm:$0x1]  ;;  %v1042_v32 = vrot.slane %v1040_v24, 5  ;;  %v1020_v34 = vld [vmem:[%s2359_s20 + $0x18] sm:$0xf]  ;;  %v1056_v36 = vrot.slane %v1054_v27, 5 }
  0x17   : > { %v1033_v30 = vrot.slane %v1031_v22, 4  ;;  %v1036_v31 = vrot.slane %v1034_v23, 5  ;;  %v1047_v33 = vrot.slane %v1045_v25, 4  ;;  %v1050_v35 = vrot.slane %v1048_v26, 5  ;;  %v1021_v37 = vld [vmem:[%s2359_s20 + $0x1c] sm:$0x1] }
  0x18   : > { %v1059_v38 = vshrl.u32 %v1018_v28, 16  ;;  %v1062_v39 = vshll.u32 %v1018_v28, 16  ;;  %v1068_v41 = vshll.u32 %v1019_v29, 16  ;;  %v1073_v42 = vshrl.u32 %v1020_v34, 16  ;;  %v2232_v53 = vld [vmem:[%s2387_s25] ss:$8 sps:$4 sm:$0xff]  }
  0x19   : > { %v1037_v40 = vor.u32 %v1036_v31, %v1033_v30  ;;  %v1076_v43 = vshll.u32 %v1020_v34, 16  ;;  %v1051_v45 = vor.u32 %v1050_v35, %v1047_v33  ;;  %v1082_v48 = vshll.u32 %v1021_v37, 16  ;;  %v2233_v59 = vld [vmem:[%s2387_s25 + $0x10] ss:$8 sps:$4 sm:$0xff]   ;;  %v1022_v60 = vld [vmem:[%s2359_s20 + $0x20] sm:$0xf] }
  0x1a   : > { %v1061_v46 = vrot.slane %v1059_v38, 4  ;;  %v1064_v47 = vrot.slane %v1062_v39, 5  ;;  %v1070_v50 = vrot.slane %v1068_v41, 5  ;;  %v1075_v51 = vrot.slane %v1073_v42, 4  ;;  %v1023_v61 = vld [vmem:[%s2359_s20 + $0x24] sm:$0x1] }
  0x1b   : > { %2058 = vmatmul.mubr.msk.bf16.gmra.mrb[4].mxu1 %vm363_vm1, %v2231_v17  ;;  %v1038_v49 = vrot.slane %v1037_v40, 4  ;;  %v1078_v52 = vrot.slane %v1076_v43, 5  ;;  %v1052_v54 = vrot.slane %v1051_v45, 4  ;;  %v1084_v56 = vrot.slane %v1082_v48, 5  ;;  %v1024_v0 = vld [vmem:[%s2359_s20 + $0x28] sm:$0xf] }
  0x1c   : > { %v1065_v55 = vor.u32 %v1064_v47, %v1061_v46  ;;  %2063 = vmatprep.mubr.msk.bf16.mxu1 %vm363_vm1, %v2232_v53  ;;  %v1025_v2 = vld [vmem:[%s2359_s20 + $0x2c] sm:$0x1]  ;;  %v1087_v4 = vshrl.u32 %v1022_v60, 16  ;;  %v1090_v7 = vshll.u32 %v1022_v60, 16  ;;  %v1096_v8 = vshll.u32 %v1023_v61, 16 }
  0x1d   : > { %v1043_v57 = vsel %vm2393_vm4, %v1038_v49, %v1042_v32  ;;  %v1079_v58 = vor.u32 %v1078_v52, %v1075_v51  ;;  %v1057_v62 = vsel %vm2393_vm4, %v1052_v54, %v1056_v36  ;;  %v1026_v9 = vld [vmem:[%s2359_s20 + $0x30] sm:$0xf]  ;;  %v2412_v10 = vld [vmem:[%s2590_s4 + $0xc] sm:$0xf]  ;;  %v1101_v13 = vshrl.u32 %v1024_v0, 16 }
  0x1e   : > { %v1066_v63 = vrot.slane %v1065_v55, 4  ;;  %v1936_v5 = vcombine.low %v1043_v57, %v1057_v62  ;;  %v1089_v12 = vrot.slane %v1087_v4, 4  ;;  %v1104_v14 = vshll.u32 %v1024_v0, 16  ;;  %v1027_v17 = vld [vmem:[%s2359_s20 + $0x34] sm:$0x1] }
  0x1f   : > { %v1080_v6 = vrot.slane %v1079_v58, 4  ;;  %v1092_v19 = vrot.slane %v1090_v7, 5  ;;  %v1098_v20 = vrot.slane %v1096_v8, 5  ;;  %v1110_v21 = vshll.u32 %v1025_v2, 16  ;;  %v1028_v22 = vld [vmem:[%s2359_s20 + $0x38] sm:$0xf] }
  0x20   : > { %v1071_v11 = vsel %vm2393_vm4, %v1066_v63, %v1070_v50  ;;  %2103 = vmatprep.mubr.msk.bf16.mxu0 %vm363_vm1, %v1936_v5  ;;  %v2424_v23 = vld [vmem:[%s2590_s4 + $0x1c] sm:$0xf]  ;;  %v1103_v25 = vrot.slane %v1101_v13, 4  ;;  %v1106_v26 = vrot.slane %v1104_v14, 5  ;;  %v1115_v28 = vshrl.u32 %v1026_v9, 16 }
  0x21   : > { %v1085_v18 = vsel %vm2393_vm4, %v1080_v6, %v1084_v56  ;;  %v1029_v27 = vld [vmem:[%s2359_s20 + $0x3c] sm:$0x1]  ;;  %v1093_v29 = vor.u32 %v1092_v19, %v1089_v12  ;;  %v1112_v30 = vrot.slane %v1110_v21, 5  ;;  %v1118_v31 = vshll.u32 %v1026_v9, 16  ;;  %v2236_v53 = vld [vmem:[%s2387_s25 + $0x8] ss:$8 sps:$4 sm:$0xff]  }
  0x22   : > { %v1937_v24 = vcombine.low %v1071_v11, %v1085_v18  ;;  %v1124_v32 = vshll.u32 %v1027_v17, 16  ;;  %v1107_v33 = vor.u32 %v1106_v26, %v1103_v25  ;;  %v1117_v34 = vrot.slane %v1115_v28, 4  ;;  %v545_v54 = vld [vmem:[%s2387_s25] sm:$0xf]  ;;  %v546_v56 = vld [vmem:[%s2387_s25 + $0x4] sm:$0x1] }
  0x23   : > { %2064 = vmatmul.mubr.msk.bf16.vlgmr.msra.gmra.mrb[0].mxu1 %vm363_vm1, %v2233_v59  ;;  %v1129_v35 = vshrl.u32 %v1028_v22, 16  ;;  %v1132_v36 = vshll.u32 %v1028_v22, 16  ;;  %v1094_v37 = vrot.slane %v1093_v29, 4  ;;  %v1120_v38 = vrot.slane %v1118_v31, 5  ;;  %v547_v57 = vld [vmem:[%s2387_s25 + $0x8] sm:$0xf] }
  0x24   : > { %2072 = vmatpush3.bf16.msra.mxu1 %v2370_v16  ;;  %2104 = vmatmul.mubr.msk.bf16.vlgmr.msra.gmra.mrb[0].mxu0 %vm363_vm1, %v1937_v24  ;;  %v1138_v39 = vshll.u32 %v1029_v27, 16  ;;  %v2234_v16 = vld [vmem:[%s2387_s25 + $0x20] ss:$8 sps:$4 sm:$0xff]   ;;  %v1108_v40 = vrot.slane %v1107_v33, 4  ;;  %v1126_v46 = vrot.slane %v1124_v32, 5  ;;  %v565_v60 = vshrl.u32 %v545_v54, 16 }
  0x25   : > { %2210 = vmatprep.subr.msk.bf16.mxu1 %vm376_vm0, %v2412_v10  ;;  %2112 = vmatpush3.bf16.msra.mxu0 %v2367_v15  ;;  %v1131_v41 = vrot.slane %v1129_v35, 4  ;;  %v1134_v42 = vrot.slane %v1132_v36, 5  ;;  %v1099_v43 = vsel %vm2393_vm4, %v1094_v37, %v1098_v20  ;;  %v1121_v45 = vor.u32 %v1120_v38, %v1117_v34  ;;  %v2235_v15 = vld [vmem:[%s2387_s25 + $0x30] ss:$8 sps:$4 sm:$0xff]   ;;  %v548_v58 = vld [vmem:[%s2387_s25 + $0xc] sm:$0x1] }
  0x26   : > { %2215 = vmatprep.subr.msk.bf16.mxu0 %vm376_vm0, %v2424_v23  ;;  %2067 = vmatprep.mubr.msk.bf16.mxu1 %vm363_vm1, %v2234_v16  ;;  %v1113_v47 = vsel %vm2393_vm4, %v1108_v40, %v1112_v30  ;;  %v1140_v49 = vrot.slane %v1138_v39, 5  ;;  %v568_v61 = vshll.u32 %v545_v54, 16  ;;  %v574_v62 = vshll.u32 %v546_v56, 16  ;;  %v549_v63 = vld [vmem:[%s2387_s25 + $0x10] sm:$0xf] }
  0x27   : > { %v1135_v48 = vor.u32 %v1134_v42, %v1131_v41  ;;  %v1938_v50 = vcombine.low %v1099_v43, %v1113_v47  ;;  %v1122_v51 = vrot.slane %v1121_v45, 4  ;;  %v579_v2 = vshrl.u32 %v547_v57, 16  ;;  %v550_v6 = vld [vmem:[%s2387_s25 + $0x14] sm:$0x1]  ;;  %v551_v11 = vld [vmem:[%s2387_s25 + $0x18] sm:$0xf] }
  0x28   : > { %v582_v4 = vshll.u32 %v547_v57, 16  ;;  %v588_v5 = vshll.u32 %v548_v58, 16  ;;  %v567_v7 = vrot.slane %v565_v60, 4  ;;  %v570_v8 = vrot.slane %v568_v61, 5  ;;  %v552_v18 = vld [vmem:[%s2387_s25 + $0x1c] sm:$0x1] }
  0x29   : > { %v1136_v52 = vrot.slane %v1135_v48, 4  ;;  %2107 = vmatprep.mubr.msk.bf16.mxu0 %vm363_vm1, %v1938_v50  ;;  %v1127_v55 = vsel %vm2393_vm4, %v1122_v51, %v1126_v46  ;;  %v576_v9 = vrot.slane %v574_v62, 5  ;;  %v593_v12 = vshrl.u32 %v549_v63, 16  ;;  %v2237_v29 = vld [vmem:[%s2387_s25 + $0x18] ss:$8 sps:$4 sm:$0xff]  }
  0x2a   : > { %v581_v13 = vrot.slane %v579_v2, 4  ;;  %v584_v14 = vrot.slane %v582_v4, 5  ;;  %v590_v17 = vrot.slane %v588_v5, 5  ;;  %v596_v19 = vshll.u32 %v549_v63, 16  ;;  %v2238_v37 = vld [vmem:[%s2387_s25 + $0x28] ss:$8 sps:$4 sm:$0xff]  }
  0x2b   : > { %2068 = vmatmul.mubr.msk.bf16.gmra.mrb[4].mxu1 %vm363_vm1, %v2235_v15  ;;  %v1141_v59 = vsel %vm2393_vm4, %v1136_v52, %v1140_v49  ;;  %v571_v20 = vor.u32 %v570_v8, %v567_v7  ;;  %v595_v21 = vrot.slane %v593_v12, 4  ;;  %v602_v22 = vshll.u32 %v550_v6, 16  ;;  %v553_v40 = vld [vmem:[%s2387_s25 + $0x20] sm:$0xf]  ;;  %v554_v45 = vld [vmem:[%s2387_s25 + $0x24] sm:$0x1] }
  0x2c   : > { %v1939_v0 = vcombine.low %v1127_v55, %v1141_v59  ;;  %v607_v24 = vshrl.u32 %v551_v11, 16  ;;  %v585_v25 = vor.u32 %v584_v14, %v581_v13  ;;  %v598_v26 = vrot.slane %v596_v19, 5  ;;  %v555_v46 = vld [vmem:[%s2387_s25 + $0x28] sm:$0xf]  ;;  %v556_v48 = vld [vmem:[%s2387_s25 + $0x2c] sm:$0x1] }
  0x2d   : > { %v610_v27 = vshll.u32 %v551_v11, 16  ;;  %v616_v28 = vshll.u32 %v552_v18, 16  ;;  %v1407_v30 = vsel %vm376_vm0, %v2424_v23, 0  ;;  %v572_v31 = vrot.slane %v571_v20, 4  ;;  %v2471_v23 = vld [vmem:[%s2590_s4 + $0x20] sm:$0xf] }
  0x2e   : > { %2108 = vmatmul.mubr.msk.bf16.gmra.mrb[4].mxu0 %vm363_vm1, %v1939_v0  ;;  %v604_v32 = vrot.slane %v602_v22, 5  ;;  %v609_v33 = vrot.slane %v607_v24, 4  ;;  %v586_v34 = vrot.slane %v585_v25, 4  ;;  %v599_v35 = vor.u32 %v598_v26, %v595_v21  ;;  %v557_v55 = vld [vmem:[%s2387_s25 + $0x30] sm:$0xf] }
  0x2f   : > { %2113 = vmatprep.mubr.msk.bf16.mxu0 %vm363_vm1, %v2236_v53  ;;  %v612_v36 = vrot.slane %v610_v27, 5  ;;  %v577_v38 = vsel %vm2393_vm4, %v572_v31, %v576_v9  ;;  %v618_v39 = vrot.slane %v616_v28, 5  ;;  %v821_v16 = vsel %vm376_vm0, %v2412_v10, 0  ;;  %v558_v60 = vld [vmem:[%s2387_s25 + $0x34] sm:$0x1] }
  0x30   : > { %v591_v41 = vsel %vm2393_vm4, %v586_v34, %v590_v17  ;;  %v600_v42 = vrot.slane %v599_v35, 4  ;;  %v621_v15 = vshrl.u32 %v553_v40, 16  ;;  %v624_v49 = vshll.u32 %v553_v40, 16  ;;  %v2239_v62 = vld [vmem:[%s2387_s25 + $0x38] ss:$8 sps:$4 sm:$0xff]  }
  0x31   : > { %v613_v43 = vor.u32 %v612_v36, %v609_v33  ;;  %v1909_v47 = vcombine.low %v577_v38, %v591_v41  ;;  %v630_v10 = vshll.u32 %v554_v45, 16  ;;  %v635_v50 = vshrl.u32 %v555_v46, 16  ;;  %v559_v0 = vld [vmem:[%s2387_s25 + $0x38] sm:$0xf]  ;;  %v560_v2 = vld [vmem:[%s2387_s25 + $0x3c] sm:$0x1] }
  0x32   : > { %v605_v51 = vsel %vm2393_vm4, %v600_v42, %v604_v32  ;;  %v623_v53 = vrot.slane %v621_v15, 4  ;;  %v638_v54 = vshll.u32 %v555_v46, 16  ;;  %v626_v56 = vrot.slane %v624_v49, 5  ;;  %v2240_v14 = vld [vmem:[%s2335_s10 + $0x8] ss:$8 sps:$4 sm:$0xff]  }
  0x33   : > { %v614_v52 = vrot.slane %v613_v43, 4  ;;  %2073 = vmatprep.mubr.msk.bf16.mxu1 %vm363_vm1, %v1909_v47  ;;  %v632_v57 = vrot.slane %v630_v10, 5  ;;  %v637_v58 = vrot.slane %v635_v50, 4  ;;  %v644_v59 = vshll.u32 %v556_v48, 16  ;;  %v2241_v35 = vld [vmem:[%s2335_s10 + $0x18] ss:$8 sps:$4 sm:$0xff]  }
  0x34   : > { %v640_v63 = vrot.slane %v638_v54, 5  ;;  %v649_v4 = vshrl.u32 %v557_v55, 16  ;;  %v627_v6 = vor.u32 %v626_v56, %v623_v53  ;;  %v652_v8 = vshll.u32 %v557_v55, 16  ;;  %v1979_v40 = vld [vmem:[%s2387_s25 + $0xc] sm:$0x1] }
  0x35   : > { %v619_v61 = vsel %vm2393_vm4, %v614_v52, %v618_v39  ;;  %v646_v7 = vrot.slane %v644_v59, 5  ;;  %v658_v12 = vshll.u32 %v558_v60, 16  ;;  %v663_v13 = vshrl.u32 %v559_v0, 16  ;;  %v2244_v39 = vld [vmem:[%s2335_s10 + $0x28] ss:$8 sps:$4 sm:$0xff]  }
  0x36   : > { %2114 = vmatmul.mubr.msk.bf16.vlgmr.msra.gmra.mrb[0].mxu0 %vm363_vm1, %v2237_v29  ;;  %v1910_v5 = vcombine.low %v605_v51, %v619_v61  ;;  %v641_v9 = vor.u32 %v640_v63, %v637_v58  ;;  %v651_v11 = vrot.slane %v649_v4, 4  ;;  %v628_v17 = vrot.slane %v627_v6, 4  ;;  %v1980_v41 = vld [vmem:[%s2387_s25 + $0x10] sm:$0xf]  ;;  %v1981_v42 = vld [vmem:[%s2387_s25 + $0x14] sm:$0x1] }
  0x37   : > { %2122 = vmatpush3.bf16.msra.mxu0 %v1407_v30  ;;  %2117 = vmatprep.mubr.msk.bf16.mxu0 %vm363_vm1, %v2238_v37  ;;  %v654_v18 = vrot.slane %v652_v8, 5  ;;  %v666_v19 = vshll.u32 %v559_v0, 16  ;;  %v672_v20 = vshll.u32 %v560_v2, 16  ;;  %v665_v22 = vrot.slane %v663_v13, 4  ;;  %v2242_v37 = vld [vmem:[%s2359_s20] ss:$8 sps:$4 sm:$0xff]  }
  0x38   : > { %2216 = vmatprep.subr.msk.bf16.mxu0 %vm376_vm0, %v2471_v23  ;;  %2074 = vmatmul.mubr.msk.bf16.vlgmr.msra.gmra.mrb[0].mxu1 %vm363_vm1, %v1910_v5  ;;  %v642_v21 = vrot.slane %v641_v9, 4  ;;  %v633_v24 = vsel %vm2393_vm4, %v628_v17, %v632_v57  ;;  %v660_v26 = vrot.slane %v658_v12, 5  ;;  %v1637_v34 = vsel %vm376_vm0, %v2471_v23, 0  ;;  %v1982_v48 = vld [vmem:[%s2387_s25 + $0x18] sm:$0xf] }
  0x39   : > { %2082 = vmatpush3.bf16.msra.mxu1 %v821_v16  ;;  %v655_v25 = vor.u32 %v654_v18, %v651_v11  ;;  %v668_v27 = vrot.slane %v666_v19, 5  ;;  %v674_v32 = vrot.slane %v672_v20, 5  ;;  %v1978_v16 = vld [vmem:[%s2387_s25 + $0x8] sm:$0xf]  ;;  %v1508_v23 = vshll.u32 %v1979_v40, 16 }
  0x3a   : > { %2212 = vmatprep.subr.msk.bf16.mxu1 %vm376_vm0, %v2307_v1  ;;  %v647_v28 = vsel %vm2393_vm4, %v642_v21, %v646_v7  ;;  %v1499_v43 = vshrl.u32 %v1978_v16, 16  ;;  %v1502_v45 = vshll.u32 %v1978_v16, 16  ;;  %v1513_v46 = vshrl.u32 %v1980_v41, 16  ;;  %v1983_v50 = vld [vmem:[%s2387_s25 + $0x1c] sm:$0x1] }
  0x3b   : > { %v1911_v29 = vcombine.low %v633_v24, %v647_v28  ;;  %v656_v30 = vrot.slane %v655_v25, 4  ;;  %v669_v31 = vor.u32 %v668_v27, %v665_v22  ;;  %v1516_v15 = vshll.u32 %v1980_v41, 16  ;;  %v1984_v51 = vld [vmem:[%s2387_s25 + $0x20] sm:$0xf]  ;;  %v2243_v52 = vld [vmem:[%s2359_s20 + $0x10] ss:$8 sps:$4 sm:$0xff]  }
  0x3c   : > { %v1522_v47 = vshll.u32 %v1981_v42, 16  ;;  %v1501_v49 = vrot.slane %v1499_v43, 4  ;;  %v1504_v10 = vrot.slane %v1502_v45, 5  ;;  %v2245_v53 = vld [vmem:[%s2335_s10 + $0x38] ss:$8 sps:$4 sm:$0xff]   ;;  %v1510_v54 = vrot.slane %v1508_v23, 5 }
  0x3d   : > { %2077 = vmatprep.mubr.msk.bf16.mxu1 %vm363_vm1, %v1911_v29  ;;  %v661_v1 = vsel %vm2393_vm4, %v656_v30, %v660_v26  ;;  %v670_v33 = vrot.slane %v669_v31, 4  ;;  %v1515_v55 = vrot.slane %v1513_v46, 4  ;;  %v1518_v56 = vrot.slane %v1516_v15, 5  ;;  %v1985_v58 = vld [vmem:[%s2387_s25 + $0x24] sm:$0x1] }
  0x3e   : > { %2118 = vmatmul.mubr.msk.bf16.gmra.mrb[4].mxu0 %vm363_vm1, %v2239_v62  ;;  %v1524_v57 = vrot.slane %v1522_v47, 5  ;;  %v1505_v59 = vor.u32 %v1504_v10, %v1501_v49  ;;  %v1527_v60 = vshrl.u32 %v1982_v48, 16  ;;  %v1530_v61 = vshll.u32 %v1982_v48, 16  ;;  %v2246_v5 = vld [vmem:[%s2359_s20 + $0x20] ss:$8 sps:$4 sm:$0xff]  }
  0x3f   : > { %2123 = vmatprep.mubr.msk.bf16.mxu0 %vm363_vm1, %v2240_v14  ;;  %v675_v36 = vsel %vm2393_vm4, %v670_v33, %v674_v32  ;;  %v1536_v62 = vshll.u32 %v1983_v50, 16  ;;  %v1519_v63 = vor.u32 %v1518_v56, %v1515_v55  ;;  %v1541_v0 = vshrl.u32 %v1984_v51, 16  ;;  %v1986_v17 = vld [vmem:[%s2387_s25 + $0x28] sm:$0xf]  ;;  %v1987_v20 = vld [vmem:[%s2387_s25 + $0x2c] sm:$0x1] }
  0x40   : > { %v1912_v38 = vcombine.low %v661_v1, %v675_v36  ;;  %v1544_v2 = vshll.u32 %v1984_v51, 16  ;;  %v1550_v4 = vshll.u32 %v1985_v58, 16  ;;  %v1506_v6 = vrot.slane %v1505_v59, 4  ;;  %v1988_v21 = vld [vmem:[%s2387_s25 + $0x30] sm:$0xf] }
  0x41   : > { %v1529_v7 = vrot.slane %v1527_v60, 4  ;;  %v1532_v8 = vrot.slane %v1530_v61, 5  ;;  %v1538_v9 = vrot.slane %v1536_v62, 5  ;;  %v1520_v11 = vrot.slane %v1519_v63, 4  ;;  %v1989_v22 = vld [vmem:[%s2387_s25 + $0x34] sm:$0x1] }
  0x42   : > { %2078 = vmatmul.mubr.msk.bf16.gmra.mrb[4].mxu1 %vm363_vm1, %v1912_v38  ;;  %v1543_v12 = vrot.slane %v1541_v0, 4  ;;  %v1546_v13 = vrot.slane %v1544_v2, 5  ;;  %v1552_v14 = vrot.slane %v1550_v4, 5  ;;  %v1511_v18 = vsel %vm2393_vm4, %v1506_v6, %v1510_v54  ;;  %v2247_v32 = vld [vmem:[%s2359_s20 + $0x30] ss:$8 sps:$4 sm:$0xff]  }
  0x43   : > { %2083 = vmatprep.mubr.msk.bf16.mxu1 %vm363_vm1, %v2242_v37  ;;  %v1533_v19 = vor.u32 %v1532_v8, %v1529_v7  ;;  %v1525_v24 = vsel %vm2393_vm4, %v1520_v11, %v1524_v57  ;;  %v1555_v26 = vshrl.u32 %v1986_v17, 16  ;;  %v1558_v27 = vshll.u32 %v1986_v17, 16  ;;  %v1990_v36 = vld [vmem:[%s2387_s25 + $0x38] sm:$0xf]  ;;  %v1991_v16 = vld [vmem:[%s2387_s25 + $0x3c] sm:$0x1] }
  0x44   : > { %v1547_v25 = vor.u32 %v1546_v13, %v1543_v12  ;;  %v1995_v28 = vcombine.low %v1511_v18, %v1525_v24  ;;  %v1564_v30 = vshll.u32 %v1987_v20, 16  ;;  %v1569_v31 = vshrl.u32 %v1988_v21, 16  ;;  %v1992_v43 = vld [vmem:[%s2387_s25 + $0x40] sm:$0xf]  ;;  %v1993_v45 = vld [vmem:[%s2387_s25 + $0x44] sm:$0x1] }
  0x45   : > { %v1534_v29 = vrot.slane %v1533_v19, 4  ;;  %v1557_v33 = vrot.slane %v1555_v26, 4  ;;  %v1583_v23 = vshrl.u32 %v1990_v36, 16  ;;  %v2248_v15 = vld [vmem:[%s2344_s13 + $0x20] ss:$8 sps:$4 sm:$0xff]   ;;  %v1586_v48 = vshll.u32 %v1990_v36, 16 }
  0x46   : > { %2124 = vmatmul.mubr.msk.bf16.vlgmr.msra.gmra.mrb[0].mxu0 %vm363_vm1, %v2241_v35  ;;  %v1548_v1 = vrot.slane %v1547_v25, 4  ;;  %v1572_v35 = vshll.u32 %v1988_v21, 16  ;;  %v1566_v37 = vrot.slane %v1564_v30, 5  ;;  %v1571_v38 = vrot.slane %v1569_v31, 4  ;;  %v2249_v8 = vld [vmem:[%s2344_s13 + $0x30] ss:$8 sps:$4 sm:$0xff]  }
  0x47   : > { %2132 = vmatpush3.bf16.msra.mxu0 %v1637_v34  ;;  %2127 = vmatprep.mubr.msk.bf16.mxu0 %vm363_vm1, %v2244_v39  ;;  %v1560_v34 = vrot.slane %v1558_v27, 5  ;;  %v1578_v39 = vshll.u32 %v1989_v22, 16  ;;  %v1592_v49 = vshll.u32 %v1991_v16, 16  ;;  %v1585_v51 = vrot.slane %v1583_v23, 4 }
  0x48   : > { %v1553_v40 = vsel %vm2393_vm4, %v1548_v1, %v1552_v14  ;;  %v1574_v42 = vrot.slane %v1572_v35, 5  ;;  %v1600_v54 = vshll.u32 %v1992_v43, 16  ;;  %v1606_v55 = vshll.u32 %v1993_v45, 16 }
  0x49   : > { %v1561_v41 = vor.u32 %v1560_v34, %v1557_v33  ;;  %v1580_v47 = vrot.slane %v1578_v39, 5  ;;  %v1594_v60 = vrot.slane %v1592_v49, 5 }
  0x4a   : > { %2084 = vmatmul.mubr.msk.bf16.vlgmr.msra.gmra.mrb[0].mxu1 %vm363_vm1, %v2243_v52  ;;  %v1575_v50 = vor.u32 %v1574_v42, %v1571_v38  ;;  %v1597_v52 = vshrl.u32 %v1992_v43, 16  ;;  %v1602_v61 = vrot.slane %v1600_v54, 5  ;;  %v1608_v4 = vrot.slane %v1606_v55, 5 }
  0x4b   : > { %2142 = vmatpush3.bf16.msra.mxu1 %v2315_v3  ;;  %2087 = vmatprep.mubr.msk.bf16.mxu1 %vm363_vm1, %v2246_v5  ;;  %v1539_v3 = vsel %vm2393_vm4, %v1534_v29, %v1538_v9  ;;  %v1562_v10 = vrot.slane %v1561_v41, 4 }
  0x4c   : > { %v1996_v46 = vcombine.low %v1539_v3, %v1553_v40  ;;  %v1576_v57 = vrot.slane %v1575_v50, 4  ;;  %v1599_v58 = vrot.slane %v1597_v52, 4 }
  0x4d   : > { %v1567_v56 = vsel %vm2393_vm4, %v1562_v10, %v1566_v37 }
  0x4e   : > { %2128 = vmatmul.mubr.msk.bf16.gmra.mrb[4].mxu0 %vm363_vm1, %v2245_v53  ;;  %v1588_v53 = vrot.slane %v1586_v48, 5  ;;  %v1581_v62 = vsel %vm2393_vm4, %v1576_v57, %v1580_v47  ;;  %v1603_v2 = vor.u32 %v1602_v61, %v1599_v58 }
  0x4f   : > { %2133 = vmatprep.mubr.msk.bf16.mxu0 %vm363_vm1, %v1995_v28  ;;  %v1997_v63 = vcombine.low %v1567_v56, %v1581_v62 }
  0x50   : > { %v1589_v59 = vor.u32 %v1588_v53, %v1585_v51  ;;  %v1604_v6 = vrot.slane %v1603_v2, 4 }
  0x52   : > { %2088 = vmatmul.mubr.msk.bf16.gmra.mrb[4].mxu1 %vm363_vm1, %v2247_v32  ;;  %v1590_v0 = vrot.slane %v1589_v59, 4  ;;  %v1609_v7 = vsel %vm2393_vm4, %v1604_v6, %v1608_v4 }
  0x53   : > { %2097 = vmatprep.mubr.msk.bf16.mxu1 %vm363_vm1, %v2248_v15 }
  0x54   : > { %v1595_v5 = vsel %vm2393_vm4, %v1590_v0, %v1594_v60 }
  0x55   : > { %v1998_v9 = vcombine.low %v1595_v5, %v1609_v7 }
  0x56   : > { %2134 = vmatmul.mubr.msk.bf16.vlgmr.msra.gmra.mrb[0].mxu0 %vm363_vm1, %v1996_v46 }
  0x57   : > { %2137 = vmatprep.mubr.msk.bf16.mxu0 %vm363_vm1, %v1997_v63 }
  0x5e   : > { %2138 = vmatmul.mubr.msk.bf16.gmra.mrb[4].mxu0 %vm363_vm1, %v1998_v9  ;;  %2098 = vmatmul.mubr.msk.bf16.vlgmr.msra.gmra.mrb[4].mxu1 %vm363_vm1, %v2249_v8 }
 0x11d   : > { %v2085_v11 = vpop.f32.mrb[0].mxu1 }
 0x11e   : > { %v857_v12 = vpop.f32.mrb[1].mxu1 }
 0x11f   : > { %v2086_v13 = vpop.f32.mrb[2].mxu1 }
 0x120   : > { %v860_v14 = vpop.f32.mrb[3].mxu1 }
 0x129   : > { %v2135_v44 = vpop.f32.mrb[0].mxu0 }
 0x12a   : > { %v2143_v17 = vadd.f32 %v2135_v44, %v2085_v11  ;;  %v1673_v18 = vpop.f32.mrb[1].mxu0 }
 0x12b   : > { %v2144_v19 = vadd.f32 %v1673_v18, %v857_v12  ;;  %v2136_v20 = vpop.f32.mrb[2].mxu0 }
 0x12c   : > { %1714 = vst [vmem:[%s2569_s11 + $0x10] sm:$0xff] %v2143_v17  ;;  %v2145_v21 = vadd.f32 %v2136_v20, %v2086_v13  ;;  %v1676_v22 = vpop.f32.mrb[3].mxu0  ;;  %v1735_v28 = vmul.f32 %v2143_v17, %v2143_v17 }
 0x12d   : > { %1712 = vst [vmem:[%s2569_s11] sm:$0xff] %v2144_v19  ;;  %v2146_v24 = vadd.f32 %v1676_v22, %v860_v14  ;;  %v1733_v25 = vmul.f32 %v2144_v19, %v2144_v19 }
 0x12e   : > { %1715 = vst [vmem:[%s2569_s11 + $0x18] sm:$0xff] %v2145_v21  ;;  %v1736_v31 = vmul.f32 %v2145_v21, %v2145_v21 }
 0x12f   : > { %1713 = vst [vmem:[%s2569_s11 + $0x8] sm:$0xff] %v2146_v24  ;;  %v1720_v26 = vadd.f32 %v2146_v24, %v2144_v19  ;;  %v1734_v27 = vmul.f32 %v2146_v24, %v2146_v24 }
 0x131   : > { %v1721_v29 = vadd.f32 %v2143_v17, %v1720_v26  ;;  %v1741_v30 = vadd.f32 %v1734_v27, %v1733_v25  ;;  %v2139_v1 = vpop.f32.mrb[4].mxu0  ;;  %v2099_v35 = vpop.f32.mrb[4].mxu1 }
 0x132   : > { %v1689_v34 = vpop.f32.mrb[5].mxu0  ;;  %v2147_v37 = vadd.f32 %v2139_v1, %v2099_v35  ;;  %v991_v38 = vpop.f32.mrb[5].mxu1 }
 0x133   : > { %v1742_v32 = vadd.f32 %v1741_v30, %v1735_v28  ;;  %v1722_v33 = vadd.f32 %v2145_v21, %v1721_v29  ;;  %v2140_v3 = vpop.f32.mrb[6].mxu0  ;;  %v2148_v16 = vadd.f32 %v1689_v34, %v991_v38  ;;  %v2100_v40 = vpop.f32.mrb[6].mxu1 }
 0x134   : > { %v1692_v39 = vpop.f32.mrb[7].mxu0  ;;  %1718 = vst [vmem:[%s2569_s11 + $0x30] sm:$0xff] %v2147_v37  ;;  %v2149_v41 = vadd.f32 %v2140_v3, %v2100_v40  ;;  %v994_v42 = vpop.f32.mrb[7].mxu1  ;;  %v1739_v48 = vmul.f32 %v2147_v37, %v2147_v37 }
 0x135   : > { %v1743_v36 = vadd.f32 %v1742_v32, %v1736_v31  ;;  %1716 = vst [vmem:[%s2569_s11 + $0x20] sm:$0xff] %v2148_v16  ;;  %v1723_v43 = vadd.f32 %v2148_v16, %v1722_v33  ;;  %v1737_v45 = vmul.f32 %v2148_v16, %v2148_v16  ;;  %v2150_v23 = vadd.f32 %v1692_v39, %v994_v42 }
 0x136   : > { %1719 = vst [vmem:[%s2569_s11 + $0x38] sm:$0xff] %v2149_v41  ;;  %v1740_v50 = vmul.f32 %v2149_v41, %v2149_v41 }
 0x137   : > { %v1744_v46 = vadd.f32 %v1743_v36, %v1737_v45  ;;  %1717 = vst [vmem:[%s2569_s11 + $0x28] sm:$0xff] %v2150_v23  ;;  %v1724_v15 = vadd.f32 %v2150_v23, %v1723_v43  ;;  %v1738_v47 = vmul.f32 %v2150_v23, %v2150_v23 }
 0x139   : > { %v1725_v49 = vadd.f32 %v2147_v37, %v1724_v15  ;;  %v1745_v10 = vadd.f32 %v1744_v46, %v1738_v47 }
 0x13b   : > { %v1726_v51 = vadd.f32 %v2149_v41, %v1725_v49  ;;  %v1746_v52 = vadd.f32 %v1745_v10, %v1739_v48 }
 0x13d   : > { %v1727_v53 = vrot.slane %v1726_v51, 4  ;;  %v1747_v54 = vadd.f32 %v1746_v52, %v1740_v50 }
 0x13f   : > { %v1728_v55 = vadd.f32 %v1727_v53, %v1726_v51  ;;  %v1748_v56 = vrot.slane %v1747_v54, 4 }
 0x141   : > { %v1729_v57 = vrot.slane %v1728_v55, 2  ;;  %v1749_v58 = vadd.f32 %v1748_v56, %v1747_v54 }
 0x143   : > { %v1730_v59 = vadd.f32 %v1729_v57, %v1728_v55  ;;  %v1750_v60 = vrot.slane %v1749_v58, 2 }
 0x145   : > { %v1731_v61 = vrot.slane %v1730_v59, 1  ;;  %v1751_v62 = vadd.f32 %v1750_v60, %v1749_v58 }
 0x147   : > { %v1752_v63 = vrot.slane %v1751_v62, 1  ;;  %v1732_v0 = vadd.f32 %v1731_v61, %v1730_v59 }
 0x149   : > { %v1753_v2 = vadd.f32 %v1752_v63, %v1751_v62 }
 0x14b   : > { %v1755_v4 = vsel %vm1754_vm5, %v1732_v0, %v1753_v2 }
 0x14c   : > { %1756 = vst [vmem:[%s322_s15] sm:$0x3] %v1755_v4 }
 0x14d PF: > { %s17_s21 = sadd.s32 1, %s2256_s21  }
 0x14e   : > { %p14_p4 = scmp.ge.s32.totalorder %s17_s21, 4  }
 0x150   :  { %16 = sbr.rel (!%p14_p4) target bundleno = 1 (0x1), region = 101 }

// kernel: resblock_forward.6
= control target key start
LH: loop header
LB: loop body
LE: loop exit
PB: predicated region body
PF: predicated region fallthrough
CT: control target
= control target key end

     0   :  { %s3144_s12 = smov 0   ;;  %s3717_s0 = inlined_call_operand.vmem [shape: bf16[2,10,10,128], index: 0, kind: input, shape index: {}]   ;;  %s3718_s1 = inlined_call_operand.vmem [shape: bf16[9,128,128], index: 1, kind: input, shape index: {}]   ;;  %s3719_s2 = inlined_call_operand.vmem [shape: f32[2,8,8,128], index: 2, kind: output, shape index: {0}]   ;;  %s3720_s3 = inlined_call_operand.vmem [shape: f32[2,2,128], index: 3, kind: output, shape index: {1}]  }
   0x1 LB: > { %s2283_s13 = sadd.s32 4294967295, %s3122_s12   ;;  %p2287_p0 = scmp.ge.s32.totalorder %s3122_s12, 1  ;;  %s3122_s12 = sphi %s3144_s12, %s14_s12  }
   0x2   : > { %p140_p1 = scmp.lt.s32.totalorder %s3122_s12, 3 }
   0x4   : > { %p141_p2 = pnand %p2287_p0, %p140_p1 }
   0x5   : > { %v3032_v0 = vld [vmem:[%s3718_s1 + $0x40] sm:$0xff] (!%p141_p2)   ;;  %p168_p3 = scmp.lt.s32.totalorder (!%p141_p2), %s2283_s13, 1  ;;  %v3034_v2 = vld [vmem:[%s3718_s1 + $0x48] sm:$0xff] (!%p141_p2)   ;;  %v3036_v4 = vld [vmem:[%s3718_s1 + $0x50] sm:$0xff] (!%p141_p2)   ;;  %vm215_vm0 = vsmask.f32 (!%p141_p2), 3328 }
   0x6   : > { %144 = sbr.rel (%p141_p2) target bundleno = 419 (0x1a3), region = 28  ;;  %v3033_v1 = vld [vmem:[%s3718_s1 + $0x100] sm:$0xff] (!%p141_p2)   ;;  %2727 = vmatprep.subr.bf16.mxu1 (!%p141_p2), %v3032_v0  ;;  %v3035_v3 = vld [vmem:[%s3718_s1 + $0x108] sm:$0xff] (!%p141_p2)   ;;  %v3037_v5 = vld [vmem:[%s3718_s1 + $0x110] sm:$0xff] (!%p141_p2)   ;;  %vm216_vm1 = vsmask.f32 (!%p141_p2), 7440 }
   0x7   : > { %2823 = vmatprep.subr.bf16.mxu0 (!%p141_p2), %v3033_v1  ;;  %2728 = vmatpush3.bf16.msra.mxu1 (!%p141_p2), %v3032_v0  ;;  %v3038_v6 = vld [vmem:[%s3718_s1 + $0x58] sm:$0xff] (!%p141_p2)   ;;  %v3040_v8 = vld [vmem:[%s3718_s1 + $0x60] sm:$0xff] (!%p141_p2)   ;;  %v3042_v10 = vld [vmem:[%s3718_s1 + $0x68] sm:$0xff] (!%p141_p2)   ;;  %vm637_vm3 = vcmask (!%p141_p2), 1042432   ;;  %vm638_vm4 = vcmask (!%p141_p2), 1046532   ;;  %vm2194_vm6 = vcmask (!%p141_p2), 1040384  }
   0x8   : > { %2824 = vmatpush3.bf16.msra.mxu0 (!%p141_p2), %v3033_v1  ;;  %2729 = vmatprep.subr.bf16.mxu1 (!%p141_p2), %v3034_v2  ;;  %v3039_v7 = vld [vmem:[%s3718_s1 + $0x118] sm:$0xff] (!%p141_p2)   ;;  %v3041_v9 = vld [vmem:[%s3718_s1 + $0x120] sm:$0xff] (!%p141_p2)   ;;  %v3043_v14 = vld [vmem:[%s3718_s1 + $0x128] sm:$0xff] (!%p141_p2)  }
   0x9   : > { %2825 = vmatprep.subr.bf16.mxu0 (!%p141_p2), %v3035_v3  ;;  %v3044_v22 = vld [vmem:[%s3718_s1 + $0x70] sm:$0xff] (!%p141_p2)   ;;  %v3046_v37 = vld [vmem:[%s3718_s1 + $0x78] sm:$0xff] (!%p141_p2)   ;;  %vm3233_vm2 = vmor (!%p141_p2), %vm215_vm0, %vm216_vm1 }
   0xa   : > { %v3045_v23 = vld [vmem:[%s3718_s1 + $0x130] sm:$0xff] (!%p141_p2)   ;;  %v3047_v47 = vld [vmem:[%s3718_s1 + $0x138] sm:$0xff] (!%p141_p2)   ;;  %v3048_v63 = vld [vmem:[%s3718_s1] sm:$0xff] (!%p141_p2)  }
   0xb   : > { %2730 = vmatpush3.bf16.msra.mxu1 (!%p141_p2), %v3034_v2  ;;  %v3265_v1 = vld [vmem:[%s3718_s1 + $0x140] sm:$0xff] (!%p141_p2)   ;;  %vm3407_vm5 = vmor (!%p141_p2), %vm637_vm3, %vm638_vm4 }
   0xc   : > { %2826 = vmatpush3.bf16.msra.mxu0 (!%p141_p2), %v3035_v3  ;;  %2731 = vmatprep.subr.bf16.mxu1 (!%p141_p2), %v3036_v4  ;;  %v3112_v38 = vld [vmem:[%s3718_s1 + $0x220] sm:$0xff] (!%p141_p2)  }
   0xd   : > { %s3726_s13 = smov (!%p168_p3, %s2283_s13), 1  ;;  %2827 = vmatprep.subr.bf16.mxu0 %v3037_v5 }
   0xe   : > { %s3023_s30 = smul.u32 80, %s3726_s13  ;;  %s2291_s20 = sshll.u32 %s3726_s13, 1 }
   0xf   : > { %2732 = vmatpush3.bf16.msra.mxu1 %v3036_v4  ;;  %s181_s23 = scalar_lea.vmem %s3720_s3, %s2291_s20 }
  0x10   : > { %2828 = vmatpush3.bf16.msra.mxu0 %v3037_v5  ;;  %2733 = vmatprep.subr.bf16.mxu1 %v3038_v6  ;;  %s3188_s10 = scalar_lea.vmem %s3717_s0, %s3023_s30 }
  0x11   : > { %2829 = vmatprep.subr.bf16.mxu0 %v3039_v7  ;;  %v3194_v11 = vld [vmem:[%s3188_s10] sm:$0xf]  ;;  %v3197_v12 = vld [vmem:[%s3188_s10 + $0x8] sm:$0xf]  ;;  %v3200_v13 = vld [vmem:[%s3188_s10 + $0x4] sm:$0x1] }
  0x12   : > { %v3206_v15 = vld [vmem:[%s3188_s10 + $0xc] sm:$0x1]  ;;  %v219_v16 = vshrl.u32 %v3194_v11, 16  ;;  %v222_v17 = vshll.u32 %v3194_v11, 16  ;;  %v228_v18 = vshll.u32 %v3200_v13, 16  ;;  %v233_v19 = vshrl.u32 %v3197_v12, 16 }
  0x13   : > { %2734 = vmatpush3.bf16.msra.mxu1 %v3038_v6  ;;  %v236_v20 = vshll.u32 %v3197_v12, 16  ;;  %v242_v21 = vshll.u32 %v3206_v15, 16  ;;  %v2404_v30 = vld [vmem:[%s3188_s10 + $0x8] sm:$0xf]  ;;  %v3222_v31 = vld [vmem:[%s3188_s10 + $0xc] sm:$0x1] }
  0x14   : > { %2830 = vmatpush3.bf16.msra.mxu0 %v3039_v7  ;;  %2735 = vmatprep.subr.bf16.mxu1 %v3040_v8  ;;  %v221_v24 = vrot.slane %v219_v16, 4  ;;  %v224_v25 = vrot.slane %v222_v17, 5  ;;  %v230_v26 = vrot.slane %v228_v18, 5  ;;  %v235_v27 = vrot.slane %v233_v19, 4  ;;  %v2406_v33 = vld [vmem:[%s3188_s10 + $0x10] sm:$0xf] }
  0x15   : > { %2831 = vmatprep.subr.bf16.mxu0 %v3041_v9  ;;  %v238_v28 = vrot.slane %v236_v20, 5  ;;  %v244_v29 = vrot.slane %v242_v21, 5  ;;  %v3226_v34 = vld [vmem:[%s3188_s10 + $0x14] sm:$0x1]  ;;  %v1014_v35 = vshrl.u32 %v2404_v30, 16  ;;  %v1017_v36 = vshll.u32 %v2404_v30, 16 }
  0x16   : > { %v225_v32 = vor.u32 %v224_v25, %v221_v24  ;;  %v1023_v40 = vshll.u32 %v3222_v31, 16  ;;  %v1028_v41 = vshrl.u32 %v2406_v33, 16  ;;  %v1031_v42 = vshll.u32 %v2406_v33, 16  ;;  %v3243_v51 = vld [vmem:[%s3188_s10 + $0x10] sm:$0xf] }
  0x17   : > { %2736 = vmatpush3.bf16.msra.mxu1 %v3040_v8  ;;  %v239_v39 = vor.u32 %v238_v28, %v235_v27  ;;  %v1016_v44 = vrot.slane %v1014_v35, 4  ;;  %v1019_v45 = vrot.slane %v1017_v36, 5  ;;  %v1037_v46 = vshll.u32 %v3226_v34, 16  ;;  %v3248_v55 = vld [vmem:[%s3188_s10 + $0x18] sm:$0xf] }
  0x18   : > { %2832 = vmatpush3.bf16.msra.mxu0 %v3041_v9  ;;  %2737 = vmatprep.subr.bf16.mxu1 %v3042_v10  ;;  %v226_v43 = vrot.slane %v225_v32, 4  ;;  %v1030_v49 = vrot.slane %v1028_v41, 4  ;;  %v1033_v50 = vrot.slane %v1031_v42, 5  ;;  %v1025_v54 = vrot.slane %v1023_v40, 5  ;;  %v3251_v56 = vld [vmem:[%s3188_s10 + $0x14] sm:$0x1] }
  0x19   : > { %2833 = vmatprep.subr.bf16.mxu0 %v3043_v14  ;;  %v240_v48 = vrot.slane %v239_v39, 4  ;;  %v1020_v53 = vor.u32 %v1019_v45, %v1016_v44  ;;  %v1039_v59 = vrot.slane %v1037_v46, 5  ;;  %v3256_v60 = vld [vmem:[%s3188_s10 + $0x1c] sm:$0x1]  ;;  %v247_v61 = vshrl.u32 %v3243_v51, 16 }
  0x1a   : > { %v231_v52 = vsel %vm3233_vm2, %v226_v43, %v230_v26  ;;  %v1034_v58 = vor.u32 %v1033_v50, %v1030_v49  ;;  %v250_v2 = vshll.u32 %v3243_v51, 16  ;;  %v256_v3 = vshll.u32 %v3251_v56, 16  ;;  %v2408_v8 = vld [vmem:[%s3188_s10 + $0x18] sm:$0xf]  ;;  %v3276_v16 = vld [vmem:[%s3188_s10 + $0x1c] sm:$0x1] }
  0x1b   : > { %2738 = vmatpush3.bf16.msra.mxu1 %v3042_v10  ;;  %v245_v57 = vsel %vm3233_vm2, %v240_v48, %v244_v29  ;;  %v1021_v0 = vrot.slane %v1020_v53, 4  ;;  %v249_v5 = vrot.slane %v247_v61, 4  ;;  %v261_v6 = vshrl.u32 %v3248_v55, 16  ;;  %v2410_v17 = vld [vmem:[%s3188_s10 + $0x20] sm:$0xf]  ;;  %v3050_v43 = vld [vmem:[%s3718_s1 + $0x8] sm:$0xff]  }
  0x1c   : > { %2834 = vmatpush3.bf16.msra.mxu0 %v3043_v14  ;;  %2739 = vmatprep.subr.bf16.mxu1 %v3044_v22  ;;  %v2308_v62 = vcombine.low %v231_v52, %v245_v57  ;;  %v1035_v4 = vrot.slane %v1034_v58, 4  ;;  %v264_v7 = vshll.u32 %v3248_v55, 16  ;;  %v252_v10 = vrot.slane %v250_v2, 5  ;;  %v3282_v21 = vld [vmem:[%s3188_s10 + $0x24] sm:$0x1] }
  0x1d   : > { %2835 = vmatprep.subr.bf16.mxu0 %v3045_v23  ;;  %v1026_v9 = vsel %vm3233_vm2, %v1021_v0, %v1025_v54  ;;  %v270_v14 = vshll.u32 %v3256_v60, 16  ;;  %v263_v19 = vrot.slane %v261_v6, 4  ;;  %v258_v24 = vrot.slane %v256_v3, 5  ;;  %v3051_v54 = vld [vmem:[%s3718_s1 + $0x148] sm:$0xff]   ;;  %v3312_v0 = vld [vmem:[%s3188_s10 + $0x24] sm:$0x1] }
  0x1e   : > { %2743 = vmatprep.mubr.bf16.mxu1 %v2308_v62  ;;  %v1040_v18 = vsel %vm3233_vm2, %v1035_v4, %v1039_v59  ;;  %v266_v20 = vrot.slane %v264_v7, 5  ;;  %v1042_v27 = vshrl.u32 %v2408_v8, 16  ;;  %v1045_v28 = vshll.u32 %v2408_v8, 16  ;;  %v3052_v59 = vld [vmem:[%s3718_s1 + $0x10] sm:$0xff]   ;;  %v3306_v62 = vld [vmem:[%s3188_s10 + $0x20] sm:$0xf] }
  0x1f   : > { %2740 = vmatpush3.bf16.msra.mxu1 %v3044_v22  ;;  %v2436_v22 = vcombine.low %v1026_v9, %v1040_v18  ;;  %v272_v25 = vrot.slane %v270_v14, 5  ;;  %v1051_v29 = vshll.u32 %v3276_v16, 16  ;;  %v1056_v32 = vshrl.u32 %v2410_v17, 16  ;;  %v3315_v2 = vld [vmem:[%s3188_s10 + $0x2c] sm:$0x1]  ;;  %v3053_v9 = vld [vmem:[%s3718_s1 + $0x150] sm:$0xff]  }
  0x20   : > { %2836 = vmatpush3.bf16.msra.mxu0 %v3045_v23  ;;  %2741 = vmatprep.subr.bf16.mxu1 %v3046_v37  ;;  %v253_v23 = vor.u32 %v252_v10, %v249_v5  ;;  %v267_v26 = vor.u32 %v266_v20, %v263_v19  ;;  %v1059_v33 = vshll.u32 %v2410_v17, 16  ;;  %v1065_v35 = vshll.u32 %v3282_v21, 16  ;;  %v3054_v10 = vld [vmem:[%s3718_s1 + $0x18] sm:$0xff]  }
  0x21   : > { %2837 = vmatprep.subr.bf16.mxu0 %v3047_v47  ;;  %2839 = vmatprep.mubr.bf16.mxu0 %v2436_v22  ;;  %v1047_v39 = vrot.slane %v1045_v28, 5  ;;  %v1058_v41 = vrot.slane %v1056_v32, 4  ;;  %v1053_v46 = vrot.slane %v1051_v29, 5  ;;  %v1305_v57 = vrot.slane %v3222_v31, 5  ;;  %v3055_v29 = vld [vmem:[%s3718_s1 + $0x158] sm:$0xff]  }
  0x22   : > { %v254_v30 = vrot.slane %v253_v23, 4  ;;  %v268_v36 = vrot.slane %v267_v26, 4  ;;  %v1061_v42 = vrot.slane %v1059_v33, 5  ;;  %v275_v3 = vshrl.u32 %v3306_v62, 16  ;;  %v2412_v23 = vld [vmem:[%s3188_s10 + $0x28] sm:$0xf] }
  0x23   : > { %2742 = vmatpush3.bf16.msra.mxu1 %v3046_v37  ;;  %v1044_v37 = vrot.slane %v1042_v27, 4  ;;  %v278_v4 = vshll.u32 %v3306_v62, 16  ;;  %v284_v5 = vshll.u32 %v3312_v0, 16  ;;  %v298_v8 = vshll.u32 %v3315_v2, 16  ;;  %v3336_v26 = vld [vmem:[%s3188_s10 + $0x34] sm:$0x1] }
  0x24   : > { %2838 = vmatpush3.bf16.msra.mxu0 %v3047_v47  ;;  %2751 = vmatprep.subr.bf16.mxu1 %v3048_v63  ;;  %v259_v40 = vsel %vm3233_vm2, %v254_v30, %v258_v24  ;;  %v273_v44 = vsel %vm3233_vm2, %v268_v36, %v272_v25  ;;  %v1067_v47 = vrot.slane %v1065_v35, 5  ;;  %v1062_v49 = vor.u32 %v1061_v42, %v1058_v41  ;;  %v3332_v24 = vld [vmem:[%s3188_s10 + $0x2c] sm:$0x1]  ;;  %v2414_v25 = vld [vmem:[%s3188_s10 + $0x30] sm:$0xf]  ;;  %v3056_v30 = vld [vmem:[%s3718_s1 + $0x20] sm:$0xff]  }
  0x25   : > { %2847 = vmatprep.subr.bf16.mxu0 %v3265_v1  ;;  %v1048_v45 = vor.u32 %v1047_v39, %v1044_v37  ;;  %v2309_v48 = vcombine.low %v259_v40, %v273_v44  ;;  %v277_v14 = vrot.slane %v275_v3, 4  ;;  %v280_v17 = vrot.slane %v278_v4, 5 }
  0x26   : > { %v1063_v52 = vrot.slane %v1062_v49, 4  ;;  %v286_v18 = vrot.slane %v284_v5, 5  ;;  %v300_v22 = vrot.slane %v298_v8, 5  ;;  %v1070_v27 = vshrl.u32 %v2412_v23, 16  ;;  %v2416_v5 = vld [vmem:[%s3188_s10 + $0x38] sm:$0xf] }
  0x27   : > { %v1049_v50 = vrot.slane %v1048_v45, 4  ;;  %2744 = vmatmul.mubr.bf16.vlgmr.msra.gmra.mrb[0].mxu1 %v2309_v48  ;;  %v1073_v28 = vshll.u32 %v2412_v23, 16  ;;  %v1079_v33 = vshll.u32 %v3332_v24, 16  ;;  %v1084_v35 = vshrl.u32 %v2414_v25, 16 }
  0x28   : > { %2752 = vmatpush3.bf16.msra.mxu1 %v3048_v63  ;;  %v1068_v58 = vsel %vm3233_vm2, %v1063_v52, %v1067_v47  ;;  %v3309_v63 = vld [vmem:[%s3188_s10 + $0x28] sm:$0xf]  ;;  %v1087_v36 = vshll.u32 %v2414_v25, 16  ;;  %v1072_v39 = vrot.slane %v1070_v27, 4  ;;  %v1093_v41 = vshll.u32 %v3336_v26, 16 }
  0x29   : > { %v1054_v53 = vsel %vm3233_vm2, %v1049_v50, %v1053_v46  ;;  %2753 = vmatprep.subr.bf16.mxu1 %v3050_v43  ;;  %v289_v6 = vshrl.u32 %v3309_v63, 16  ;;  %v292_v7 = vshll.u32 %v3309_v63, 16  ;;  %v1075_v40 = vrot.slane %v1073_v28, 5  ;;  %v3347_v46 = vld [vmem:[%s3188_s10 + $0x30] sm:$0xf] }
  0x2a   : > { %v2437_v61 = vcombine.low %v1054_v53, %v1068_v58  ;;  %v1086_v44 = vrot.slane %v1084_v35, 4  ;;  %v1089_v45 = vrot.slane %v1087_v36, 5  ;;  %v1095_v49 = vrot.slane %v1093_v41, 5  ;;  %v3352_v50 = vld [vmem:[%s3188_s10 + $0x38] sm:$0xf] }
  0x2b   : > { %v291_v19 = vrot.slane %v289_v6, 4  ;;  %v294_v20 = vrot.slane %v292_v7, 5  ;;  %v1076_v48 = vor.u32 %v1075_v40, %v1072_v39  ;;  %v3355_v52 = vld [vmem:[%s3188_s10 + $0x34] sm:$0x1]  ;;  %v303_v53 = vshrl.u32 %v3347_v46, 16  ;;  %v3058_v6 = vld [vmem:[%s3718_s1 + $0x28] sm:$0xff]  }
  0x2c   : > { %2840 = vmatmul.mubr.bf16.vlgmr.msra.gmra.mrb[0].mxu0 %v2437_v61  ;;  %2754 = vmatpush3.bf16.msra.mxu1 %v3050_v43  ;;  %v1081_v43 = vrot.slane %v1079_v33, 5  ;;  %v3364_v61 = vld [vmem:[%s3188_s10 + $0x3c] sm:$0x1]  ;;  %v306_v3 = vshll.u32 %v3347_v46, 16  ;;  %v312_v4 = vshll.u32 %v3355_v52, 16  ;;  %v1098_v28 = vshrl.u32 %v2416_v5, 16 }
  0x2d   : > { %2848 = vmatpush3.bf16.msra.mxu0 %v3265_v1  ;;  %2755 = vmatprep.subr.bf16.mxu1 %v3052_v59  ;;  %v281_v1 = vor.u32 %v280_v17, %v277_v14  ;;  %v295_v32 = vor.u32 %v294_v20, %v291_v19  ;;  %v1077_v8 = vrot.slane %v1076_v48, 4  ;;  %v317_v14 = vshrl.u32 %v3352_v50, 16  ;;  %v3374_v17 = vld [vmem:[%s3188_s10 + $0x3c] sm:$0x1]  ;;  %v3382_v27 = vld [vmem:[%s3188_s10 + $0x44] sm:$0x1] }
  0x2e   : > { %2849 = vmatprep.subr.bf16.mxu0 %v3051_v54  ;;  %v308_v19 = vrot.slane %v306_v3, 5  ;;  %v314_v20 = vrot.slane %v312_v4, 5  ;;  %v326_v25 = vshll.u32 %v3364_v61, 16  ;;  %v1101_v36 = vshll.u32 %v2416_v5, 16 }
  0x2f   : > { %v282_v37 = vrot.slane %v281_v1, 4  ;;  %v296_v42 = vrot.slane %v295_v32, 4  ;;  %v1082_v23 = vsel %vm3233_vm2, %v1077_v8, %v1081_v43  ;;  %v319_v1 = vrot.slane %v317_v14, 4 }
  0x30   : > { %2756 = vmatpush3.bf16.msra.mxu1 %v3052_v59  ;;  %v1090_v59 = vor.u32 %v1089_v45, %v1086_v44  ;;  %v328_v40 = vrot.slane %v326_v25, 5  ;;  %v1100_v41 = vrot.slane %v1098_v28, 4  ;;  %v1103_v45 = vrot.slane %v1101_v36, 5  ;;  %v2450_v25 = vld [vmem:[%s3188_s10 + $0x18] sm:$0xe] }
  0x31   : > { %2850 = vmatpush3.bf16.msra.mxu0 %v3051_v54  ;;  %2757 = vmatprep.subr.bf16.mxu1 %v3054_v10  ;;  %v287_v47 = vsel %vm3233_vm2, %v282_v37, %v286_v18  ;;  %v3057_v54 = vld [vmem:[%s3718_s1 + $0x160] sm:$0xff]   ;;  %v301_v58 = vsel %vm3233_vm2, %v296_v42, %v300_v22  ;;  %v320_v22 = vshll.u32 %v3352_v50, 16  ;;  %v3060_v37 = vld [vmem:[%s3718_s1 + $0x30] sm:$0xff]   ;;  %v1107_v42 = vshll.u32 %v3374_v17, 16  ;;  %v3063_v28 = vld [vmem:[%s3718_s1 + $0x178] sm:$0xff]  }
  0x32   : > { %2851 = vmatprep.subr.bf16.mxu0 %v3053_v9  ;;  %v2310_v7 = vcombine.low %v287_v47, %v301_v58  ;;  %v1091_v18 = vrot.slane %v1090_v59, 4  ;;  %v1309_v47 = vrot.slane %v3226_v34, 5  ;;  %v1313_v48 = vrot.slane %v3276_v16, 5  ;;  %v3061_v58 = vld [vmem:[%s3718_s1 + $0x170] sm:$0xff]  }
  0x33   : > { %v322_v35 = vrot.slane %v320_v22, 5  ;;  %v1104_v4 = vor.u32 %v1103_v45, %v1100_v41  ;;  %v1109_v34 = vrot.slane %v1107_v42, 5  ;;  %v1317_v22 = vrot.slane %v3282_v21, 5  ;;  %v3066_v41 = vld [vmem:[%s3718_s1 + $0x180] sm:$0xff]  }
  0x34   : > { %2758 = vmatpush3.bf16.msra.mxu1 %v3054_v10  ;;  %v305_v10 = vrot.slane %v303_v53, 4  ;;  %2747 = vmatprep.mubr.bf16.mxu1 %v2310_v7  ;;  %v1096_v32 = vsel %vm3233_vm2, %v1091_v18, %v1095_v49  ;;  %v1121_v53 = vshll.u32 %v3382_v27, 16  ;;  %v2448_v7 = vld [vmem:[%s3188_s10 + $0x8] sm:$0xe]  ;;  %v2458_v36 = vrot.slane %v2450_v25, 9 }
  0x35   : > { %2852 = vmatpush3.bf16.msra.mxu0 %v3053_v9  ;;  %2759 = vmatprep.subr.bf16.mxu1 %v3056_v30  ;;  %v2418_v9 = vld [vmem:[%s3188_s10 + $0x40] sm:$0xf]  ;;  %v2438_v39 = vcombine.low %v1082_v23, %v1096_v32  ;;  %v323_v44 = vor.u32 %v322_v35, %v319_v1  ;;  %v2456_v14 = vrot.slane %v2448_v7, 9  ;;  %v1105_v18 = vrot.slane %v1104_v4, 4 }
  0x36   : > { %2853 = vmatprep.subr.bf16.mxu0 %v3055_v29  ;;  %v309_v33 = vor.u32 %v308_v19, %v305_v10  ;;  %v1115_v49 = vshll.u32 %v2418_v9, 16  ;;  %v2449_v10 = vld [vmem:[%s3188_s10 + $0x10] sm:$0xe]  ;;  %v2320_v19 = vcombine.low %v3194_v11, %v3197_v12  ;;  %v1123_v1 = vrot.slane %v1121_v53, 5  ;;  %v2451_v12 = vld [vmem:[%s3188_s10 + $0x20] sm:$0xe] }
  0x37   : > { %2843 = vmatprep.mubr.bf16.mxu0 %v2438_v39  ;;  %v324_v3 = vrot.slane %v323_v44, 4  ;;  %v1306_v32 = vsel %vm3407_vm5, %v2456_v14, %v1305_v57  ;;  %v1110_v21 = vsel %vm3233_vm2, %v1105_v18, %v1109_v34  ;;  %v3065_v35 = vld [vmem:[%s3718_s1 + $0x80] sm:$0xff]   ;;  %v1314_v42 = vsel %vm3407_vm5, %v2458_v36, %v1313_v48  ;;  %v3070_v44 = vld [vmem:[%s3718_s1 + $0x90] sm:$0xff]  }
  0x38   : > { %2760 = vmatpush3.bf16.msra.mxu1 %v3056_v30  ;;  %v3059_v30 = vld [vmem:[%s3718_s1 + $0x168] sm:$0xff]   ;;  %v310_v43 = vrot.slane %v309_v33, 4  ;;  %v1117_v16 = vrot.slane %v1115_v49, 5  ;;  %v1321_v45 = vrot.slane %v3332_v24, 5  ;;  %v1329_v53 = vrot.slane %v3374_v17, 5  ;;  %v3074_v18 = vld [vmem:[%s3718_s1 + $0xa0] sm:$0xff]  }
  0x39   : > { %2854 = vmatpush3.bf16.msra.mxu0 %v3055_v29  ;;  %2761 = vmatprep.subr.bf16.mxu1 %v3058_v6  ;;  %v1112_v29 = vshrl.u32 %v2418_v9, 16  ;;  %v1333_v24 = vrot.slane %v3382_v27, 5  ;;  %v646_v34 = vrot.slane %v3206_v15, 5  ;;  %v650_v17 = vrot.slane %v3251_v56, 5  ;;  %v614_v15 = vld [vmem:[%s3188_s10 + $0x8] sm:$0xe] }
  0x3a   : > { %2855 = vmatprep.subr.bf16.mxu0 %v3057_v54  ;;  %v315_v59 = vsel %vm3233_vm2, %v310_v43, %v314_v20  ;;  %v2457_v20 = vrot.slane %v2449_v10, 9  ;;  %v3068_v43 = vld [vmem:[%s3718_s1 + $0x88] sm:$0xff]   ;;  %v3071_v10 = vld [vmem:[%s3718_s1 + $0x190] sm:$0xff]   ;;  %v2333_v14 = vrot.slane %v614_v15, 9  ;;  %v658_v36 = vrot.slane %v3312_v0, 5  ;;  %v3084_v0 = vld [vmem:[%s3718_s1 + $0xc0] sm:$0xff]  }
  0x3b   : > { %v1114_v5 = vrot.slane %v1112_v29, 4  ;;  %v1325_v29 = vrot.slane %v3336_v26, 5  ;;  %v2323_v26 = vcombine.low %v3347_v46, %v3352_v50  ;;  %v3072_v46 = vld [vmem:[%s3718_s1 + $0x98] sm:$0xff]   ;;  %v3089_v15 = vld [vmem:[%s3718_s1 + $0x1c8] sm:$0xff]  }
  0x3c   : > { %2762 = vmatpush3.bf16.msra.mxu1 %v3058_v6  ;;  %v3062_v6 = vld [vmem:[%s3718_s1 + $0x38] sm:$0xff]   ;;  %v1310_v11 = vsel %vm3407_vm5, %v2457_v20, %v1309_v47 }
  0x3d   : > { %2856 = vmatpush3.bf16.msra.mxu0 %v3057_v54  ;;  %2763 = vmatprep.subr.bf16.mxu1 %v3060_v37  ;;  %v329_v54 = vsel %vm3233_vm2, %v324_v3, %v328_v40  ;;  %v1118_v23 = vor.u32 %v1117_v16, %v1114_v5  ;;  %v2480_v57 = vcombine.low %v1306_v32, %v1310_v11  ;;  %v613_v16 = vld [vmem:[%s3188_s10] sm:$0xe]  ;;  %v3073_v20 = vld [vmem:[%s3718_s1 + $0x198] sm:$0xff]  }
  0x3e   : > { %2857 = vmatprep.subr.bf16.mxu0 %v3059_v30  ;;  %v2311_v9 = vcombine.low %v315_v59, %v329_v54  ;;  %v2321_v40 = vcombine.low %v3243_v51, %v3248_v55  ;;  %v2322_v51 = vcombine.low %v3306_v62, %v3309_v63  ;;  %v642_v55 = vrot.slane %v3200_v13, 5  ;;  %v3069_v62 = vld [vmem:[%s3718_s1 + $0x188] sm:$0xff]   ;;  %v2453_v63 = vld [vmem:[%s3188_s10 + $0x30] sm:$0xe]  ;;  %v2455_v59 = vld [vmem:[%s3188_s10 + $0x40] sm:$0xe] }
  0x3f   : > { %v1119_v33 = vrot.slane %v1118_v23, 4  ;;  %v2452_v13 = vld [vmem:[%s3188_s10 + $0x28] sm:$0xe]  ;;  %v2461_v49 = vrot.slane %v2453_v63, 9  ;;  %v2463_v7 = vrot.slane %v2455_v59, 9  ;;  %v2332_v56 = vrot.slane %v613_v16, 9 }
  0x40   : > { %2764 = vmatpush3.bf16.msra.mxu1 %v3060_v37  ;;  %v2459_v37 = vrot.slane %v2451_v12, 9  ;;  %v2460_v48 = vrot.slane %v2452_v13, 9  ;;  %v654_v54 = vrot.slane %v3256_v60, 5  ;;  %v615_v23 = vld [vmem:[%s3188_s10 + $0x10] sm:$0xe] }
  0x41   : > { %2858 = vmatpush3.bf16.msra.mxu0 %v3059_v30  ;;  %2748 = vmatmul.mubr.bf16.gmra.mrb[4].mxu1 %v2311_v9  ;;  %v1124_v31 = vsel %vm3233_vm2, %v1119_v33, %v1123_v1  ;;  %v1326_v4 = vsel %vm3407_vm5, %v2461_v49, %v1325_v29  ;;  %v647_v9 = vsel %vm3407_vm5, %v2333_v14, %v646_v34  ;;  %v616_v60 = vld [vmem:[%s3188_s10 + $0x18] sm:$0xe]  ;;  %v2334_v25 = vrot.slane %v615_v23, 9  ;;  %v3076_v33 = vld [vmem:[%s3718_s1 + $0xa8] sm:$0xff]  }
  0x42   : > { %2859 = vmatprep.subr.bf16.mxu0 %v3061_v58  ;;  %2765 = vmatprep.subr.bf16.mxu1 %v3062_v6  ;;  %v2439_v39 = vcombine.low %v1110_v21, %v1124_v31  ;;  %v1318_v30 = vsel %vm3407_vm5, %v2459_v37, %v1317_v22  ;;  %v1322_v3 = vsel %vm3407_vm5, %v2460_v48, %v1321_v45  ;;  %v3085_v32 = vld [vmem:[%s3188_s10 + $0x10] ss:$8 sps:$4 sm:$0xff]   ;;  %v666_v29 = vrot.slane %v3355_v52, 5  ;;  %v3088_v49 = vld [vmem:[%s3718_s1 + $0xc8] sm:$0xff]  }
  0x43   : > { %2767 = vmatprep.mubr.bf16.mxu1 %v2320_v19  ;;  %v2481_v47 = vcombine.low %v1314_v42, %v1318_v30  ;;  %v2482_v27 = vcombine.low %v1322_v3, %v1326_v4  ;;  %v643_v19 = vsel %vm3407_vm5, %v2332_v56, %v642_v55  ;;  %v651_v11 = vsel %vm3407_vm5, %v2334_v25, %v650_v17  ;;  %v3079_v31 = vld [vmem:[%s3718_s1 + $0xb0] sm:$0xff]   ;;  %v3082_v37 = vld [vmem:[%s3718_s1 + $0xb8] sm:$0xff]   ;;  %v2534_v25 = vld [vmem:[%s3188_s10 + $0x28] sm:$0xf] }
  0x44   : > { %2766 = vmatpush3.bf16.msra.mxu1 %v3062_v6  ;;  %2844 = vmatmul.mubr.bf16.gmra.mrb[4].mxu0 %v2439_v39  ;;  %v1334_v6 = vsel %vm3407_vm5, %v2463_v7, %v1333_v24  ;;  %v2356_v1 = vcombine.low %v643_v19, %v647_v9  ;;  %v617_v39 = vld [vmem:[%s3188_s10 + $0x20] sm:$0xe]  ;;  %v3083_v45 = vld [vmem:[%s3718_s1 + $0x1b8] sm:$0xff]   ;;  %v3546_v24 = vld [vmem:[%s3188_s10 + $0x14] sm:$0x1] }
  0x45   : > { %2860 = vmatpush3.bf16.msra.mxu0 %v3061_v58  ;;  %2775 = vmatprep.subr.bf16.mxu1 %v3065_v35  ;;  %v2454_v58 = vld [vmem:[%s3188_s10 + $0x38] sm:$0xe]  ;;  %v2336_v42 = vrot.slane %v617_v39, 9  ;;  %v1686_v59 = vshll.u32 %v3546_v24, 16  ;;  %v3087_v7 = vld [vmem:[%s3188_s10 + $0x20] ss:$8 sps:$4 sm:$0xff]  }
  0x46   : > { %2861 = vmatprep.subr.bf16.mxu0 %v3063_v28  ;;  %2863 = vmatprep.mubr.bf16.mxu0 %v2480_v57  ;;  %v2462_v5 = vrot.slane %v2454_v58, 9  ;;  %v3077_v57 = vld [vmem:[%s3718_s1 + $0x1a8] sm:$0xff]   ;;  %v2530_v52 = vld [vmem:[%s3188_s10 + $0x18] sm:$0xf]  ;;  %v3091_v9 = vld [vmem:[%s3718_s1 + $0x1d0] sm:$0xff]  }
  0x47   : > { %v1691_v3 = vshrl.u32 %v2530_v52, 16  ;;  %v1694_v4 = vshll.u32 %v2530_v52, 16  ;;  %v3098_v56 = vld [vmem:[%s3188_s10 + $0x30] ss:$8 sps:$4 sm:$0xff]   ;;  %v3097_v52 = vld [vmem:[%s3718_s1 + $0x1e8] sm:$0xff]  }
  0x48   : > { %v1330_v50 = vsel %vm3407_vm5, %v2462_v5, %v1329_v53  ;;  %v2528_v53 = vld [vmem:[%s3188_s10 + $0x10] sm:$0xf]  ;;  %v3092_v23 = vld [vmem:[%s3718_s1 + $0xd8] sm:$0xff]  }
  0x49   : > { %2862 = vmatpush3.bf16.msra.mxu0 %v3063_v28  ;;  %2768 = vmatmul.mubr.bf16.vlgmr.msra.gmra.mrb[0].mxu1 %v2321_v40  ;;  %v2483_v22 = vcombine.low %v1330_v50, %v1334_v6  ;;  %v2335_v28 = vrot.slane %v616_v60, 9  ;;  %v618_v40 = vld [vmem:[%s3188_s10 + $0x28] sm:$0xe]  ;;  %v1680_v58 = vshll.u32 %v2528_v53, 16  ;;  %v1693_v50 = vrot.slane %v1691_v3, 4 }
  0x4a   : > { %2871 = vmatprep.subr.bf16.mxu0 %v3066_v41  ;;  %2776 = vmatpush3.bf16.msra.mxu1 %v3065_v35  ;;  %v3075_v35 = vld [vmem:[%s3718_s1 + $0x1a0] sm:$0xff]   ;;  %v2337_v30 = vrot.slane %v618_v40, 9  ;;  %v1696_v6 = vrot.slane %v1694_v4, 5 }
  0x4b   : > { %2777 = vmatprep.subr.bf16.mxu1 %v3068_v43  ;;  %2771 = vmatprep.mubr.bf16.mxu1 %v2322_v51  ;;  %v655_v12 = vsel %vm3407_vm5, %v2335_v28, %v654_v54  ;;  %v619_v51 = vld [vmem:[%s3188_s10 + $0x30] sm:$0xe]  ;;  %v1682_v16 = vrot.slane %v1680_v58, 5  ;;  %v1688_v54 = vrot.slane %v1686_v59, 5 }
  0x4c   : > { %2864 = vmatmul.mubr.bf16.vlgmr.msra.gmra.mrb[0].mxu0 %v2481_v47  ;;  %v2357_v21 = vcombine.low %v651_v11, %v655_v12  ;;  %v670_v47 = vrot.slane %v3364_v61, 5  ;;  %v2338_v63 = vrot.slane %v619_v51, 9  ;;  %v3550_v61 = vld [vmem:[%s3188_s10 + $0x1c] sm:$0x1]  ;;  %v3100_v11 = vld [vmem:[%s3188_s10 + $0x40] ss:$8 sps:$4 sm:$0xff]  }
  0x4d   : > { %2872 = vmatpush3.bf16.msra.mxu0 %v3066_v41  ;;  %2867 = vmatprep.mubr.bf16.mxu0 %v2482_v27  ;;  %v662_v41 = vrot.slane %v3315_v2, 5  ;;  %v659_v2 = vsel %vm3407_vm5, %v2336_v42, %v658_v36  ;;  %v1700_v5 = vshll.u32 %v3550_v61, 16  ;;  %v2536_v12 = vld [vmem:[%s3188_s10 + $0x30] sm:$0xf]  ;;  %v1722_v36 = vshll.u32 %v2534_v25, 16 }
  0x4e   : > { %2778 = vmatpush3.bf16.msra.mxu1 %v3068_v43  ;;  %2873 = vmatprep.subr.bf16.mxu0 %v3069_v62  ;;  %v3080_v43 = vld [vmem:[%s3718_s1 + $0x1b0] sm:$0xff]   ;;  %v667_v34 = vsel %vm3407_vm5, %v2338_v63, %v666_v29  ;;  %v1733_v40 = vshrl.u32 %v2536_v12, 16  ;;  %v3595_v51 = vld [vmem:[%s3188_s10 + $0x24] sm:$0x1] }
  0x4f   : > { %2779 = vmatprep.subr.bf16.mxu1 %v3070_v44  ;;  %v663_v55 = vsel %vm3407_vm5, %v2337_v30, %v662_v41  ;;  %v1702_v19 = vrot.slane %v1700_v5, 5  ;;  %v1736_v41 = vshll.u32 %v2536_v12, 16  ;;  %v1724_v29 = vrot.slane %v1722_v36, 5  ;;  %v2542_v5 = vld [vmem:[%s3188_s10 + $0x48] sm:$0xf]  ;;  %v3103_v12 = vld [vmem:[%s3718_s1 + $0x1f8] sm:$0xff]  }
  0x50   : > { %v2358_v13 = vcombine.low %v659_v2, %v663_v55  ;;  %v3598_v2 = vld [vmem:[%s3188_s10 + $0x2c] sm:$0x1]  ;;  %v1714_v58 = vshll.u32 %v3595_v51, 16 }
  0x51   : > { %2772 = vmatmul.mubr.bf16.gmra.mrb[4].mxu1 %v2323_v26  ;;  %2874 = vmatpush3.bf16.msra.mxu0 %v3069_v62  ;;  %v3086_v62 = vld [vmem:[%s3718_s1 + $0x1c0] sm:$0xff]   ;;  %v1677_v26 = vshrl.u32 %v2528_v53, 16  ;;  %v1738_v63 = vrot.slane %v1736_v41, 5  ;;  %v1728_v59 = vshll.u32 %v3598_v2, 16 }
  0x52   : > { %2780 = vmatpush3.bf16.msra.mxu1 %v3070_v44  ;;  %2875 = vmatprep.subr.bf16.mxu0 %v3071_v10  ;;  %v620_v44 = vld [vmem:[%s3188_s10 + $0x38] sm:$0xe]  ;;  %v2540_v53 = vld [vmem:[%s3188_s10 + $0x40] sm:$0xf] }
  0x53   : > { %2781 = vmatprep.subr.bf16.mxu1 %v3072_v46  ;;  %2791 = vmatprep.mubr.bf16.mxu1 %v2356_v1  ;;  %v2339_v48 = vrot.slane %v620_v44, 9  ;;  %v1679_v27 = vrot.slane %v1677_v26, 4  ;;  %v2532_v1 = vld [vmem:[%s3188_s10 + $0x20] sm:$0xf]  ;;  %v3099_v26 = vld [vmem:[%s3718_s1 + $0xf0] sm:$0xff]  }
  0x54   : > { %2868 = vmatmul.mubr.bf16.gmra.mrb[4].mxu0 %v2483_v22 }
  0x55   : > { %2876 = vmatpush3.bf16.msra.mxu0 %v3071_v10  ;;  %2887 = vmatprep.mubr.bf16.mxu0 %v3085_v32  ;;  %v671_v17 = vsel %vm3407_vm5, %v2339_v48, %v670_v47  ;;  %v1683_v10 = vor.u32 %v1682_v16, %v1679_v27  ;;  %v3601_v47 = vld [vmem:[%s3188_s10 + $0x34] sm:$0x1]  ;;  %v1764_v27 = vshll.u32 %v2540_v53, 16 }
  0x56   : > { %2782 = vmatpush3.bf16.msra.mxu1 %v3072_v46  ;;  %2877 = vmatprep.subr.bf16.mxu0 %v3073_v20  ;;  %v3090_v46 = vld [vmem:[%s3718_s1 + $0xd0] sm:$0xff]   ;;  %v2359_v14 = vcombine.low %v667_v34, %v671_v17  ;;  %v1742_v3 = vshll.u32 %v3601_v47, 16  ;;  %v1761_v17 = vshrl.u32 %v2540_v53, 16  ;;  %v2573_v53 = vld [vmem:[%s3188_s10 + $0x18] sm:$0xe] }
  0x57   : > { %2783 = vmatprep.subr.bf16.mxu1 %v3074_v18  ;;  %v1684_v22 = vrot.slane %v1683_v10, 4 }
  0x59   : > { %2878 = vmatpush3.bf16.msra.mxu0 %v3073_v20  ;;  %v3104_v20 = vld [vmem:[%s3188_s10 + $0x8] ss:$8 sps:$4 sm:$0xff]   ;;  %v1689_v28 = vsel %vm3233_vm2, %v1684_v22, %v1688_v54 }
  0x5a   : > { %2784 = vmatpush3.bf16.msra.mxu1 %v3074_v18  ;;  %2879 = vmatprep.subr.bf16.mxu0 %v3075_v35  ;;  %v1697_v18 = vor.u32 %v1696_v6, %v1693_v50  ;;  %v1775_v50 = vshrl.u32 %v2542_v5, 16  ;;  %v1778_v6 = vshll.u32 %v2542_v5, 16  ;;  %v2581_v5 = vrot.slane %v2573_v53, 9 }
  0x5b   : > { %2785 = vmatprep.subr.bf16.mxu1 %v3076_v33 }
  0x5c   : > { %v1698_v60 = vrot.slane %v1697_v18, 4  ;;  %v1730_v18 = vrot.slane %v1728_v59, 5  ;;  %v3109_v59 = vld [vmem:[%s3188_s10 + $0x38] ss:$8 sps:$4 sm:$0xff]  }
  0x5d   : > { %2880 = vmatpush3.bf16.msra.mxu0 %v3075_v35  ;;  %v1705_v35 = vshrl.u32 %v2532_v1, 16 }
  0x5e   : > { %2786 = vmatpush3.bf16.msra.mxu1 %v3076_v33  ;;  %2881 = vmatprep.subr.bf16.mxu0 %v3077_v57  ;;  %v1703_v32 = vsel %vm3233_vm2, %v1698_v60, %v1702_v19  ;;  %v3094_v33 = vld [vmem:[%s3718_s1 + $0xe0] sm:$0xff]   ;;  %v3628_v60 = vld [vmem:[%s3188_s10 + $0x4c] sm:$0x1] }
  0x5f   : > { %2787 = vmatprep.subr.bf16.mxu1 %v3079_v31  ;;  %v2560_v39 = vcombine.low %v1689_v28, %v1703_v32  ;;  %v1707_v55 = vrot.slane %v1705_v35, 4  ;;  %v1777_v28 = vrot.slane %v1775_v50, 4  ;;  %v1780_v32 = vrot.slane %v1778_v6, 5  ;;  %v3105_v35 = vld [vmem:[%s3188_s10 + $0x18] ss:$8 sps:$4 sm:$0xff]   ;;  %v3113_v6 = vld [vmem:[%s3718_s1 + $0x228] sm:$0xff]  }
  0x61   : > { %2882 = vmatpush3.bf16.msra.mxu0 %v3077_v57  ;;  %v1719_v57 = vshrl.u32 %v2534_v25, 16  ;;  %v1766_v25 = vrot.slane %v1764_v27, 5 }
  0x62   : > { %2788 = vmatpush3.bf16.msra.mxu1 %v3079_v31  ;;  %2883 = vmatprep.subr.bf16.mxu0 %v3080_v43  ;;  %v1708_v31 = vshll.u32 %v2532_v1, 16  ;;  %v1763_v1 = vrot.slane %v1761_v17, 4 }
  0x63   : > { %2789 = vmatprep.subr.bf16.mxu1 %v3082_v37 }
  0x64   : > { %v1710_v44 = vrot.slane %v1708_v31, 5 }
  0x65   : > { %2884 = vmatpush3.bf16.msra.mxu0 %v3080_v43  ;;  %v3095_v43 = vld [vmem:[%s3718_s1 + $0x1e0] sm:$0xff]  }
  0x66   : > { %2790 = vmatpush3.bf16.msra.mxu1 %v3082_v37  ;;  %2885 = vmatprep.subr.bf16.mxu0 %v3083_v45  ;;  %v3093_v37 = vld [vmem:[%s3718_s1 + $0x1d8] sm:$0xff]  }
  0x67   : > { %2799 = vmatprep.subr.bf16.mxu1 %v3084_v0 }
  0x69   : > { %2792 = vmatmul.mubr.bf16.vlgmr.msra.gmra.mrb[0].mxu1 %v2357_v21  ;;  %2886 = vmatpush3.bf16.msra.mxu0 %v3083_v45  ;;  %v2538_v21 = vld [vmem:[%s3188_s10 + $0x38] sm:$0xf]  ;;  %v1721_v45 = vrot.slane %v1719_v57, 4 }
  0x6a   : > { %2800 = vmatpush3.bf16.msra.mxu1 %v3084_v0  ;;  %2795 = vmatprep.mubr.bf16.mxu1 %v2358_v13  ;;  %v1747_v42 = vshrl.u32 %v2538_v21, 16  ;;  %v1750_v30 = vshll.u32 %v2538_v21, 16  ;;  %v3096_v0 = vld [vmem:[%s3718_s1 + $0xe8] sm:$0xff]   ;;  %v1735_v13 = vrot.slane %v1733_v40, 4  ;;  %v2576_v21 = vld [vmem:[%s3188_s10 + $0x30] sm:$0xe] }
  0x6b   : > { %2801 = vmatprep.subr.bf16.mxu1 %v3088_v49  ;;  %2895 = vmatprep.subr.bf16.mxu0 %v3086_v62  ;;  %v1725_v34 = vor.u32 %v1724_v29, %v1721_v45 }
  0x6c   : > { %2888 = vmatmul.mubr.bf16.vlgmr.msra.gmra.mrb[0].mxu0 %v3087_v7  ;;  %v1749_v48 = vrot.slane %v1747_v42, 4  ;;  %v1711_v7 = vor.u32 %v1710_v44, %v1707_v55  ;;  %v1739_v16 = vor.u32 %v1738_v63, %v1735_v13  ;;  %v1767_v42 = vor.u32 %v1766_v25, %v1763_v1 }
  0x6d   : > { %2896 = vmatpush3.bf16.msra.mxu0 %v3086_v62  ;;  %2891 = vmatprep.mubr.bf16.mxu0 %v3098_v56  ;;  %v3604_v62 = vld [vmem:[%s3188_s10 + $0x3c] sm:$0x1]  ;;  %v3101_v56 = vld [vmem:[%s3718_s1 + $0x1f0] sm:$0xff]   ;;  %v1726_v54 = vrot.slane %v1725_v34, 4  ;;  %v1984_v55 = vrot.slane %v3601_v47, 5  ;;  %v1976_v25 = vrot.slane %v3595_v51, 5 }
  0x6e   : > { %2802 = vmatpush3.bf16.msra.mxu1 %v3088_v49  ;;  %2897 = vmatprep.subr.bf16.mxu0 %v3089_v15  ;;  %v1752_v49 = vrot.slane %v1750_v30, 5  ;;  %v1756_v4 = vshll.u32 %v3604_v62, 16  ;;  %v1712_v10 = vrot.slane %v1711_v7, 4  ;;  %v1740_v19 = vrot.slane %v1739_v16, 4  ;;  %v3111_v16 = vld [vmem:[%s3718_s1 + $0x218] sm:$0xff]  }
  0x6f   : > { %2803 = vmatprep.subr.bf16.mxu1 %v3090_v46  ;;  %v1731_v57 = vsel %vm3233_vm2, %v1726_v54, %v1730_v18  ;;  %v1781_v30 = vor.u32 %v1780_v32, %v1777_v28  ;;  %v1988_v45 = vrot.slane %v3604_v62, 5  ;;  %v1972_v7 = vrot.slane %v3550_v61, 5 }
  0x70   : > { %v1996_v54 = vrot.slane %v3628_v60, 5  ;;  %v1980_v32 = vrot.slane %v3598_v2, 5 }
  0x71   : > { %2796 = vmatmul.mubr.bf16.gmra.mrb[4].mxu1 %v2359_v14  ;;  %2898 = vmatpush3.bf16.msra.mxu0 %v3089_v15  ;;  %v3102_v15 = vld [vmem:[%s3718_s1 + $0xf8] sm:$0xff]   ;;  %v1716_v14 = vrot.slane %v1714_v58, 5  ;;  %v3110_v58 = vld [vmem:[%s3718_s1 + $0x210] sm:$0xff]   ;;  %v1973_v61 = vsel %vm3407_vm5, %v2581_v5, %v1972_v7 }
  0x72   : > { %2804 = vmatpush3.bf16.msra.mxu1 %v3090_v46  ;;  %2815 = vmatprep.mubr.bf16.mxu1 %v3104_v20  ;;  %v1753_v46 = vor.u32 %v1752_v49, %v1749_v48  ;;  %v1744_v20 = vrot.slane %v1742_v3, 5  ;;  %v2572_v49 = vld [vmem:[%s3188_s10 + $0x10] sm:$0xe] }
  0x73   : > { %2805 = vmatprep.subr.bf16.mxu1 %v3092_v23  ;;  %2899 = vmatprep.subr.bf16.mxu0 %v3091_v9  ;;  %v1717_v31 = vsel %vm3233_vm2, %v1712_v10, %v1716_v14  ;;  %v2580_v3 = vrot.slane %v2572_v49, 9  ;;  %v2579_v10 = vld [vmem:[%s3188_s10 + $0x48] sm:$0xe] }
  0x74   : > { %2892 = vmatmul.mubr.bf16.gmra.mrb[4].mxu0 %v3100_v11  ;;  %v1754_v22 = vrot.slane %v1753_v46, 4  ;;  %v3106_v11 = vld [vmem:[%s3718_s1 + $0x200] sm:$0xff]   ;;  %v1745_v40 = vsel %vm3233_vm2, %v1740_v19, %v1744_v20  ;;  %v2561_v29 = vcombine.low %v1717_v31, %v1731_v57  ;;  %v2587_v19 = vrot.slane %v2579_v10, 9  ;;  %v3115_v20 = vld [vmem:[%s3718_s1 + $0x238] sm:$0xff]  }
  0x75   : > { %2900 = vmatpush3.bf16.msra.mxu0 %v3091_v9  ;;  %2911 = vmatprep.mubr.bf16.mxu0 %v2560_v39  ;;  %v1758_v9 = vrot.slane %v1756_v4, 5  ;;  %v3108_v39 = vld [vmem:[%s3188_s10 + $0x28] ss:$8 sps:$4 sm:$0xff]   ;;  %v1968_v4 = vrot.slane %v3546_v24, 5 }
  0x76   : > { %2806 = vmatpush3.bf16.msra.mxu1 %v3092_v23  ;;  %2901 = vmatprep.subr.bf16.mxu0 %v3093_v37  ;;  %v3625_v23 = vld [vmem:[%s3188_s10 + $0x44] sm:$0x1] }
  0x77   : > { %2807 = vmatprep.subr.bf16.mxu1 %v3094_v33  ;;  %v1770_v36 = vshll.u32 %v3625_v23, 16  ;;  %v1759_v41 = vsel %vm3233_vm2, %v1754_v22, %v1758_v9  ;;  %v1969_v24 = vsel %vm3407_vm5, %v2580_v3, %v1968_v4  ;;  %v1992_v14 = vrot.slane %v3625_v23, 5  ;;  %v2574_v22 = vld [vmem:[%s3188_s10 + $0x20] sm:$0xe]  ;;  %v2575_v9 = vld [vmem:[%s3188_s10 + $0x28] sm:$0xe] }
  0x78   : > { %v2562_v13 = vcombine.low %v1745_v40, %v1759_v41  ;;  %v2604_v50 = vcombine.low %v1969_v24, %v1973_v61  ;;  %v1997_v23 = vsel %vm3407_vm5, %v2587_v19, %v1996_v54  ;;  %v2583_v28 = vrot.slane %v2575_v9, 9 }
  0x79   : > { %2902 = vmatpush3.bf16.msra.mxu0 %v3093_v37  ;;  %v1784_v37 = vshll.u32 %v3628_v60, 16  ;;  %v1772_v63 = vrot.slane %v1770_v36, 5  ;;  %v2582_v60 = vrot.slane %v2574_v22, 9 }
  0x7a   : > { %2808 = vmatpush3.bf16.msra.mxu1 %v3094_v33  ;;  %2903 = vmatprep.subr.bf16.mxu0 %v3095_v43  ;;  %v2577_v33 = vld [vmem:[%s3188_s10 + $0x38] sm:$0xe] }
  0x7b   : > { %2809 = vmatprep.subr.bf16.mxu1 %v3096_v0  ;;  %v2585_v44 = vrot.slane %v2577_v33, 9  ;;  %v1786_v48 = vrot.slane %v1784_v37, 5 }
  0x7d   : > { %2904 = vmatpush3.bf16.msra.mxu0 %v3095_v43  ;;  %v3107_v43 = vld [vmem:[%s3718_s1 + $0x208] sm:$0xff]   ;;  %v1989_v62 = vsel %vm3407_vm5, %v2585_v44, %v1988_v45 }
  0x7e   : > { %2810 = vmatpush3.bf16.msra.mxu1 %v3096_v0  ;;  %2905 = vmatprep.subr.bf16.mxu0 %v3097_v52  ;;  %v2584_v0 = vrot.slane %v2576_v21, 9  ;;  %v1981_v21 = vsel %vm3407_vm5, %v2583_v28, %v1980_v32 }
  0x7f   : > { %2811 = vmatprep.subr.bf16.mxu1 %v3099_v26 }
  0x80   : > { %v1985_v47 = vsel %vm3407_vm5, %v2584_v0, %v1984_v55 }
  0x81   : > { %2906 = vmatpush3.bf16.msra.mxu0 %v3097_v52  ;;  %v1768_v52 = vrot.slane %v1767_v42, 4  ;;  %v2606_v34 = vcombine.low %v1985_v47, %v1989_v62 }
  0x82   : > { %2812 = vmatpush3.bf16.msra.mxu1 %v3099_v26  ;;  %2907 = vmatprep.subr.bf16.mxu0 %v3101_v56  ;;  %v1782_v26 = vrot.slane %v1781_v30, 4 }
  0x83   : > { %2813 = vmatprep.subr.bf16.mxu1 %v3102_v15  ;;  %v1773_v17 = vsel %vm3233_vm2, %v1768_v52, %v1772_v63 }
  0x84   : > { %v1787_v27 = vsel %vm3233_vm2, %v1782_v26, %v1786_v48 }
  0x85   : > { %2908 = vmatpush3.bf16.msra.mxu0 %v3101_v56  ;;  %v2563_v46 = vcombine.low %v1773_v17, %v1787_v27  ;;  %v2578_v56 = vld [vmem:[%s3188_s10 + $0x40] sm:$0xe]  ;;  %s2618_s10 = sshll.u32 %s3726_s13, 6 }
  0x86   : > { %2814 = vmatpush3.bf16.msra.mxu1 %v3102_v15  ;;  %2909 = vmatprep.subr.bf16.mxu0 %v3103_v12  ;;  %v3114_v15 = vld [vmem:[%s3718_s1 + $0x230] sm:$0xff]   ;;  %v2586_v18 = vrot.slane %v2578_v56, 9  ;;  %s177_s19 = scalar_lea.vmem %s3719_s2, %s2618_s10 }
  0x87   : > { %2943 = vmatprep.subr.bf16.mxu1 %v3106_v11 }
  0x88   : > { %v1993_v1 = vsel %vm3407_vm5, %v2586_v18, %v1992_v14 }
  0x89   : > { %2816 = vmatmul.mubr.bf16.vlgmr.msra.gmra.mrb[0].mxu1 %v3105_v35  ;;  %2910 = vmatpush3.bf16.msra.mxu0 %v3103_v12  ;;  %v1977_v12 = vsel %vm3407_vm5, %v2582_v60, %v1976_v25 }
  0x8a   : > { %2951 = vmatpush3.bf16.msra.mxu1 %v3106_v11  ;;  %2819 = vmatprep.mubr.bf16.mxu1 %v3108_v39  ;;  %v2605_v33 = vcombine.low %v1977_v12, %v1981_v21 }
  0x8b   : > { %2944 = vmatprep.subr.bf16.mxu1 %v3107_v43  ;;  %2919 = vmatprep.subr.bf16.mxu0 %v3106_v11 }
  0x8c   : > { %2912 = vmatmul.mubr.bf16.vlgmr.msra.gmra.mrb[0].mxu0 %v2561_v29 }
  0x8d   : > { %2920 = vmatpush3.bf16.msra.mxu0 %v3106_v11  ;;  %2915 = vmatprep.mubr.bf16.mxu0 %v2562_v13  ;;  %v2607_v11 = vcombine.low %v1993_v1, %v1997_v23 }
  0x8e   : > { %2952 = vmatpush3.bf16.msra.mxu1 %v3107_v43  ;;  %2921 = vmatprep.subr.bf16.mxu0 %v3107_v43 }
  0x8f   : > { %2945 = vmatprep.subr.bf16.mxu1 %v3110_v58 }
  0x91   : > { %2820 = vmatmul.mubr.bf16.gmra.mrb[4].mxu1 %v3109_v59  ;;  %2922 = vmatpush3.bf16.msra.mxu0 %v3107_v43 }
  0x92   : > { %2953 = vmatpush3.bf16.msra.mxu1 %v3110_v58  ;;  %2939 = vmatprep.mubr.bf16.mxu1 %v2606_v34 }
  0x93   : > { %2946 = vmatprep.subr.bf16.mxu1 %v3111_v16  ;;  %2923 = vmatprep.subr.bf16.mxu0 %v3110_v58 }
  0x94   : > { %2916 = vmatmul.mubr.bf16.gmra.mrb[4].mxu0 %v2563_v46 }
  0x95   : > { %2924 = vmatpush3.bf16.msra.mxu0 %v3110_v58  ;;  %2935 = vmatprep.mubr.bf16.mxu0 %v2604_v50 }
  0x96   : > { %2954 = vmatpush3.bf16.msra.mxu1 %v3111_v16  ;;  %2925 = vmatprep.subr.bf16.mxu0 %v3111_v16 }
  0x97   : > { %2947 = vmatprep.subr.bf16.mxu1 %v3112_v38 }
  0x99   : > { %2926 = vmatpush3.bf16.msra.mxu0 %v3111_v16 }
  0x9a   : > { %2955 = vmatpush3.bf16.msra.mxu1 %v3112_v38  ;;  %2927 = vmatprep.subr.bf16.mxu0 %v3112_v38 }
  0x9b   : > { %2948 = vmatprep.subr.bf16.mxu1 %v3113_v6 }
  0x9d   : > { %2928 = vmatpush3.bf16.msra.mxu0 %v3112_v38 }
  0x9e   : > { %2956 = vmatpush3.bf16.msra.mxu1 %v3113_v6  ;;  %2929 = vmatprep.subr.bf16.mxu0 %v3113_v6 }
  0x9f   : > { %2949 = vmatprep.subr.bf16.mxu1 %v3114_v15 }
  0xa1   : > { %2930 = vmatpush3.bf16.msra.mxu0 %v3113_v6 }
  0xa2   : > { %2957 = vmatpush3.bf16.msra.mxu1 %v3114_v15  ;;  %2931 = vmatprep.subr.bf16.mxu0 %v3114_v15 }
  0xa3   : > { %2950 = vmatprep.subr.bf16.mxu1 %v3115_v20 }
  0xa5   : > { %2932 = vmatpush3.bf16.msra.mxu0 %v3114_v15 }
  0xa6   : > { %2958 = vmatpush3.bf16.msra.mxu1 %v3115_v20  ;;  %2933 = vmatprep.subr.bf16.mxu0 %v3115_v20 }
  0xa9   : > { %2940 = vmatmul.mubr.bf16.vlgmr.msra.gmra.mrb[8].mxu1 %v2607_v11  ;;  %2934 = vmatpush3.bf16.msra.mxu0 %v3115_v20 }
  0xac   : > { %2936 = vmatmul.mubr.bf16.vlgmr.msra.gmra.mrb[0].mxu0 %v2605_v33 }
 0x15c   : > { %v2817_v35 = vpop.f32.mrb[0].mxu1 }
 0x15d   : > { %v958_v51 = vpop.f32.mrb[1].mxu1 }
 0x15e   : > { %v2818_v31 = vpop.f32.mrb[2].mxu1 }
 0x15f   : > { %v961_v2 = vpop.f32.mrb[3].mxu1 }
 0x164   : > { %v2821_v57 = vpop.f32.mrb[4].mxu1 }
 0x165   : > { %v974_v36 = vpop.f32.mrb[5].mxu1 }
 0x166   : > { %v2822_v37 = vpop.f32.mrb[6].mxu1 }
 0x167   : > { %v977_v39 = vpop.f32.mrb[7].mxu1  ;;  %v2917_v40 = vpop.f32.mrb[4].mxu0 }
 0x168   : > { %v2963_v41 = vadd.f32 %v2917_v40, %v2821_v57  ;;  %v1919_v42 = vpop.f32.mrb[5].mxu0 }
 0x169   : > { %v2965_v30 = vadd.f32 %v1919_v42, %v974_v36  ;;  %v2918_v8 = vpop.f32.mrb[6].mxu0 }
 0x16a   : > { %v2967_v43 = vadd.f32 %v2918_v8, %v2822_v37  ;;  %v1922_v0 = vpop.f32.mrb[7].mxu0 }
 0x16b   : > { %v2969_v55 = vadd.f32 %v1922_v0, %v977_v39 }
 0x17c   : > { %v2941_v44 = vpop.f32.mrb[8].mxu1 }
 0x17d   : > { %v2964_v45 = vadd.f32 %v2963_v41, %v2941_v44  ;;  %v2129_v29 = vpop.f32.mrb[9].mxu1 }
 0x17e   : > { %v2966_v13 = vadd.f32 %v2965_v30, %v2129_v29  ;;  %v2942_v63 = vpop.f32.mrb[10].mxu1 }
 0x17f   : > { %2158 = vst [vmem:[%s177_s19 + $0x30] sm:$0xff] %v2964_v45  ;;  %v2968_v48 = vadd.f32 %v2967_v43, %v2942_v63  ;;  %v2132_v49 = vpop.f32.mrb[11].mxu1  ;;  %v2937_v52 = vpop.f32.mrb[0].mxu0  ;;  %v2179_v14 = vmul.f32 %v2964_v45, %v2964_v45 }
 0x180   : > { %2156 = vst [vmem:[%s177_s19 + $0x20] sm:$0xff] %v2966_v13  ;;  %v2970_v53 = vadd.f32 %v2969_v55, %v2132_v49  ;;  %v2959_v26 = vadd.f32 %v2937_v52, %v2817_v35  ;;  %v2113_v47 = vpop.f32.mrb[1].mxu0  ;;  %v2177_v38 = vmul.f32 %v2966_v13, %v2966_v13 }
 0x181   : > { %2159 = vst [vmem:[%s177_s19 + $0x38] sm:$0xff] %v2968_v48  ;;  %v2960_v62 = vadd.f32 %v2113_v47, %v958_v51  ;;  %v2938_v58 = vpop.f32.mrb[2].mxu0  ;;  %v2180_v19 = vmul.f32 %v2968_v48, %v2968_v48 }
 0x182   : > { %2157 = vst [vmem:[%s177_s19 + $0x28] sm:$0xff] %v2970_v53  ;;  %2154 = vst [vmem:[%s177_s19 + $0x10] sm:$0xff] %v2959_v26  ;;  %v2961_v59 = vadd.f32 %v2938_v58, %v2818_v31  ;;  %v2116_v3 = vpop.f32.mrb[3].mxu0  ;;  %v2175_v17 = vmul.f32 %v2959_v26, %v2959_v26  ;;  %v2178_v56 = vmul.f32 %v2970_v53, %v2970_v53 }
 0x183   : > { %2152 = vst [vmem:[%s177_s19] sm:$0xff] %v2960_v62  ;;  %v2962_v4 = vadd.f32 %v2116_v3, %v961_v2  ;;  %v2173_v5 = vmul.f32 %v2960_v62, %v2960_v62 }
 0x184   : > { %2155 = vst [vmem:[%s177_s19 + $0x18] sm:$0xff] %v2961_v59  ;;  %v2176_v24 = vmul.f32 %v2961_v59, %v2961_v59 }
 0x185   : > { %2153 = vst [vmem:[%s177_s19 + $0x8] sm:$0xff] %v2962_v4  ;;  %v2160_v7 = vadd.f32 %v2962_v4, %v2960_v62  ;;  %v2174_v34 = vmul.f32 %v2962_v4, %v2962_v4 }
 0x187   : > { %v2161_v27 = vadd.f32 %v2959_v26, %v2160_v7  ;;  %v2181_v16 = vadd.f32 %v2174_v34, %v2173_v5 }
 0x189   : > { %v2182_v61 = vadd.f32 %v2181_v16, %v2175_v17  ;;  %v2162_v46 = vadd.f32 %v2961_v59, %v2161_v27 }
 0x18b   : > { %v2163_v50 = vadd.f32 %v2966_v13, %v2162_v46  ;;  %v2183_v6 = vadd.f32 %v2182_v61, %v2176_v24 }
 0x18d   : > { %v2164_v15 = vadd.f32 %v2970_v53, %v2163_v50  ;;  %v2184_v10 = vadd.f32 %v2183_v6, %v2177_v38 }
 0x18f   : > { %v2165_v54 = vadd.f32 %v2964_v45, %v2164_v15  ;;  %v2185_v18 = vadd.f32 %v2184_v10, %v2178_v56 }
 0x191   : > { %v2166_v20 = vadd.f32 %v2968_v48, %v2165_v54  ;;  %v2186_v22 = vadd.f32 %v2185_v18, %v2179_v14 }
 0x193   : > { %v2167_v9 = vrot.slane %v2166_v20, 4  ;;  %v2187_v1 = vadd.f32 %v2186_v22, %v2180_v19 }
 0x195   : > { %v2168_v23 = vadd.f32 %v2167_v9, %v2166_v20  ;;  %v2188_v60 = vrot.slane %v2187_v1, 4 }
 0x197   : > { %v2169_v25 = vrot.slane %v2168_v23, 2  ;;  %v2189_v28 = vadd.f32 %v2188_v60, %v2187_v1 }
 0x199   : > { %v2170_v32 = vadd.f32 %v2169_v25, %v2168_v23  ;;  %v2190_v11 = vrot.slane %v2189_v28, 2 }
 0x19b   : > { %v2171_v12 = vrot.slane %v2170_v32, 1  ;;  %v2191_v21 = vadd.f32 %v2190_v11, %v2189_v28 }
 0x19d   : > { %v2192_v33 = vrot.slane %v2191_v21, 1  ;;  %v2172_v35 = vadd.f32 %v2171_v12, %v2170_v32 }
 0x19f   : > { %v2193_v51 = vadd.f32 %v2192_v33, %v2191_v21 }
 0x1a1   : > { %v2195_v31 = vsel %vm2194_vm6, %v2172_v35, %v2193_v51 }
 0x1a2   : > { %2196 = vst [vmem:[%s181_s23] sm:$0x3] %v2195_v31 }
 0x1a3 PF: > { %s14_s12 = sadd.s32 1, %s3122_s12  }
 0x1a4   : > { %p11_p4 = scmp.ge.s32.totalorder %s14_s12, 4  }
 0x1a6   :  { %13 = sbr.rel (!%p11_p4) target bundleno = 1 (0x1), region = 80 }

</bundles_post_ra>
